<compile_context>
chip_gen: v5e
topology: v5e:2x2
jax: 0.10.0
libtpu: 0.0.40
codegen_flags: <defaults>
</compile_context>

<pallas_src>
import functools
import math

import jax
import jax.numpy as jnp
from jax.experimental import pallas as pl


# ------------------------------ fused kernel --------------------------------
def _fused_kernel(x_ref, enc_wih_ref, enc_whh_ref, enc_b_ref,
                  comb_w_ref, comb_b_ref, dec_whh_ref,
                  d1_w_ref, d1_b_ref, d2_w_ref, d2_b_ref,
                  out_ref, *, B, T, H, n_outputs):
    f32 = jnp.float32

    def lstm_cell(x_proj, h, c, whh):
        # Gate columns are host-permuted to (i, f, o, g): one contiguous sigmoid
        # slab (B, 3H) and one tanh slab (B, H) per step -> single EUP stream.
        gates = x_proj + jnp.dot(h, whh, preferred_element_type=f32)   # (B, 4H)
        ifo = jax.nn.sigmoid(gates[:, :3 * H])
        g = jnp.tanh(gates[:, 3 * H:])
        c = ifo[:, H:2 * H] * c + ifo[:, :H] * g
        h = ifo[:, 2 * H:3 * H] * jnp.tanh(c)
        return h, c

    # ---- encoder: input projection for ALL timesteps hoisted (one matmul) ----
    enc_proj = (jnp.dot(x_ref[...], enc_wih_ref[...], preferred_element_type=f32)
                + enc_b_ref[...])                        # (T*B, 4H), row = t*B + b
    # TODO(synk): the per-step (B,H)@(H,4H) recurrent matmul re-pushes Whh into
    # the MXU every step; an explicit weight-stationary scheme via
    # pltpu.matmul_push_rhs / matmul_acc_lhs / matmul_pop could shave the serial
    # matmul latency further, but is left to Mosaic's hoisting here.
    enc_whh = enc_whh_ref[...]
    h = jnp.zeros((B, H), f32)
    c = jnp.zeros((B, H), f32)
    for t in range(T):                                   # unrolled, static slices
        h, c = lstm_cell(enc_proj[t * B:(t + 1) * B, :], h, c, enc_whh)

    # ---- repeat-Linear fused (host side) with decoder input projection ----
    # One wide (B,H)@(H, n_outputs*4H) matmul replaces rep + n_outputs dec_proj.
    dec_proj = (jnp.dot(h, comb_w_ref[...], preferred_element_type=f32)
                + comb_b_ref[...])                       # (B, n_outputs*4H)

    # ---- decoder recurrence (MLP head hoisted out of the loop) ----
    dec_whh = dec_whh_ref[...]
    h2 = jnp.zeros((B, H), f32)
    c2 = jnp.zeros((B, H), f32)
    hs = []
    for t in range(n_outputs):                           # unrolled
        h2, c2 = lstm_cell(dec_proj[:, t * 4 * H:(t + 1) * 4 * H], h2, c2, dec_whh)
        hs.append(h2)
    dec_h = jnp.concatenate(hs, axis=0)                  # (n_outputs*B, H), row = t*B + b

    # ---- MLP head once over all decoder steps; single lane-dense store ----
    hid = jnp.maximum(jnp.dot(dec_h, d1_w_ref[...], preferred_element_type=f32)
                      + d1_b_ref[...], 0.0)
    out = jnp.dot(hid, d2_w_ref[...], preferred_element_type=f32) + d2_b_ref[...]
    out_ref[...] = out.astype(out_ref.dtype)


# ------------------------------ model wrapper --------------------------------
def encoder_decoder_lstm(params, x, n_outputs, hidden_dim):
    B, T, F = x.shape
    H = hidden_dim
    mid = params["d1_w"].shape[1]                 # 100 in the PyTorch module
    head = ((mid + 127) // 128) * 128             # lane-dense padded head width

    def perm_gates(w):
        # (..., 4H) columns in PyTorch order (i, f, g, o) -> (i, f, o, g)
        return jnp.concatenate([w[..., :2 * H], w[..., 3 * H:], w[..., 2 * H:3 * H]],
                               axis=-1)

    # Time-major flatten so the encoder input projection is one matmul and the
    # per-step slice enc_proj[t*B:(t+1)*B] is tile aligned.
    x_flat = jnp.transpose(x, (1, 0, 2)).reshape(T * B, F)

    enc_wih = perm_gates(params["enc_wih"])
    enc_whh = perm_gates(params["enc_whh"])
    enc_b = jnp.broadcast_to(perm_gates(params["enc_b"]), (T * B, 4 * H))

    dec_wih_p = perm_gates(params["dec_wih"])
    dec_whh = perm_gates(params["dec_whh"])
    dec_b_p = perm_gates(params["dec_b"])

    # Algebraic fusion of repeat-Linear with the decoder input projection:
    #   dec_in_t  = h_enc @ rep_w_t + rep_b_t           (rep_w_t = rep_w[:, tH:(t+1)H])
    #   dec_proj_t = dec_in_t @ dec_wih + dec_b
    #              = h_enc @ (rep_w_t @ dec_wih) + (rep_b_t @ dec_wih + dec_b)
    rep_w3 = params["rep_w"].reshape(H, n_outputs, H)
    comb_w = jnp.einsum("hnk,kg->hng", rep_w3, dec_wih_p).reshape(H, n_outputs * 4 * H)
    rep_b2 = params["rep_b"].reshape(n_outputs, H)
    comb_b = (rep_b2 @ dec_wih_p + dec_b_p).reshape(1, n_outputs * 4 * H)
    comb_b = jnp.broadcast_to(comb_b, (B, n_outputs * 4 * H))

    # Zero-pad the MLP head to lane-friendly widths (math unchanged) and
    # pre-broadcast its biases to the output row count.
    d1_w = jnp.zeros((H, head), jnp.float32).at[:, :mid].set(params["d1_w"])
    d1_b = jnp.zeros((1, head), jnp.float32).at[:, :mid].set(params["d1_b"])
    d2_w = jnp.zeros((head, head), jnp.float32).at[:mid, :1].set(params["d2_w"])
    d2_b = jnp.zeros((1, head), jnp.float32).at[:, :1].set(params["d2_b"])
    d1_b = jnp.broadcast_to(d1_b, (n_outputs * B, head))
    d2_b = jnp.broadcast_to(d2_b, (n_outputs * B, head))

    # Advisory cost estimate for XLA's scheduler around the custom call.
    flops = int(2 * T * B * F * 4 * H                 # encoder input projection
                + 2 * T * B * H * 4 * H               # encoder recurrence
                + 2 * B * H * n_outputs * 4 * H       # fused rep + decoder projection
                + 2 * n_outputs * B * H * 4 * H       # decoder recurrence
                + 2 * n_outputs * B * H * head        # head layer 1
                + 2 * n_outputs * B * head * head)    # head layer 2
    transcendentals = int((T + n_outputs) * B * 5 * H)
    bytes_accessed = int(4 * (x_flat.size + enc_wih.size + enc_whh.size + enc_b.size
                              + comb_w.size + comb_b.size + dec_whh.size
                              + d1_w.size + d1_b.size + d2_w.size + d2_b.size
                              + n_outputs * B * head))

    kernel = functools.partial(_fused_kernel, B=B, T=T, H=H, n_outputs=n_outputs)
    out = pl.pallas_call(
        kernel,
        out_shape=jax.ShapeDtypeStruct((n_outputs * B, head), jnp.float32),
        cost_estimate=pl.CostEstimate(flops=flops,
                                      transcendentals=transcendentals,
                                      bytes_accessed=bytes_accessed),
    )(x_flat, enc_wih, enc_whh, enc_b,
      comb_w, comb_b, dec_whh,
      d1_w, d1_b, d2_w, d2_b)

    # Kernel rows are t-major (row = t*B + b); column 0 holds the scalar output.
    return out[:, 0].reshape(n_outputs, B).T.reshape(B, n_outputs, 1)


# ------------------------------ parameters -----------------------------------
def init_params(key, n_features, n_outputs, hidden_dim):
    ks = jax.random.split(key, 12)
    s = 1.0 / math.sqrt(hidden_dim)
    s2 = 1.0 / math.sqrt(100.0)

    def u(k, shape, scale):
        return jax.random.uniform(k, shape, jnp.float32, -scale, scale)

    return {
        # encoder LSTM (gate order i, f, g, o; weights as (in, 4H); bias folded)
        "enc_wih": u(ks[0], (n_features, 4 * hidden_dim), s),
        "enc_whh": u(ks[1], (hidden_dim, 4 * hidden_dim), s),
        "enc_b":   u(ks[2], (1, 4 * hidden_dim), s),
        # repeat linear
        "rep_w":   u(ks[3], (hidden_dim, n_outputs * hidden_dim), s),
        "rep_b":   u(ks[4], (1, n_outputs * hidden_dim), s),
        # decoder LSTM
        "dec_wih": u(ks[5], (hidden_dim, 4 * hidden_dim), s),
        "dec_whh": u(ks[6], (hidden_dim, 4 * hidden_dim), s),
        "dec_b":   u(ks[7], (1, 4 * hidden_dim), s),
        # dense head: Linear(H,100) -> ReLU -> Linear(100,1)
        "d1_w":    u(ks[8], (hidden_dim, 100), s),
        "d1_b":    u(ks[9], (1, 100), s),
        "d2_w":    u(ks[10], (100, 1), s2),
        "d2_b":    u(ks[11], (1, 1), s2),
    }


# --------------------------- pure-JAX reference ------------------------------
def _lstm_ref(x, wih, whh, b):
    B, _, _ = x.shape
    H = whh.shape[0]

    def step(carry, xt):
        h, c = carry
        gates = xt @ wih + h @ whh + b
        i = jax.nn.sigmoid(gates[:, :H])
        f = jax.nn.sigmoid(gates[:, H:2 * H])
        g = jnp.tanh(gates[:, 2 * H:3 * H])
        o = jax.nn.sigmoid(gates[:, 3 * H:])
        c = f * c + i * g
        h = o * jnp.tanh(c)
        return (h, c), h

    init = (jnp.zeros((B, H), jnp.float32), jnp.zeros((B, H), jnp.float32))
    _, hs = jax.lax.scan(step, init, jnp.swapaxes(x, 0, 1))
    return jnp.swapaxes(hs, 0, 1)


def reference_forward(params, x, n_outputs, hidden_dim):
    B = x.shape[0]
    h_last = _lstm_ref(x, params["enc_wih"], params["enc_whh"], params["enc_b"])[:, -1, :]
    repeated = (h_last @ params["rep_w"] + params["rep_b"]).reshape(B, n_outputs, hidden_dim)
    decoded = _lstm_ref(repeated, params["dec_wih"], params["dec_whh"], params["dec_b"])
    h = jnp.maximum(decoded.reshape(B * n_outputs, hidden_dim) @ params["d1_w"]
                    + params["d1_b"], 0.0)
    out = h @ params["d2_w"] + params["d2_b"]
    return out.reshape(B, n_outputs, 1)


# ------------------------------- main ----------------------------------------
if __name__ == "__main__":
    import numpy as np

    B, T, N_FEATURES = 8, 8, 16
    HIDDEN, N_OUTPUTS = 128, 4

    key = jax.random.PRNGKey(0)
    kx, kp = jax.random.split(key)
    x = jax.random.normal(kx, (B, T, N_FEATURES), jnp.float32)
    params = init_params(kp, N_FEATURES, N_OUTPUTS, HIDDEN)

    forward = jax.jit(functools.partial(encoder_decoder_lstm,
                                        n_outputs=N_OUTPUTS, hidden_dim=HIDDEN))
    out = forward(params, x)
    out = jax.block_until_ready(out)
    assert out.shape == (B, N_OUTPUTS, 1)

    ref = reference_forward(params, x, N_OUTPUTS, HIDDEN)
    np.testing.assert_allclose(np.asarray(out), np.asarray(ref), rtol=1e-4, atol=1e-4)

    print("KERNEL_OK")
</pallas_src>

<mosaic_0001>
module attributes {stable_mosaic.version = 11 : i64} {
  func.func @_fused_kernel(%arg0: memref<64x16xf32, #tpu.memory_space<vmem>>, %arg1: memref<16x512xf32, #tpu.memory_space<vmem>>, %arg2: memref<128x512xf32, #tpu.memory_space<vmem>>, %arg3: memref<64x512xf32, #tpu.memory_space<vmem>>, %arg4: memref<128x2048xf32, #tpu.memory_space<vmem>>, %arg5: memref<8x2048xf32, #tpu.memory_space<vmem>>, %arg6: memref<128x512xf32, #tpu.memory_space<vmem>>, %arg7: memref<128x128xf32, #tpu.memory_space<vmem>>, %arg8: memref<32x128xf32, #tpu.memory_space<vmem>>, %arg9: memref<128x128xf32, #tpu.memory_space<vmem>>, %arg10: memref<32x128xf32, #tpu.memory_space<vmem>>, %arg11: memref<32x128xf32, #tpu.memory_space<vmem>>) attributes {dimension_semantics = [], scalar_prefetch = 0 : i64, scratch_operands = 0 : i64, tpu.core_type = #tpu.core_type<tc>} {
    %c0 = arith.constant 0 : index
    %c0_0 = arith.constant 0 : index
    %0 = vector.load %arg0[%c0, %c0_0] : memref<64x16xf32, #tpu.memory_space<vmem>>, vector<64x16xf32>
    %c0_1 = arith.constant 0 : index
    %c0_2 = arith.constant 0 : index
    %1 = vector.load %arg1[%c0_1, %c0_2] : memref<16x512xf32, #tpu.memory_space<vmem>>, vector<16x512xf32>
    %cst = arith.constant dense<0.000000e+00> : vector<64x512xf32>
    %2 = tpu.matmul %0, %1, %cst {dimension_numbers = #tpu.dot_dimension_numbers<[1], [0], [0], [1], [0, 0, 1, 1], [], []>} : vector<64x16xf32>, vector<16x512xf32>, vector<64x512xf32> -> vector<64x512xf32>
    %c0_3 = arith.constant 0 : index
    %c0_4 = arith.constant 0 : index
    %3 = vector.load %arg3[%c0_3, %c0_4] : memref<64x512xf32, #tpu.memory_space<vmem>>, vector<64x512xf32>
    %4 = arith.addf %2, %3 : vector<64x512xf32>
    %c0_5 = arith.constant 0 : index
    %c0_6 = arith.constant 0 : index
    %5 = vector.load %arg2[%c0_5, %c0_6] : memref<128x512xf32, #tpu.memory_space<vmem>>, vector<128x512xf32>
    %cst_7 = arith.constant 0.000000e+00 : f32
    %6 = vector.broadcast %cst_7 : f32 to vector<8x128xf32>
    %cst_8 = arith.constant 0.000000e+00 : f32
    %7 = vector.broadcast %cst_8 : f32 to vector<8x128xf32>
    %8 = vector.extract_strided_slice %4 {offsets = [0, 0], sizes = [8, 512], strides = [1, 1]} : vector<64x512xf32> to vector<8x512xf32>
    %cst_9 = arith.constant dense<0.000000e+00> : vector<8x512xf32>
    %9 = tpu.matmul %6, %5, %cst_9 {dimension_numbers = #tpu.dot_dimension_numbers<[1], [0], [0], [1], [0, 0, 1, 1], [], []>} : vector<8x128xf32>, vector<128x512xf32>, vector<8x512xf32> -> vector<8x512xf32>
    %10 = arith.addf %8, %9 : vector<8x512xf32>
    %11 = vector.extract_strided_slice %10 {offsets = [0, 0], sizes = [8, 384], strides = [1, 1]} : vector<8x512xf32> to vector<8x384xf32>
    %12 = arith.negf %11 : vector<8x384xf32>
    %13 = math.exp %12 : vector<8x384xf32>
    %cst_10 = arith.constant 1.000000e+00 : f32
    %14 = vector.broadcast %cst_10 : f32 to vector<8x384xf32>
    %15 = arith.addf %14, %13 : vector<8x384xf32>
    %16 = arith.divf %14, %15 : vector<8x384xf32>
    %17 = vector.extract_strided_slice %10 {offsets = [0, 384], sizes = [8, 128], strides = [1, 1]} : vector<8x512xf32> to vector<8x128xf32>
    %18 = math.tanh %17 : vector<8x128xf32>
    %19 = vector.extract_strided_slice %16 {offsets = [0, 128], sizes = [8, 128], strides = [1, 1]} : vector<8x384xf32> to vector<8x128xf32>
    %20 = arith.mulf %19, %7 : vector<8x128xf32>
    %21 = vector.extract_strided_slice %16 {offsets = [0, 0], sizes = [8, 128], strides = [1, 1]} : vector<8x384xf32> to vector<8x128xf32>
    %22 = arith.mulf %21, %18 : vector<8x128xf32>
    %23 = arith.addf %20, %22 : vector<8x128xf32>
    %24 = vector.extract_strided_slice %16 {offsets = [0, 256], sizes = [8, 128], strides = [1, 1]} : vector<8x384xf32> to vector<8x128xf32>
    %25 = math.tanh %23 : vector<8x128xf32>
    %26 = arith.mulf %24, %25 : vector<8x128xf32>
    %27 = vector.extract_strided_slice %4 {offsets = [8, 0], sizes = [8, 512], strides = [1, 1]} : vector<64x512xf32> to vector<8x512xf32>
    %cst_11 = arith.constant dense<0.000000e+00> : vector<8x512xf32>
    %28 = tpu.matmul %26, %5, %cst_11 {dimension_numbers = #tpu.dot_dimension_numbers<[1], [0], [0], [1], [0, 0, 1, 1], [], []>} : vector<8x128xf32>, vector<128x512xf32>, vector<8x512xf32> -> vector<8x512xf32>
    %29 = arith.addf %27, %28 : vector<8x512xf32>
    %30 = vector.extract_strided_slice %29 {offsets = [0, 0], sizes = [8, 384], strides = [1, 1]} : vector<8x512xf32> to vector<8x384xf32>
    %31 = arith.negf %30 : vector<8x384xf32>
    %32 = math.exp %31 : vector<8x384xf32>
    %cst_12 = arith.constant 1.000000e+00 : f32
    %33 = vector.broadcast %cst_12 : f32 to vector<8x384xf32>
    %34 = arith.addf %33, %32 : vector<8x384xf32>
    %35 = arith.divf %33, %34 : vector<8x384xf32>
    %36 = vector.extract_strided_slice %29 {offsets = [0, 384], sizes = [8, 128], strides = [1, 1]} : vector<8x512xf32> to vector<8x128xf32>
    %37 = math.tanh %36 : vector<8x128xf32>
    %38 = vector.extract_strided_slice %35 {offsets = [0, 128], sizes = [8, 128], strides = [1, 1]} : vector<8x384xf32> to vector<8x128xf32>
    %39 = arith.mulf %38, %23 : vector<8x128xf32>
    %40 = vector.extract_strided_slice %35 {offsets = [0, 0], sizes = [8, 128], strides = [1, 1]} : vector<8x384xf32> to vector<8x128xf32>
    %41 = arith.mulf %40, %37 : vector<8x128xf32>
    %42 = arith.addf %39, %41 : vector<8x128xf32>
    %43 = vector.extract_strided_slice %35 {offsets = [0, 256], sizes = [8, 128], strides = [1, 1]} : vector<8x384xf32> to vector<8x128xf32>
    %44 = math.tanh %42 : vector<8x128xf32>
    %45 = arith.mulf %43, %44 : vector<8x128xf32>
    %46 = vector.extract_strided_slice %4 {offsets = [16, 0], sizes = [8, 512], strides = [1, 1]} : vector<64x512xf32> to vector<8x512xf32>
    %cst_13 = arith.constant dense<0.000000e+00> : vector<8x512xf32>
    %47 = tpu.matmul %45, %5, %cst_13 {dimension_numbers = #tpu.dot_dimension_numbers<[1], [0], [0], [1], [0, 0, 1, 1], [], []>} : vector<8x128xf32>, vector<128x512xf32>, vector<8x512xf32> -> vector<8x512xf32>
    %48 = arith.addf %46, %47 : vector<8x512xf32>
    %49 = vector.extract_strided_slice %48 {offsets = [0, 0], sizes = [8, 384], strides = [1, 1]} : vector<8x512xf32> to vector<8x384xf32>
    %50 = arith.negf %49 : vector<8x384xf32>
    %51 = math.exp %50 : vector<8x384xf32>
    %cst_14 = arith.constant 1.000000e+00 : f32
    %52 = vector.broadcast %cst_14 : f32 to vector<8x384xf32>
    %53 = arith.addf %52, %51 : vector<8x384xf32>
    %54 = arith.divf %52, %53 : vector<8x384xf32>
    %55 = vector.extract_strided_slice %48 {offsets = [0, 384], sizes = [8, 128], strides = [1, 1]} : vector<8x512xf32> to vector<8x128xf32>
    %56 = math.tanh %55 : vector<8x128xf32>
    %57 = vector.extract_strided_slice %54 {offsets = [0, 128], sizes = [8, 128], strides = [1, 1]} : vector<8x384xf32> to vector<8x128xf32>
    %58 = arith.mulf %57, %42 : vector<8x128xf32>
    %59 = vector.extract_strided_slice %54 {offsets = [0, 0], sizes = [8, 128], strides = [1, 1]} : vector<8x384xf32> to vector<8x128xf32>
    %60 = arith.mulf %59, %56 : vector<8x128xf32>
    %61 = arith.addf %58, %60 : vector<8x128xf32>
    %62 = vector.extract_strided_slice %54 {offsets = [0, 256], sizes = [8, 128], strides = [1, 1]} : vector<8x384xf32> to vector<8x128xf32>
    %63 = math.tanh %61 : vector<8x128xf32>
    %64 = arith.mulf %62, %63 : vector<8x128xf32>
    %65 = vector.extract_strided_slice %4 {offsets = [24, 0], sizes = [8, 512], strides = [1, 1]} : vector<64x512xf32> to vector<8x512xf32>
    %cst_15 = arith.constant dense<0.000000e+00> : vector<8x512xf32>
    %66 = tpu.matmul %64, %5, %cst_15 {dimension_numbers = #tpu.dot_dimension_numbers<[1], [0], [0], [1], [0, 0, 1, 1], [], []>} : vector<8x128xf32>, vector<128x512xf32>, vector<8x512xf32> -> vector<8x512xf32>
    %67 = arith.addf %65, %66 : vector<8x512xf32>
    %68 = vector.extract_strided_slice %67 {offsets = [0, 0], sizes = [8, 384], strides = [1, 1]} : vector<8x512xf32> to vector<8x384xf32>
    %69 = arith.negf %68 : vector<8x384xf32>
    %70 = math.exp %69 : vector<8x384xf32>
    %cst_16 = arith.constant 1.000000e+00 : f32
    %71 = vector.broadcast %cst_16 : f32 to vector<8x384xf32>
    %72 = arith.addf %71, %70 : vector<8x384xf32>
    %73 = arith.divf %71, %72 : vector<8x384xf32>
    %74 = vector.extract_strided_slice %67 {offsets = [0, 384], sizes = [8, 128], strides = [1, 1]} : vector<8x512xf32> to vector<8x128xf32>
    %75 = math.tanh %74 : vector<8x128xf32>
    %76 = vector.extract_strided_slice %73 {offsets = [0, 128], sizes = [8, 128], strides = [1, 1]} : vector<8x384xf32> to vector<8x128xf32>
    %77 = arith.mulf %76, %61 : vector<8x128xf32>
    %78 = vector.extract_strided_slice %73 {offsets = [0, 0], sizes = [8, 128], strides = [1, 1]} : vector<8x384xf32> to vector<8x128xf32>
    %79 = arith.mulf %78, %75 : vector<8x128xf32>
    %80 = arith.addf %77, %79 : vector<8x128xf32>
    %81 = vector.extract_strided_slice %73 {offsets = [0, 256], sizes = [8, 128], strides = [1, 1]} : vector<8x384xf32> to vector<8x128xf32>
    %82 = math.tanh %80 : vector<8x128xf32>
    %83 = arith.mulf %81, %82 : vector<8x128xf32>
    %84 = vector.extract_strided_slice %4 {offsets = [32, 0], sizes = [8, 512], strides = [1, 1]} : vector<64x512xf32> to vector<8x512xf32>
    %cst_17 = arith.constant dense<0.000000e+00> : vector<8x512xf32>
    %85 = tpu.matmul %83, %5, %cst_17 {dimension_numbers = #tpu.dot_dimension_numbers<[1], [0], [0], [1], [0, 0, 1, 1], [], []>} : vector<8x128xf32>, vector<128x512xf32>, vector<8x512xf32> -> vector<8x512xf32>
    %86 = arith.addf %84, %85 : vector<8x512xf32>
    %87 = vector.extract_strided_slice %86 {offsets = [0, 0], sizes = [8, 384], strides = [1, 1]} : vector<8x512xf32> to vector<8x384xf32>
    %88 = arith.negf %87 : vector<8x384xf32>
    %89 = math.exp %88 : vector<8x384xf32>
    %cst_18 = arith.constant 1.000000e+00 : f32
    %90 = vector.broadcast %cst_18 : f32 to vector<8x384xf32>
    %91 = arith.addf %90, %89 : vector<8x384xf32>
    %92 = arith.divf %90, %91 : vector<8x384xf32>
    %93 = vector.extract_strided_slice %86 {offsets = [0, 384], sizes = [8, 128], strides = [1, 1]} : vector<8x512xf32> to vector<8x128xf32>
    %94 = math.tanh %93 : vector<8x128xf32>
    %95 = vector.extract_strided_slice %92 {offsets = [0, 128], sizes = [8, 128], strides = [1, 1]} : vector<8x384xf32> to vector<8x128xf32>
    %96 = arith.mulf %95, %80 : vector<8x128xf32>
    %97 = vector.extract_strided_slice %92 {offsets = [0, 0], sizes = [8, 128], strides = [1, 1]} : vector<8x384xf32> to vector<8x128xf32>
    %98 = arith.mulf %97, %94 : vector<8x128xf32>
    %99 = arith.addf %96, %98 : vector<8x128xf32>
    %100 = vector.extract_strided_slice %92 {offsets = [0, 256], sizes = [8, 128], strides = [1, 1]} : vector<8x384xf32> to vector<8x128xf32>
    %101 = math.tanh %99 : vector<8x128xf32>
    %102 = arith.mulf %100, %101 : vector<8x128xf32>
    %103 = vector.extract_strided_slice %4 {offsets = [40, 0], sizes = [8, 512], strides = [1, 1]} : vector<64x512xf32> to vector<8x512xf32>
    %cst_19 = arith.constant dense<0.000000e+00> : vector<8x512xf32>
    %104 = tpu.matmul %102, %5, %cst_19 {dimension_numbers = #tpu.dot_dimension_numbers<[1], [0], [0], [1], [0, 0, 1, 1], [], []>} : vector<8x128xf32>, vector<128x512xf32>, vector<8x512xf32> -> vector<8x512xf32>
    %105 = arith.addf %103, %104 : vector<8x512xf32>
    %106 = vector.extract_strided_slice %105 {offsets = [0, 0], sizes = [8, 384], strides = [1, 1]} : vector<8x512xf32> to vector<8x384xf32>
    %107 = arith.negf %106 : vector<8x384xf32>
    %108 = math.exp %107 : vector<8x384xf32>
    %cst_20 = arith.constant 1.000000e+00 : f32
    %109 = vector.broadcast %cst_20 : f32 to vector<8x384xf32>
    %110 = arith.addf %109, %108 : vector<8x384xf32>
    %111 = arith.divf %109, %110 : vector<8x384xf32>
    %112 = vector.extract_strided_slice %105 {offsets = [0, 384], sizes = [8, 128], strides = [1, 1]} : vector<8x512xf32> to vector<8x128xf32>
    %113 = math.tanh %112 : vector<8x128xf32>
    %114 = vector.extract_strided_slice %111 {offsets = [0, 128], sizes = [8, 128], strides = [1, 1]} : vector<8x384xf32> to vector<8x128xf32>
    %115 = arith.mulf %114, %99 : vector<8x128xf32>
    %116 = vector.extract_strided_slice %111 {offsets = [0, 0], sizes = [8, 128], strides = [1, 1]} : vector<8x384xf32> to vector<8x128xf32>
    %117 = arith.mulf %116, %113 : vector<8x128xf32>
    %118 = arith.addf %115, %117 : vector<8x128xf32>
    %119 = vector.extract_strided_slice %111 {offsets = [0, 256], sizes = [8, 128], strides = [1, 1]} : vector<8x384xf32> to vector<8x128xf32>
    %120 = math.tanh %118 : vector<8x128xf32>
    %121 = arith.mulf %119, %120 : vector<8x128xf32>
    %122 = vector.extract_strided_slice %4 {offsets = [48, 0], sizes = [8, 512], strides = [1, 1]} : vector<64x512xf32> to vector<8x512xf32>
    %cst_21 = arith.constant dense<0.000000e+00> : vector<8x512xf32>
    %123 = tpu.matmul %121, %5, %cst_21 {dimension_numbers = #tpu.dot_dimension_numbers<[1], [0], [0], [1], [0, 0, 1, 1], [], []>} : vector<8x128xf32>, vector<128x512xf32>, vector<8x512xf32> -> vector<8x512xf32>
    %124 = arith.addf %122, %123 : vector<8x512xf32>
    %125 = vector.extract_strided_slice %124 {offsets = [0, 0], sizes = [8, 384], strides = [1, 1]} : vector<8x512xf32> to vector<8x384xf32>
    %126 = arith.negf %125 : vector<8x384xf32>
    %127 = math.exp %126 : vector<8x384xf32>
    %cst_22 = arith.constant 1.000000e+00 : f32
    %128 = vector.broadcast %cst_22 : f32 to vector<8x384xf32>
    %129 = arith.addf %128, %127 : vector<8x384xf32>
    %130 = arith.divf %128, %129 : vector<8x384xf32>
    %131 = vector.extract_strided_slice %124 {offsets = [0, 384], sizes = [8, 128], strides = [1, 1]} : vector<8x512xf32> to vector<8x128xf32>
    %132 = math.tanh %131 : vector<8x128xf32>
    %133 = vector.extract_strided_slice %130 {offsets = [0, 128], sizes = [8, 128], strides = [1, 1]} : vector<8x384xf32> to vector<8x128xf32>
    %134 = arith.mulf %133, %118 : vector<8x128xf32>
    %135 = vector.extract_strided_slice %130 {offsets = [0, 0], sizes = [8, 128], strides = [1, 1]} : vector<8x384xf32> to vector<8x128xf32>
    %136 = arith.mulf %135, %132 : vector<8x128xf32>
    %137 = arith.addf %134, %136 : vector<8x128xf32>
    %138 = vector.extract_strided_slice %130 {offsets = [0, 256], sizes = [8, 128], strides = [1, 1]} : vector<8x384xf32> to vector<8x128xf32>
    %139 = math.tanh %137 : vector<8x128xf32>
    %140 = arith.mulf %138, %139 : vector<8x128xf32>
    %141 = vector.extract_strided_slice %4 {offsets = [56, 0], sizes = [8, 512], strides = [1, 1]} : vector<64x512xf32> to vector<8x512xf32>
    %cst_23 = arith.constant dense<0.000000e+00> : vector<8x512xf32>
    %142 = tpu.matmul %140, %5, %cst_23 {dimension_numbers = #tpu.dot_dimension_numbers<[1], [0], [0], [1], [0, 0, 1, 1], [], []>} : vector<8x128xf32>, vector<128x512xf32>, vector<8x512xf32> -> vector<8x512xf32>
    %143 = arith.addf %141, %142 : vector<8x512xf32>
    %144 = vector.extract_strided_slice %143 {offsets = [0, 0], sizes = [8, 384], strides = [1, 1]} : vector<8x512xf32> to vector<8x384xf32>
    %145 = arith.negf %144 : vector<8x384xf32>
    %146 = math.exp %145 : vector<8x384xf32>
    %cst_24 = arith.constant 1.000000e+00 : f32
    %147 = vector.broadcast %cst_24 : f32 to vector<8x384xf32>
    %148 = arith.addf %147, %146 : vector<8x384xf32>
    %149 = arith.divf %147, %148 : vector<8x384xf32>
    %150 = vector.extract_strided_slice %143 {offsets = [0, 384], sizes = [8, 128], strides = [1, 1]} : vector<8x512xf32> to vector<8x128xf32>
    %151 = math.tanh %150 : vector<8x128xf32>
    %152 = vector.extract_strided_slice %149 {offsets = [0, 128], sizes = [8, 128], strides = [1, 1]} : vector<8x384xf32> to vector<8x128xf32>
    %153 = arith.mulf %152, %137 : vector<8x128xf32>
    %154 = vector.extract_strided_slice %149 {offsets = [0, 0], sizes = [8, 128], strides = [1, 1]} : vector<8x384xf32> to vector<8x128xf32>
    %155 = arith.mulf %154, %151 : vector<8x128xf32>
    %156 = arith.addf %153, %155 : vector<8x128xf32>
    %157 = vector.extract_strided_slice %149 {offsets = [0, 256], sizes = [8, 128], strides = [1, 1]} : vector<8x384xf32> to vector<8x128xf32>
    %158 = math.tanh %156 : vector<8x128xf32>
    %159 = arith.mulf %157, %158 : vector<8x128xf32>
    %c0_25 = arith.constant 0 : index
    %c0_26 = arith.constant 0 : index
    %160 = vector.load %arg4[%c0_25, %c0_26] : memref<128x2048xf32, #tpu.memory_space<vmem>>, vector<128x2048xf32>
    %cst_27 = arith.constant dense<0.000000e+00> : vector<8x2048xf32>
    %161 = tpu.matmul %159, %160, %cst_27 {dimension_numbers = #tpu.dot_dimension_numbers<[1], [0], [0], [1], [0, 0, 1, 1], [], []>} : vector<8x128xf32>, vector<128x2048xf32>, vector<8x2048xf32> -> vector<8x2048xf32>
    %c0_28 = arith.constant 0 : index
    %c0_29 = arith.constant 0 : index
    %162 = vector.load %arg5[%c0_28, %c0_29] : memref<8x2048xf32, #tpu.memory_space<vmem>>, vector<8x2048xf32>
    %163 = arith.addf %161, %162 : vector<8x2048xf32>
    %c0_30 = arith.constant 0 : index
    %c0_31 = arith.constant 0 : index
    %164 = vector.load %arg6[%c0_30, %c0_31] : memref<128x512xf32, #tpu.memory_space<vmem>>, vector<128x512xf32>
    %cst_32 = arith.constant 0.000000e+00 : f32
    %165 = vector.broadcast %cst_32 : f32 to vector<8x128xf32>
    %cst_33 = arith.constant 0.000000e+00 : f32
    %166 = vector.broadcast %cst_33 : f32 to vector<8x128xf32>
    %167 = vector.extract_strided_slice %163 {offsets = [0, 0], sizes = [8, 512], strides = [1, 1]} : vector<8x2048xf32> to vector<8x512xf32>
    %cst_34 = arith.constant dense<0.000000e+00> : vector<8x512xf32>
    %168 = tpu.matmul %165, %164, %cst_34 {dimension_numbers = #tpu.dot_dimension_numbers<[1], [0], [0], [1], [0, 0, 1, 1], [], []>} : vector<8x128xf32>, vector<128x512xf32>, vector<8x512xf32> -> vector<8x512xf32>
    %169 = arith.addf %167, %168 : vector<8x512xf32>
    %170 = vector.extract_strided_slice %169 {offsets = [0, 0], sizes = [8, 384], strides = [1, 1]} : vector<8x512xf32> to vector<8x384xf32>
    %171 = arith.negf %170 : vector<8x384xf32>
    %172 = math.exp %171 : vector<8x384xf32>
    %cst_35 = arith.constant 1.000000e+00 : f32
    %173 = vector.broadcast %cst_35 : f32 to vector<8x384xf32>
    %174 = arith.addf %173, %172 : vector<8x384xf32>
    %175 = arith.divf %173, %174 : vector<8x384xf32>
    %176 = vector.extract_strided_slice %169 {offsets = [0, 384], sizes = [8, 128], strides = [1, 1]} : vector<8x512xf32> to vector<8x128xf32>
    %177 = math.tanh %176 : vector<8x128xf32>
    %178 = vector.extract_strided_slice %175 {offsets = [0, 128], sizes = [8, 128], strides = [1, 1]} : vector<8x384xf32> to vector<8x128xf32>
    %179 = arith.mulf %178, %166 : vector<8x128xf32>
    %180 = vector.extract_strided_slice %175 {offsets = [0, 0], sizes = [8, 128], strides = [1, 1]} : vector<8x384xf32> to vector<8x128xf32>
    %181 = arith.mulf %180, %177 : vector<8x128xf32>
    %182 = arith.addf %179, %181 : vector<8x128xf32>
    %183 = vector.extract_strided_slice %175 {offsets = [0, 256], sizes = [8, 128], strides = [1, 1]} : vector<8x384xf32> to vector<8x128xf32>
    %184 = math.tanh %182 : vector<8x128xf32>
    %185 = arith.mulf %183, %184 : vector<8x128xf32>
    %186 = vector.extract_strided_slice %163 {offsets = [0, 512], sizes = [8, 512], strides = [1, 1]} : vector<8x2048xf32> to vector<8x512xf32>
    %cst_36 = arith.constant dense<0.000000e+00> : vector<8x512xf32>
    %187 = tpu.matmul %185, %164, %cst_36 {dimension_numbers = #tpu.dot_dimension_numbers<[1], [0], [0], [1], [0, 0, 1, 1], [], []>} : vector<8x128xf32>, vector<128x512xf32>, vector<8x512xf32> -> vector<8x512xf32>
    %188 = arith.addf %186, %187 : vector<8x512xf32>
    %189 = vector.extract_strided_slice %188 {offsets = [0, 0], sizes = [8, 384], strides = [1, 1]} : vector<8x512xf32> to vector<8x384xf32>
    %190 = arith.negf %189 : vector<8x384xf32>
    %191 = math.exp %190 : vector<8x384xf32>
    %cst_37 = arith.constant 1.000000e+00 : f32
    %192 = vector.broadcast %cst_37 : f32 to vector<8x384xf32>
    %193 = arith.addf %192, %191 : vector<8x384xf32>
    %194 = arith.divf %192, %193 : vector<8x384xf32>
    %195 = vector.extract_strided_slice %188 {offsets = [0, 384], sizes = [8, 128], strides = [1, 1]} : vector<8x512xf32> to vector<8x128xf32>
    %196 = math.tanh %195 : vector<8x128xf32>
    %197 = vector.extract_strided_slice %194 {offsets = [0, 128], sizes = [8, 128], strides = [1, 1]} : vector<8x384xf32> to vector<8x128xf32>
    %198 = arith.mulf %197, %182 : vector<8x128xf32>
    %199 = vector.extract_strided_slice %194 {offsets = [0, 0], sizes = [8, 128], strides = [1, 1]} : vector<8x384xf32> to vector<8x128xf32>
    %200 = arith.mulf %199, %196 : vector<8x128xf32>
    %201 = arith.addf %198, %200 : vector<8x128xf32>
    %202 = vector.extract_strided_slice %194 {offsets = [0, 256], sizes = [8, 128], strides = [1, 1]} : vector<8x384xf32> to vector<8x128xf32>
    %203 = math.tanh %201 : vector<8x128xf32>
    %204 = arith.mulf %202, %203 : vector<8x128xf32>
    %205 = vector.extract_strided_slice %163 {offsets = [0, 1024], sizes = [8, 512], strides = [1, 1]} : vector<8x2048xf32> to vector<8x512xf32>
    %cst_38 = arith.constant dense<0.000000e+00> : vector<8x512xf32>
    %206 = tpu.matmul %204, %164, %cst_38 {dimension_numbers = #tpu.dot_dimension_numbers<[1], [0], [0], [1], [0, 0, 1, 1], [], []>} : vector<8x128xf32>, vector<128x512xf32>, vector<8x512xf32> -> vector<8x512xf32>
    %207 = arith.addf %205, %206 : vector<8x512xf32>
    %208 = vector.extract_strided_slice %207 {offsets = [0, 0], sizes = [8, 384], strides = [1, 1]} : vector<8x512xf32> to vector<8x384xf32>
    %209 = arith.negf %208 : vector<8x384xf32>
    %210 = math.exp %209 : vector<8x384xf32>
    %cst_39 = arith.constant 1.000000e+00 : f32
    %211 = vector.broadcast %cst_39 : f32 to vector<8x384xf32>
    %212 = arith.addf %211, %210 : vector<8x384xf32>
    %213 = arith.divf %211, %212 : vector<8x384xf32>
    %214 = vector.extract_strided_slice %207 {offsets = [0, 384], sizes = [8, 128], strides = [1, 1]} : vector<8x512xf32> to vector<8x128xf32>
    %215 = math.tanh %214 : vector<8x128xf32>
    %216 = vector.extract_strided_slice %213 {offsets = [0, 128], sizes = [8, 128], strides = [1, 1]} : vector<8x384xf32> to vector<8x128xf32>
    %217 = arith.mulf %216, %201 : vector<8x128xf32>
    %218 = vector.extract_strided_slice %213 {offsets = [0, 0], sizes = [8, 128], strides = [1, 1]} : vector<8x384xf32> to vector<8x128xf32>
    %219 = arith.mulf %218, %215 : vector<8x128xf32>
    %220 = arith.addf %217, %219 : vector<8x128xf32>
    %221 = vector.extract_strided_slice %213 {offsets = [0, 256], sizes = [8, 128], strides = [1, 1]} : vector<8x384xf32> to vector<8x128xf32>
    %222 = math.tanh %220 : vector<8x128xf32>
    %223 = arith.mulf %221, %222 : vector<8x128xf32>
    %224 = vector.extract_strided_slice %163 {offsets = [0, 1536], sizes = [8, 512], strides = [1, 1]} : vector<8x2048xf32> to vector<8x512xf32>
    %cst_40 = arith.constant dense<0.000000e+00> : vector<8x512xf32>
    %225 = tpu.matmul %223, %164, %cst_40 {dimension_numbers = #tpu.dot_dimension_numbers<[1], [0], [0], [1], [0, 0, 1, 1], [], []>} : vector<8x128xf32>, vector<128x512xf32>, vector<8x512xf32> -> vector<8x512xf32>
    %226 = arith.addf %224, %225 : vector<8x512xf32>
    %227 = vector.extract_strided_slice %226 {offsets = [0, 0], sizes = [8, 384], strides = [1, 1]} : vector<8x512xf32> to vector<8x384xf32>
    %228 = arith.negf %227 : vector<8x384xf32>
    %229 = math.exp %228 : vector<8x384xf32>
    %cst_41 = arith.constant 1.000000e+00 : f32
    %230 = vector.broadcast %cst_41 : f32 to vector<8x384xf32>
    %231 = arith.addf %230, %229 : vector<8x384xf32>
    %232 = arith.divf %230, %231 : vector<8x384xf32>
    %233 = vector.extract_strided_slice %226 {offsets = [0, 384], sizes = [8, 128], strides = [1, 1]} : vector<8x512xf32> to vector<8x128xf32>
    %234 = math.tanh %233 : vector<8x128xf32>
    %235 = vector.extract_strided_slice %232 {offsets = [0, 128], sizes = [8, 128], strides = [1, 1]} : vector<8x384xf32> to vector<8x128xf32>
    %236 = arith.mulf %235, %220 : vector<8x128xf32>
    %237 = vector.extract_strided_slice %232 {offsets = [0, 0], sizes = [8, 128], strides = [1, 1]} : vector<8x384xf32> to vector<8x128xf32>
    %238 = arith.mulf %237, %234 : vector<8x128xf32>
    %239 = arith.addf %236, %238 : vector<8x128xf32>
    %240 = vector.extract_strided_slice %232 {offsets = [0, 256], sizes = [8, 128], strides = [1, 1]} : vector<8x384xf32> to vector<8x128xf32>
    %241 = math.tanh %239 : vector<8x128xf32>
    %242 = arith.mulf %240, %241 : vector<8x128xf32>
    %243 = tpu.concatenate %185, %204, %223, %242 in 0 : vector<8x128xf32>, vector<8x128xf32>, vector<8x128xf32>, vector<8x128xf32> -> vector<32x128xf32>
    %c0_42 = arith.constant 0 : index
    %c0_43 = arith.constant 0 : index
    %244 = vector.load %arg7[%c0_42, %c0_43] : memref<128x128xf32, #tpu.memory_space<vmem>>, vector<128x128xf32>
    %cst_44 = arith.constant dense<0.000000e+00> : vector<32x128xf32>
    %245 = tpu.matmul %243, %244, %cst_44 {dimension_numbers = #tpu.dot_dimension_numbers<[1], [0], [0], [1], [0, 0, 1, 1], [], []>} : vector<32x128xf32>, vector<128x128xf32>, vector<32x128xf32> -> vector<32x128xf32>
    %c0_45 = arith.constant 0 : index
    %c0_46 = arith.constant 0 : index
    %246 = vector.load %arg8[%c0_45, %c0_46] : memref<32x128xf32, #tpu.memory_space<vmem>>, vector<32x128xf32>
    %247 = arith.addf %245, %246 : vector<32x128xf32>
    %cst_47 = arith.constant 0.000000e+00 : f32
    %248 = vector.broadcast %cst_47 : f32 to vector<32x128xf32>
    %249 = arith.maximumf %247, %248 : vector<32x128xf32>
    %c0_48 = arith.constant 0 : index
    %c0_49 = arith.constant 0 : index
    %250 = vector.load %arg9[%c0_48, %c0_49] : memref<128x128xf32, #tpu.memory_space<vmem>>, vector<128x128xf32>
    %cst_50 = arith.constant dense<0.000000e+00> : vector<32x128xf32>
    %251 = tpu.matmul %249, %250, %cst_50 {dimension_numbers = #tpu.dot_dimension_numbers<[1], [0], [0], [1], [0, 0, 1, 1], [], []>} : vector<32x128xf32>, vector<128x128xf32>, vector<32x128xf32> -> vector<32x128xf32>
    %c0_51 = arith.constant 0 : index
    %c0_52 = arith.constant 0 : index
    %252 = vector.load %arg10[%c0_51, %c0_52] : memref<32x128xf32, #tpu.memory_space<vmem>>, vector<32x128xf32>
    %253 = arith.addf %251, %252 : vector<32x128xf32>
    %c0_53 = arith.constant 0 : index
    %c0_54 = arith.constant 0 : index
    %254 = vector.load %arg11[%c0_53, %c0_54] : memref<32x128xf32, #tpu.memory_space<vmem>>, vector<32x128xf32>
    tpu.vector_store %arg11[%c0_53, %c0_54], %253 {strides = array<i32>} : memref<32x128xf32, #tpu.memory_space<vmem>>, vector<32x128xf32>,
    return
  }
}

</mosaic_0001>

<bundles_post_ra>
// kernel: squeeze.1
= control target key start
LH: loop header
LB: loop body
LE: loop exit
PB: predicated region body
PF: predicated region fallthrough
CT: control target
= control target key end

     0   :  { %s96_s0 = inlined_call_operand.vmem [shape: f32[32], index: 0, kind: input, shape index: {}]   ;;  %s97_s1 = inlined_call_operand.hbm [shape: f32[4,8], index: 1, kind: output, shape index: {}]  }
   0x1   :  { %v5_v0 = vld [vmem:[%s96_s0] sm:$0x1] }
   0x2   :  { %6 = vst [vmem:[#allocation3] sm:$0x1] %v5_v0 }
   0x3   :  { %2 = vsyncpa [#allocation1], 0  ;;  %s76_s0 = smov 120   ;;  %s77_s8 = smov 104   ;;  %vm8_vm0 = vcmask 64512  }
   0x4   :  { %s78_s9 = smov 112   ;;  %s79_s10 = smov [#allocation0]  }
   0x5   :  { %s37_s11 = sshll.u32 %s79_s10, 4  ;;  %s39_s1 = sshll.u32 %s97_s1, 4  ;;  %s38_s11 = int_to_ptr.vmem [resolvable:$true] %s37_s11  ;;  %s40_s1 = int_to_ptr.hbm [resolvable:$true] %s39_s1 }
   0x9   :  { %v10_v1 = vld [vmem:[#allocation3] sm:$0x1]  }
   0xa   :  { %v22_v2 = vld [vmem:[#allocation3] sm:$0x1]   ;;  %11 = vrot.lane.b32.xlu0 %v10_v1, %s76_s0 }
   0xb   :  { %23 = vrot.lane.b32.xlu1 %v22_v2, %s77_s8  ;;  %v16_v3 = vld [vmem:[#allocation3] sm:$0x1]  }
   0xc   :  { %v7_v4 = vld [vmem:[#allocation3] sm:$0x1]  }
   0xd   :  { %9 = vst.msk [vmem:[#allocation2] sm:$0x1] %vm8_vm0, %v7_v4  }
  0x12   :  { %17 = vrot.lane.b32.xlu0 %v16_v3, %s78_s9 }
  0x7c   :  { %v12_v5 = vpop.permute.xlu0 %11  }
  0x7d   :  { %v24_v6 = vpop.permute.xlu1 %23   ;;  %15 = vst.msk [vmem:[#allocation2 + $0x1] sm:$0x1] %vm8_vm0, %v12_v5  }
  0x7e   :  { %27 = vst.msk [vmem:[#allocation2 + $0x3] sm:$0x1] %vm8_vm0, %v24_v6  }
  0x84   :  { %v18_v7 = vpop.permute.xlu0 %17  }
  0x85   :  { %21 = vst.msk [vmem:[#allocation2 + $0x2] sm:$0x1] %vm8_vm0, %v18_v7  }
  0x8c   :  { %v30_v8 = vld [vmem:[#allocation2] sm:$0xf] }
  0x8d   :  { %33 = vst [vmem:[#allocation0] sm:$0xf] %v30_v8 }
  0x8e   :  { %42 = dma.vmem_to_hbm [thread:$0]  %s38_s11, 64, %s40_s1, [#allocation1]  }
  0x8f   :  { %74 = dma.done.wait [#allocation1], 64  }
  0x90   :  { %75 = vsyncadd [#allocation1], 4294967232 }
  0x91   :  { %45 = vsyncpa [#allocation1], 1 }

// kernel: encoder_decoder_lstm.1
= control target key start
LH: loop header
LB: loop body
LE: loop exit
PB: predicated region body
PF: predicated region fallthrough
CT: control target
= control target key end

     0   :  { %vm86_vm0 = vcmask 130048   ;;  %v6423_v51 = vmov 0.0   ;;  %s6411_s1 = inlined_call_operand.vmem [shape: f32[16,512], index: 1, kind: input, shape index: {}]   ;;  %s6412_s0 = inlined_call_operand.vmem [shape: f32[64,16], index: 0, kind: input, shape index: {}]   ;;  %s6413_s2 = inlined_call_operand.vmem [shape: f32[128,512], index: 2, kind: input, shape index: {}]   ;;  %s6414_s3 = inlined_call_operand.vmem [shape: f32[64,512], index: 3, kind: input, shape index: {}]   ;;  %s6415_s4 = inlined_call_operand.vmem [shape: f32[128,2048], index: 4, kind: input, shape index: {}]   ;;  %s6416_s6 = inlined_call_operand.vmem [shape: f32[128,512], index: 6, kind: input, shape index: {}]   ;;  %s6417_s5 = inlined_call_operand.vmem [shape: f32[8,2048], index: 5, kind: input, shape index: {}]   ;;  %s6418_s7 = inlined_call_operand.vmem [shape: f32[128,128], index: 7, kind: input, shape index: {}]   ;;  %s6419_s9 = inlined_call_operand.vmem [shape: f32[128,128], index: 9, kind: input, shape index: {}]   ;;  %s6420_s8 = inlined_call_operand.vmem [shape: f32[32,128], index: 8, kind: input, shape index: {}]   ;;  %s6421_s10 = inlined_call_operand.vmem [shape: f32[32,128], index: 10, kind: input, shape index: {}]   ;;  %s6422_s11 = inlined_call_operand.vmem [shape: f32[32,128], index: 11, kind: output, shape index: {}]  }
   0x1   :  { %v50_v0 = vld [vmem:[%s6411_s1 + $0x20] sm:$0xff]  ;;  %v51_v1 = vld [vmem:[%s6411_s1 + $0x28] sm:$0xff]  ;;  %v52_v10 = vld [vmem:[%s6411_s1 + $0x30] sm:$0xff] }
   0x2   :  { %v46_v2 = vld [vmem:[%s6411_s1] sm:$0xff]  ;;  %2937 = vmatpush.msra.mxu2 %v50_v0  ;;  %2939 = vmatpush.msra.mxu3 %v51_v1  ;;  %v47_v3 = vld [vmem:[%s6411_s1 + $0x8] sm:$0xff]  ;;  %v53_v11 = vld [vmem:[%s6411_s1 + $0x38] sm:$0xff] }
   0x3   :  { %v3274_v4 = vld [vmem:[%s6412_s0 + $0x20] sm:$0xff]  ;;  %125 = vmatpush.msra.mxu0 %v50_v0  ;;  %166 = vmatpush.msra.mxu1 %v51_v1  ;;  %v3293_v7 = vld [vmem:[%s6413_s2 + $0x1e8] sm:$0xff]  ;;  %v48_v14 = vld [vmem:[%s6411_s1 + $0x10] sm:$0xff] }
   0x4   :  { %2938 = vmatpush.msra.mxu2 %v46_v2  ;;  %2940 = vmatpush.msra.mxu3 %v47_v3  ;;  %v3279_v5 = vld [vmem:[%s6412_s0] sm:$0xff]  ;;  %v3307_v9 = vld [vmem:[%s6413_s2 + $0x1c8] sm:$0xff]  ;;  %v49_v16 = vld [vmem:[%s6411_s1 + $0x18] sm:$0xff] }
   0x5   :  { %2873 = vmatmul.msk.f32.vlgmr.msra.gmra.mxu2 %vm86_vm0, %v3274_v4  ;;  %2881 = vmatmul.msk.f32.vlgmr.msra.gmra.mxu3 %vm86_vm0, %v3274_v4  ;;  %v3288_v6 = vld [vmem:[%s6413_s2 + $0x1e0] sm:$0xff]  ;;  %v3325_v13 = vld [vmem:[%s6413_s2 + $0x1a8] sm:$0xff]  ;;  %v3402_v26 = vld [vmem:[%s6412_s0 + $0x30] sm:$0xff] }
   0x6   :  { %126 = vmatpush.msra.mxu0 %v46_v2  ;;  %167 = vmatpush.msra.mxu1 %v47_v3  ;;  %v3302_v8 = vld [vmem:[%s6413_s2 + $0x1c0] sm:$0xff]  ;;  %v3333_v15 = vld [vmem:[%s6412_s0 + $0x28] sm:$0xff]  ;;  %v3421_v29 = vld [vmem:[%s6412_s0 + $0x10] sm:$0xff] }
   0x7   :  { %2869 = vmatmul.msk.f32.vlgmr.msra.gmra.mxu0 %vm86_vm0, %v3279_v5  ;;  %2877 = vmatmul.msk.f32.vlgmr.msra.gmra.mxu1 %vm86_vm0, %v3279_v5  ;;  %v3320_v12 = vld [vmem:[%s6413_s2 + $0x1a0] sm:$0xff]  ;;  %v3348_v18 = vld [vmem:[%s6413_s2 + $0x188] sm:$0xff]  ;;  %v3468_v36 = vld [vmem:[%s6412_s0 + $0x38] sm:$0xff] }
   0x8   :  { %339 = vmatpush.msrb.mxu0 %v3288_v6  ;;  %359 = vmatpush.msrb.mxu1 %v3293_v7  ;;  %v3343_v17 = vld [vmem:[%s6413_s2 + $0x180] sm:$0xff]  ;;  %v3355_v19 = vld [vmem:[%s6412_s0 + $0x8] sm:$0xff]  ;;  %v3487_v39 = vld [vmem:[%s6412_s0 + $0x18] sm:$0xff] }
   0x9   :  { %207 = vmatpush.msrb.mxu2 %v52_v10  ;;  %248 = vmatpush.msrb.mxu3 %v53_v11  ;;  %v3364_v20 = vld [vmem:[%s6413_s2 + $0x160] sm:$0xff]  ;;  %v3369_v21 = vld [vmem:[%s6413_s2 + $0x168] sm:$0xff]  ;;  %v3508_v42 = vld [vmem:[%s6413_s2 + $0x1f0] sm:$0xff] }
   0xa   :  { %340 = vmatpush.msrb.mxu0 %v3302_v8  ;;  %360 = vmatpush.msrb.mxu1 %v3307_v9  ;;  %v3380_v22 = vld [vmem:[%s6413_s2 + $0x140] sm:$0xff]  ;;  %v3385_v23 = vld [vmem:[%s6413_s2 + $0x148] sm:$0xff]  ;;  %v3558_v49 = vld [vmem:[%s6413_s2 + $0x1f8] sm:$0xff] }
   0xb   :  { %208 = vmatpush.msrb.mxu2 %v48_v14  ;;  %249 = vmatpush.msrb.mxu3 %v49_v16  ;;  %v3392_v24 = vld [vmem:[%s6413_s2 + $0x120] sm:$0xff]  ;;  %v3397_v25 = vld [vmem:[%s6413_s2 + $0x128] sm:$0xff]  ;;  %v3563_v50 = vld [vmem:[%s6413_s2 + $0x1d0] sm:$0xff] }
   0xc   :  { %341 = vmatpush.msrb.mxu0 %v3320_v12  ;;  %361 = vmatpush.msrb.mxu1 %v3325_v13  ;;  %6549 = vst [vmem:[#allocation2_spill] sm:$0xff] %v3397_v25  ;;  %v3409_v27 = vld [vmem:[%s6413_s2 + $0x100] sm:$0xff]  ;;  %v3414_v28 = vld [vmem:[%s6413_s2 + $0x108] sm:$0xff]  ;;  %v3572_v52 = vld [vmem:[%s6413_s2 + $0x1d8] sm:$0xff] }
   0xd   :  { %2874 = vmatmul.msk.f32.gmra.mxu2 %vm86_vm0, %v3333_v15  ;;  %2882 = vmatmul.msk.f32.gmra.mxu3 %vm86_vm0, %v3333_v15  ;;  %6550 = vst [vmem:[#allocation3_spill] sm:$0xff] %v3409_v27  ;;  %v3430_v30 = vld [vmem:[%s6413_s2 + $0xe0] sm:$0xff]  ;;  %v3435_v31 = vld [vmem:[%s6413_s2 + $0xe8] sm:$0xff]  ;;  %v3577_v53 = vld [vmem:[%s6413_s2 + $0x1b0] sm:$0xff] }
   0xe   :  { %342 = vmatpush.msrb.mxu0 %v3343_v17  ;;  %362 = vmatpush.msrb.mxu1 %v3348_v18  ;;  %6551 = vst [vmem:[#allocation4_spill] sm:$0xff] %v3414_v28  ;;  %v3446_v32 = vld [vmem:[%s6413_s2 + $0xc0] sm:$0xff]  ;;  %v3451_v33 = vld [vmem:[%s6413_s2 + $0xc8] sm:$0xff]  ;;  %v3584_v54 = vld [vmem:[%s6413_s2 + $0x1b8] sm:$0xff] }
   0xf   :  { %2870 = vmatmul.msk.f32.gmra.mxu0 %vm86_vm0, %v3355_v19  ;;  %2878 = vmatmul.msk.f32.gmra.mxu1 %vm86_vm0, %v3355_v19  ;;  %6552 = vst [vmem:[#allocation5_spill] sm:$0xff] %v3435_v31  ;;  %v3458_v34 = vld [vmem:[%s6413_s2 + $0xa0] sm:$0xff]  ;;  %v3463_v35 = vld [vmem:[%s6413_s2 + $0xa8] sm:$0xff]  ;;  %v3589_v55 = vld [vmem:[%s6413_s2 + $0x190] sm:$0xff] }
  0x10   :  { %343 = vmatpush.msrb.mxu0 %v3364_v20  ;;  %363 = vmatpush.msrb.mxu1 %v3369_v21  ;;  %6553 = vst [vmem:[#allocation6_spill] sm:$0xff] %v3463_v35  ;;  %v3475_v37 = vld [vmem:[%s6413_s2 + $0x80] sm:$0xff]  ;;  %v3480_v38 = vld [vmem:[%s6413_s2 + $0x88] sm:$0xff]  ;;  %v3598_v56 = vld [vmem:[%s6413_s2 + $0x198] sm:$0xff] }
  0x11   :  { %6554 = vst [vmem:[#allocation7_spill] sm:$0xff] %v3475_v37  ;;  %v3496_v40 = vld [vmem:[%s6413_s2 + $0x60] sm:$0xff]  ;;  %v3501_v41 = vld [vmem:[%s6413_s2 + $0x68] sm:$0xff]  ;;  %379 = vmatpush.msra.mxu2 %v3508_v42  ;;  %399 = vmatpush.msra.mxu3 %v3558_v49  ;;  %v3611_v57 = vld [vmem:[%s6413_s2 + $0x170] sm:$0xff] }
  0x12   :  { %344 = vmatpush.msrb.mxu0 %v3380_v22  ;;  %364 = vmatpush.msrb.mxu1 %v3385_v23  ;;  %6555 = vst [vmem:[#allocation8_spill] sm:$0xff] %v3480_v38  ;;  %v3517_v43 = vld [vmem:[%s6413_s2 + $0x40] sm:$0xff]  ;;  %v3522_v44 = vld [vmem:[%s6413_s2 + $0x48] sm:$0xff]  ;;  %v3616_v58 = vld [vmem:[%s6413_s2 + $0x178] sm:$0xff] }
  0x13   :  { %6556 = vst [vmem:[#allocation9_spill] sm:$0xff] %v3496_v40  ;;  %v3529_v45 = vld [vmem:[%s6413_s2 + $0x20] sm:$0xff]  ;;  %v3534_v46 = vld [vmem:[%s6413_s2 + $0x28] sm:$0xff]  ;;  %380 = vmatpush.msra.mxu2 %v3563_v50  ;;  %400 = vmatpush.msra.mxu3 %v3572_v52  ;;  %v3621_v59 = vld [vmem:[%s6413_s2 + $0x150] sm:$0xff] }
  0x14   :  { %345 = vmatpush.msrb.mxu0 %v3392_v24  ;;  %365 = vmatpush.msrb.mxu1 %v3397_v25  ;;  %6557 = vst [vmem:[#allocation10_spill] sm:$0xff] %v3501_v41  ;;  %v3542_v47 = vld [vmem:[%s6413_s2] sm:$0xff]  ;;  %v3547_v48 = vld [vmem:[%s6413_s2 + $0x8] sm:$0xff]  ;;  %v3628_v60 = vld [vmem:[%s6413_s2 + $0x158] sm:$0xff] }
  0x15   :  { %2875 = vmatmul.msk.f32.gmra.mxu2 %vm86_vm0, %v3402_v26  ;;  %2883 = vmatmul.msk.f32.gmra.mxu3 %vm86_vm0, %v3402_v26  ;;  %6558 = vst [vmem:[#allocation11_spill] sm:$0xff] %v3517_v43  ;;  %v3633_v61 = vld [vmem:[%s6413_s2 + $0x130] sm:$0xff]  ;;  %v3642_v62 = vld [vmem:[%s6413_s2 + $0x138] sm:$0xff] }
  0x16   :  { %346 = vmatpush.msrb.mxu0 %v3409_v27  ;;  %366 = vmatpush.msrb.mxu1 %v3414_v28  ;;  %6559 = vst [vmem:[#allocation12_spill] sm:$0xff] %v3522_v44  ;;  %v3647_v63 = vld [vmem:[%s6413_s2 + $0x110] sm:$0xff]  ;;  %v3656_v0 = vld [vmem:[%s6413_s2 + $0x118] sm:$0xff] }
  0x17   :  { %2871 = vmatmul.msk.f32.gmra.mxu0 %vm86_vm0, %v3421_v29  ;;  %2879 = vmatmul.msk.f32.gmra.mxu1 %vm86_vm0, %v3421_v29  ;;  %6560 = vst [vmem:[#allocation13_spill] sm:$0xff] %v3529_v45  ;;  %v3669_v1 = vld [vmem:[%s6413_s2 + $0xf0] sm:$0xff]  ;;  %v3674_v2 = vld [vmem:[%s6413_s2 + $0xf8] sm:$0xff] }
  0x18   :  { %347 = vmatpush.msrb.mxu0 %v3430_v30  ;;  %367 = vmatpush.msrb.mxu1 %v3435_v31  ;;  %6561 = vst [vmem:[#allocation14_spill] sm:$0xff] %v3534_v46  ;;  %v3679_v3 = vld [vmem:[%s6413_s2 + $0xd0] sm:$0xff]  ;;  %v3700_v11 = vld [vmem:[%s6413_s2 + $0xb8] sm:$0xff] }
  0x19   :  { %6562 = vst [vmem:[#allocation15_spill] sm:$0xff] %v3542_v47  ;;  %381 = vmatpush.msra.mxu2 %v3577_v53  ;;  %401 = vmatpush.msra.mxu3 %v3584_v54  ;;  %v3691_v10 = vld [vmem:[%s6413_s2 + $0xb0] sm:$0xff]  ;;  %v3714_v16 = vld [vmem:[%s6413_s2 + $0x98] sm:$0xff] }
  0x1a   :  { %348 = vmatpush.msrb.mxu0 %v3446_v32  ;;  %368 = vmatpush.msrb.mxu1 %v3451_v33  ;;  %6563 = vst [vmem:[#allocation16_spill] sm:$0xff] %v3547_v48  ;;  %v3705_v14 = vld [vmem:[%s6413_s2 + $0x90] sm:$0xff] }
  0x1b   :  { %382 = vmatpush.msra.mxu2 %v3589_v55  ;;  %402 = vmatpush.msra.mxu3 %v3598_v56  ;;  %6564 = vst [vmem:[#allocation17_spill] sm:$0xff] %v3691_v10 }
  0x1c   :  { %349 = vmatpush.msrb.mxu0 %v3458_v34  ;;  %369 = vmatpush.msrb.mxu1 %v3463_v35  ;;  %6565 = vst [vmem:[#allocation18_spill] sm:$0xff] %v3700_v11 }
  0x1d   :  { %2876 = vmatmul.msk.f32.gmra.mxu2 %vm86_vm0, %v3468_v36  ;;  %2884 = vmatmul.msk.f32.gmra.mxu3 %vm86_vm0, %v3468_v36  ;;  %6566 = vst [vmem:[#allocation19_spill] sm:$0xff] %v3705_v14 }
  0x1e   :  { %350 = vmatpush.msrb.mxu0 %v3475_v37  ;;  %370 = vmatpush.msrb.mxu1 %v3480_v38  ;;  %6567 = vst [vmem:[#allocation20_spill] sm:$0xff] %v3714_v16 }
  0x1f   :  { %2872 = vmatmul.msk.f32.gmra.mxu0 %vm86_vm0, %v3487_v39  ;;  %2880 = vmatmul.msk.f32.gmra.mxu1 %vm86_vm0, %v3487_v39 }
  0x20   :  { %351 = vmatpush.msrb.mxu0 %v3496_v40  ;;  %371 = vmatpush.msrb.mxu1 %v3501_v41 }
  0x21   :  { %383 = vmatpush.msra.mxu2 %v3611_v57  ;;  %403 = vmatpush.msra.mxu3 %v3616_v58 }
  0x22   :  { %352 = vmatpush.msrb.mxu0 %v3517_v43  ;;  %372 = vmatpush.msrb.mxu1 %v3522_v44 }
  0x23   :  { %384 = vmatpush.msra.mxu2 %v3621_v59  ;;  %404 = vmatpush.msra.mxu3 %v3628_v60 }
  0x24   :  { %353 = vmatpush.msrb.mxu0 %v3529_v45  ;;  %373 = vmatpush.msrb.mxu1 %v3534_v46 }
  0x25   :  { %2885 = vmatmul.msk.f32.vlgmr.msrb.gmra.mxu2 %vm86_vm0, %v3279_v5  ;;  %2893 = vmatmul.msk.f32.vlgmr.msrb.gmra.mxu3 %vm86_vm0, %v3279_v5  ;;  %v3686_v5 = vld [vmem:[%s6413_s2 + $0xd8] sm:$0xff] }
  0x26   :  { %354 = vmatpush.msrb.mxu0 %v3542_v47  ;;  %374 = vmatpush.msrb.mxu1 %v3547_v48 }
  0x27   :  { %355 = vmatmul.f32.vlgmr.msrb.gmra.mxu0 %v6423_v51  ;;  %375 = vmatmul.f32.vlgmr.msrb.gmra.mxu1 %v6423_v51  ;;  %v3737_v51 = vld [vmem:[%s6413_s2 + $0x50] sm:$0xff] }
  0x28   :  { %486 = vmatpush.msra.mxu0 %v3288_v6  ;;  %506 = vmatpush.msra.mxu1 %v3293_v7  ;;  %6570 = vst [vmem:[#allocation23_spill] sm:$0xff] %v3737_v51 }
  0x29   :  { %385 = vmatpush.msra.mxu2 %v3633_v61  ;;  %405 = vmatpush.msra.mxu3 %v3642_v62 }
  0x2a   :  { %487 = vmatpush.msra.mxu0 %v3302_v8  ;;  %507 = vmatpush.msra.mxu1 %v3307_v9 }
  0x2b   :  { %386 = vmatpush.msra.mxu2 %v3647_v63  ;;  %406 = vmatpush.msra.mxu3 %v3656_v0 }
  0x2c   :  { %488 = vmatpush.msra.mxu0 %v3320_v12  ;;  %508 = vmatpush.msra.mxu1 %v3325_v13 }
  0x2d   :  { %2886 = vmatmul.msk.f32.gmra.mxu2 %vm86_vm0, %v3355_v19  ;;  %2894 = vmatmul.msk.f32.gmra.mxu3 %vm86_vm0, %v3355_v19  ;;  %v3727_v19 = vld [vmem:[%s6413_s2 + $0x70] sm:$0xff] }
  0x2e   :  { %489 = vmatpush.msra.mxu0 %v3343_v17  ;;  %509 = vmatpush.msra.mxu1 %v3348_v18  ;;  %6568 = vst [vmem:[#allocation21_spill] sm:$0xff] %v3727_v19 }
  0x2f   :  { %387 = vmatpush.msra.mxu2 %v3669_v1  ;;  %407 = vmatpush.msra.mxu3 %v3674_v2 }
  0x30   :  { %490 = vmatpush.msra.mxu0 %v3364_v20  ;;  %510 = vmatpush.msra.mxu1 %v3369_v21 }
  0x31   :  { %388 = vmatpush.msra.mxu2 %v3679_v3  ;;  %408 = vmatpush.msra.mxu3 %v3686_v5 }
  0x32   :  { %491 = vmatpush.msra.mxu0 %v3380_v22  ;;  %511 = vmatpush.msra.mxu1 %v3385_v23 }
  0x33   :  { %389 = vmatpush.msra.mxu2 %v3691_v10  ;;  %409 = vmatpush.msra.mxu3 %v3700_v11 }
  0x34   :  { %492 = vmatpush.msra.mxu0 %v3392_v24  ;;  %512 = vmatpush.msra.mxu1 %v3397_v25  ;;  %v3763_v25 = vld [vmem:[%s6413_s2 + $0x10] sm:$0xff] }
  0x35   :  { %2887 = vmatmul.msk.f32.gmra.mxu2 %vm86_vm0, %v3421_v29  ;;  %2895 = vmatmul.msk.f32.gmra.mxu3 %vm86_vm0, %v3421_v29  ;;  %v3732_v29 = vld [vmem:[%s6413_s2 + $0x78] sm:$0xff]  ;;  %6574 = vst [vmem:[#allocation27_spill] sm:$0xff] %v3763_v25 }
  0x36   :  { %493 = vmatpush.msra.mxu0 %v3409_v27  ;;  %513 = vmatpush.msra.mxu1 %v3414_v28  ;;  %6569 = vst [vmem:[#allocation22_spill] sm:$0xff] %v3732_v29  ;;  %v3749_v28 = vld [vmem:[%s6413_s2 + $0x30] sm:$0xff]  ;;  %v3758_v27 = vld [vmem:[%s6413_s2 + $0x38] sm:$0xff] }
  0x37   :  { %390 = vmatpush.msra.mxu2 %v3705_v14  ;;  %410 = vmatpush.msra.mxu3 %v3714_v16  ;;  %6572 = vst [vmem:[#allocation25_spill] sm:$0xff] %v3749_v28 }
  0x38   :  { %494 = vmatpush.msra.mxu0 %v3430_v30  ;;  %514 = vmatpush.msra.mxu1 %v3435_v31  ;;  %6573 = vst [vmem:[#allocation26_spill] sm:$0xff] %v3758_v27  ;;  %v3772_v31 = vld [vmem:[%s6413_s2 + $0x18] sm:$0xff] }
  0x39   :  { %391 = vmatpush.msra.mxu2 %v3727_v19  ;;  %411 = vmatpush.msra.mxu3 %v3732_v29  ;;  %6575 = vst [vmem:[#allocation28_spill] sm:$0xff] %v3772_v31 }
  0x3a   :  { %495 = vmatpush.msra.mxu0 %v3446_v32  ;;  %515 = vmatpush.msra.mxu1 %v3451_v33 }
  0x3b   :  { %392 = vmatpush.msra.mxu2 %v3737_v51 }
  0x3c   :  { %496 = vmatpush.msra.mxu0 %v3458_v34  ;;  %516 = vmatpush.msra.mxu1 %v3463_v35 }
  0x3d   :  { %2888 = vmatmul.msk.f32.gmra.mxu2 %vm86_vm0, %v3487_v39  ;;  %2896 = vmatmul.msk.f32.gmra.mxu3 %vm86_vm0, %v3487_v39  ;;  %v3744_v39 = vld [vmem:[%s6413_s2 + $0x58] sm:$0xff] }
  0x3e   :  { %6571 = vst [vmem:[#allocation24_spill] sm:$0xff] %v3744_v39  ;;  %412 = vmatpush.msra.mxu3 %v3744_v39  ;;  %393 = vmatpush.msra.mxu2 %v3749_v28 }
  0x3f   :  { %497 = vmatpush.msra.mxu0 %v3475_v37  ;;  %517 = vmatpush.msra.mxu1 %v3480_v38 }
  0x40   :  { %413 = vmatpush.msra.mxu3 %v3758_v27  ;;  %394 = vmatpush.msra.mxu2 %v3763_v25 }
  0x41   :  { %498 = vmatpush.msra.mxu0 %v3496_v40  ;;  %518 = vmatpush.msra.mxu1 %v3501_v41 }
  0x42   :  { %414 = vmatpush.msra.mxu3 %v3772_v31  ;;  %526 = vmatpush.msrb.mxu2 %v3508_v42 }
  0x43   :  { %499 = vmatpush.msra.mxu0 %v3517_v43  ;;  %519 = vmatpush.msra.mxu1 %v3522_v44 }
  0x44   :  { %546 = vmatpush.msrb.mxu3 %v3558_v49  ;;  %527 = vmatpush.msrb.mxu2 %v3563_v50 }
  0x45   :  { %2889 = vmatmul.msk.f32.gmra.mxu2 %vm86_vm0, %v3274_v4  ;;  %2897 = vmatmul.msk.f32.gmra.mxu3 %vm86_vm0, %v3274_v4  ;;  %v6576_v4 = vld [vmem:[#allocation2_spill] sm:$0xff] }
  0x46   :  { %547 = vmatpush.msrb.mxu3 %v3572_v52  ;;  %528 = vmatpush.msrb.mxu2 %v3577_v53 }
  0x47   :  { %500 = vmatpush.msra.mxu0 %v3529_v45  ;;  %520 = vmatpush.msra.mxu1 %v3534_v46 }
  0x48   :  { %548 = vmatpush.msrb.mxu3 %v3584_v54  ;;  %529 = vmatpush.msrb.mxu2 %v3589_v55 }
  0x49   :  { %501 = vmatpush.msra.mxu0 %v3542_v47  ;;  %521 = vmatpush.msra.mxu1 %v3547_v48 }
  0x4a   :  { %549 = vmatpush.msrb.mxu3 %v3598_v56  ;;  %530 = vmatpush.msrb.mxu2 %v3611_v57 }
  0x4b   :  { %633 = vmatpush.msrb.mxu0 %v3288_v6  ;;  %653 = vmatpush.msrb.mxu1 %v3293_v7 }
  0x4c   :  { %550 = vmatpush.msrb.mxu3 %v3616_v58  ;;  %531 = vmatpush.msrb.mxu2 %v3621_v59 }
  0x4d   :  { %2890 = vmatmul.msk.f32.gmra.mxu2 %vm86_vm0, %v3333_v15  ;;  %2898 = vmatmul.msk.f32.gmra.mxu3 %vm86_vm0, %v3333_v15  ;;  %v6577_v15 = vmov 0.0  }
  0x4e   :  { %551 = vmatpush.msrb.mxu3 %v3628_v60  ;;  %532 = vmatpush.msrb.mxu2 %v3633_v61 }
  0x4f   :  { %634 = vmatpush.msrb.mxu0 %v3302_v8  ;;  %654 = vmatpush.msrb.mxu1 %v3307_v9 }
  0x50   :  { %552 = vmatpush.msrb.mxu3 %v3642_v62  ;;  %533 = vmatpush.msrb.mxu2 %v3647_v63 }
  0x51   :  { %635 = vmatpush.msrb.mxu0 %v3320_v12  ;;  %655 = vmatpush.msrb.mxu1 %v3325_v13 }
  0x52   :  { %553 = vmatpush.msrb.mxu3 %v3656_v0  ;;  %534 = vmatpush.msrb.mxu2 %v3669_v1 }
  0x53   :  { %636 = vmatpush.msrb.mxu0 %v3343_v17  ;;  %656 = vmatpush.msrb.mxu1 %v3348_v18 }
  0x54   :  { %554 = vmatpush.msrb.mxu3 %v3674_v2  ;;  %535 = vmatpush.msrb.mxu2 %v3679_v3 }
  0x55   :  { %2891 = vmatmul.msk.f32.gmra.mxu2 %vm86_vm0, %v3402_v26  ;;  %2899 = vmatmul.msk.f32.gmra.mxu3 %vm86_vm0, %v3402_v26  ;;  %v6578_v26 = vld [vmem:[#allocation3_spill] sm:$0xff] }
  0x56   :  { %555 = vmatpush.msrb.mxu3 %v3686_v5  ;;  %536 = vmatpush.msrb.mxu2 %v3691_v10 }
  0x57   :  { %637 = vmatpush.msrb.mxu0 %v3364_v20  ;;  %657 = vmatpush.msrb.mxu1 %v3369_v21 }
  0x58   :  { %556 = vmatpush.msrb.mxu3 %v3700_v11  ;;  %537 = vmatpush.msrb.mxu2 %v3705_v14 }
  0x59   :  { %638 = vmatpush.msrb.mxu0 %v3380_v22  ;;  %658 = vmatpush.msrb.mxu1 %v3385_v23 }
  0x5a   :  { %557 = vmatpush.msrb.mxu3 %v3714_v16  ;;  %538 = vmatpush.msrb.mxu2 %v3727_v19 }
  0x5b   :  { %639 = vmatpush.msrb.mxu0 %v3392_v24  ;;  %659 = vmatpush.msrb.mxu1 %v6576_v4  ;;  %v6580_v4 = vld [vmem:[#allocation5_spill] sm:$0xff] }
  0x5c   :  { %558 = vmatpush.msrb.mxu3 %v3732_v29  ;;  %539 = vmatpush.msrb.mxu2 %v3737_v51 }
  0x5d   :  { %2892 = vmatmul.msk.f32.gmra.mxu2 %vm86_vm0, %v3468_v36  ;;  %2900 = vmatmul.msk.f32.gmra.mxu3 %vm86_vm0, %v3468_v36  ;;  %v6579_v36 = vld [vmem:[#allocation4_spill] sm:$0xff] }
  0x5e   :  { %559 = vmatpush.msrb.mxu3 %v3744_v39  ;;  %540 = vmatpush.msrb.mxu2 %v3749_v28 }
  0x5f   :  { %640 = vmatpush.msrb.mxu0 %v6578_v26  ;;  %660 = vmatpush.msrb.mxu1 %v6579_v36 }
  0x60   :  { %560 = vmatpush.msrb.mxu3 %v3758_v27  ;;  %541 = vmatpush.msrb.mxu2 %v3763_v25 }
  0x61   :  { %641 = vmatpush.msrb.mxu0 %v3430_v30  ;;  %661 = vmatpush.msrb.mxu1 %v6580_v4 }
  0x62   :  { %561 = vmatpush.msrb.mxu3 %v3772_v31 }
  0x63   :  { %642 = vmatpush.msrb.mxu0 %v3446_v32  ;;  %662 = vmatpush.msrb.mxu1 %v3451_v33 }
  0x65   :  { %395 = vmatmul.f32.vlgmr.msra.gmra.mxu2 %v6577_v15  ;;  %415 = vmatmul.f32.vlgmr.msra.gmra.mxu3 %v6577_v15 }
  0x66   :  { %673 = vmatpush.msra.mxu2 %v3508_v42  ;;  %693 = vmatpush.msra.mxu3 %v3558_v49 }
  0x67   :  { %643 = vmatpush.msrb.mxu0 %v3458_v34  ;;  %663 = vmatpush.msrb.mxu1 %v3463_v35 }
  0x68   :  { %674 = vmatpush.msra.mxu2 %v3563_v50  ;;  %694 = vmatpush.msra.mxu3 %v3572_v52 }
  0x69   :  { %644 = vmatpush.msrb.mxu0 %v3475_v37  ;;  %664 = vmatpush.msrb.mxu1 %v3480_v38 }
  0x6a   :  { %675 = vmatpush.msra.mxu2 %v3577_v53  ;;  %695 = vmatpush.msra.mxu3 %v3584_v54 }
  0x6b   :  { %645 = vmatpush.msrb.mxu0 %v3496_v40  ;;  %665 = vmatpush.msrb.mxu1 %v3501_v41 }
  0x6c   :  { %676 = vmatpush.msra.mxu2 %v3589_v55  ;;  %696 = vmatpush.msra.mxu3 %v3598_v56 }
  0x6d   :  { %646 = vmatpush.msrb.mxu0 %v3517_v43  ;;  %666 = vmatpush.msrb.mxu1 %v3522_v44 }
  0x6e   :  { %677 = vmatpush.msra.mxu2 %v3611_v57  ;;  %697 = vmatpush.msra.mxu3 %v3616_v58 }
  0x6f   :  { %647 = vmatpush.msrb.mxu0 %v3529_v45  ;;  %667 = vmatpush.msrb.mxu1 %v3534_v46 }
  0x70   :  { %678 = vmatpush.msra.mxu2 %v3621_v59  ;;  %698 = vmatpush.msra.mxu3 %v3628_v60 }
  0x71   :  { %648 = vmatpush.msrb.mxu0 %v3542_v47  ;;  %668 = vmatpush.msrb.mxu1 %v3547_v48 }
  0x72   :  { %679 = vmatpush.msra.mxu2 %v3633_v61  ;;  %699 = vmatpush.msra.mxu3 %v3642_v62 }
  0x74   :  { %680 = vmatpush.msra.mxu2 %v3647_v63  ;;  %700 = vmatpush.msra.mxu3 %v3656_v0 }
  0x76   :  { %681 = vmatpush.msra.mxu2 %v3669_v1  ;;  %701 = vmatpush.msra.mxu3 %v3674_v2 }
  0x78   :  { %682 = vmatpush.msra.mxu2 %v3679_v3  ;;  %702 = vmatpush.msra.mxu3 %v3686_v5 }
  0x7a   :  { %683 = vmatpush.msra.mxu2 %v3691_v10  ;;  %703 = vmatpush.msra.mxu3 %v3700_v11 }
  0x7c   :  { %684 = vmatpush.msra.mxu2 %v3705_v14  ;;  %704 = vmatpush.msra.mxu3 %v3714_v16 }
  0x7e   :  { %685 = vmatpush.msra.mxu2 %v3727_v19  ;;  %705 = vmatpush.msra.mxu3 %v3732_v29 }
  0x80   :  { %686 = vmatpush.msra.mxu2 %v3737_v51  ;;  %706 = vmatpush.msra.mxu3 %v3744_v39 }
  0x82   :  { %687 = vmatpush.msra.mxu2 %v3749_v28  ;;  %707 = vmatpush.msra.mxu3 %v3758_v27 }
  0x84   :  { %688 = vmatpush.msra.mxu2 %v3763_v25  ;;  %708 = vmatpush.msra.mxu3 %v3772_v31  ;;  %v128_v39 = vpop.f32.mrf.mxu0  ;;  %v169_v28 = vpop.f32.mrf.mxu1 }
  0x88   :  { %v3903_v15 = vpop.f32.mrf.mxu2  ;;  %v3905_v48 = vpop.f32.mrf.mxu3 }
  0x89   :  { %6581 = vst [vmem:[#allocation3_spill] sm:$0xff] %v3903_v15 }
  0x8a   :  { %6582 = vst [vmem:[#allocation4_spill] sm:$0xff] %v3905_v48 }
  0x8c   :  { %v3919_v25 = vpop.f32.mrf.mxu0  ;;  %v3921_v31 = vpop.f32.mrf.mxu1 }
  0x8d   :  { %6589 = vst [vmem:[#allocation34_spill] sm:$0xff] %v3919_v25 }
  0x8e   :  { %6590 = vst [vmem:[#allocation35_spill] sm:$0xff] %v3921_v31  ;;  %v54_v31 = vld [vmem:[%s6414_s3] sm:$0xff] }
  0x90   :  { %v3907_v47 = vpop.f32.mrf.mxu2  ;;  %v3909_v46 = vpop.f32.mrf.mxu3 }
  0x91   :  { %6583 = vst [vmem:[#allocation5_spill] sm:$0xff] %v3907_v47 }
  0x92   :  { %6584 = vst [vmem:[#allocation29_spill] sm:$0xff] %v3909_v46 }
  0x94   :  { %v3923_v43 = vpop.f32.mrf.mxu0  ;;  %v3925_v47 = vpop.f32.mrf.mxu1 }
  0x95   :  { %6591 = vst [vmem:[#allocation36_spill] sm:$0xff] %v3923_v43 }
  0x96   :  { %6592 = vst [vmem:[#allocation37_spill] sm:$0xff] %v3925_v47  ;;  %v55_v47 = vld [vmem:[%s6414_s3 + $0x8] sm:$0xff] }
  0x98   :  { %v3911_v45 = vpop.f32.mrf.mxu2  ;;  %v3913_v51 = vpop.f32.mrf.mxu3 }
  0x99   :  { %6585 = vst [vmem:[#allocation30_spill] sm:$0xff] %v3911_v45 }
  0x9a   :  { %6586 = vst [vmem:[#allocation31_spill] sm:$0xff] %v3913_v51 }
  0x9c   :  { %v3931_v51 = vpop.f32.mrf.mxu0 }
  0x9d   :  { %6595 = vst [vmem:[#allocation40_spill] sm:$0xff] %v3931_v51  ;;  %v170_v51 = vadd.f32 %v169_v28, %v55_v47 }
  0xa0   :  { %v3915_v44 = vpop.f32.mrf.mxu2  ;;  %v3917_v27 = vpop.f32.mrf.mxu3 }
  0xa1   :  { %6587 = vst [vmem:[#allocation32_spill] sm:$0xff] %v3915_v44 }
  0xa2   :  { %6588 = vst [vmem:[#allocation33_spill] sm:$0xff] %v3917_v27  ;;  %v3937_v27 = vpop.f32.mrf.mxu1 }
  0xa3   :  { %6598 = vst [vmem:[#allocation43_spill] sm:$0xff] %v3937_v27 }
  0xa4   :  { %v356_v25 = vpop.f32.mrf.mxu0 }
  0xa8   :  { %v210_v15 = vpop.f32.mrf.mxu2  ;;  %v251_v48 = vpop.f32.mrf.mxu3 }
  0xb0   :  { %v3927_v46 = vpop.f32.mrf.mxu2  ;;  %v3929_v45 = vpop.f32.mrf.mxu3 }
  0xb1   :  { %6593 = vst [vmem:[#allocation38_spill] sm:$0xff] %v3927_v46 }
  0xb2   :  { %6594 = vst [vmem:[#allocation39_spill] sm:$0xff] %v3929_v45  ;;  %v129_v45 = vadd.f32 %v128_v39, %v54_v31 }
  0xb4   :  { %v419_v19 = vadd.f32 %v356_v25, %v129_v45 }
  0xb6   :  { %v2901_v40 = vmul.f32 -1.442695, %v419_v19 }
  0xb8   :  { %v3933_v29 = vpop.f32.mrf.mxu2  ;;  %v3935_v44 = vpop.f32.mrf.mxu3  ;;  %2942 = vpow2.f32 %v2901_v40 }
  0xb9   :  { %6596 = vst [vmem:[#allocation41_spill] sm:$0xff] %v3933_v29  ;;  %v376_v29 = vpop.f32.mrf.mxu1 }
  0xba   :  { %6597 = vst [vmem:[#allocation42_spill] sm:$0xff] %v3935_v44  ;;  %v420_v44 = vadd.f32 %v376_v29, %v170_v51 }
  0xbc   :  { %v2902_v16 = vmul.f32 -1.442695, %v420_v44 }
  0xbe   :  { %2944 = vpow2.f32 %v2902_v16  ;;  %v56_v16 = vld [vmem:[%s6414_s3 + $0x10] sm:$0xff] }
  0xc0   :  { %v3945_v43 = vpop.f32.mrf.mxu2  ;;  %v3947_v46 = vpop.f32.mrf.mxu3 }
  0xc1   :  { %6599 = vst [vmem:[#allocation44_spill] sm:$0xff] %v3945_v43  ;;  %v2943_v43 = vpop.eup %2942 }
  0xc2   :  { %6600 = vst [vmem:[#allocation45_spill] sm:$0xff] %v3947_v46  ;;  %v432_v31 = vadd.f32 1.0, %v2943_v43  ;;  %v57_v43 = vld [vmem:[%s6414_s3 + $0x18] sm:$0xff] }
  0xc4   :  { %v2945_v46 = vpop.eup %2944  ;;  %2946 = vrcp.f32 %v432_v31  ;;  %vm440_vm1 = vweird.f32 %v432_v31  ;;  %v444_v10 = vand.u32 2147483647, %v432_v31  ;;  %v446_v35 = vand.u32 2147483648, %v432_v31 }
  0xc5   :  { %v433_v28 = vadd.f32 1.0, %v2945_v46  ;;  %v211_v46 = vadd.f32 %v210_v15, %v56_v16 }
  0xc6   :  { %vm445_vm7 = vcmp.eq.f32.partialorder %v444_v10, 8.507059e+37 }
  0xc7   :  { %2948 = vrcp.f32 %v433_v28  ;;  %vm455_vm3 = vweird.f32 %v433_v28  ;;  %v461_v11 = vand.u32 2147483648, %v433_v28 }
  0xc8   :  { %v3949_v41 = vpop.f32.mrf.mxu2  ;;  %v3951_v27 = vpop.f32.mrf.mxu3 }
  0xc9   :  { %6601 = vst [vmem:[#allocation46_spill] sm:$0xff] %v3949_v41 }
  0xca   :  { %6602 = vst [vmem:[#allocation47_spill] sm:$0xff] %v3951_v27  ;;  %v2947_v45 = vpop.eup %2946 }
  0xcb   :  { %v436_v19 = vmul.f32 %v2947_v45, %v432_v31  ;;  %vm441_vm2 = vweird.f32 %v2947_v45 }
  0xcc   :  { %vm442_vm5 = vmor %vm440_vm1, %vm441_vm2 }
  0xcd   :  { %v2949_v40 = vpop.eup %2948  ;;  %v437_v39 = vsub.f32 1.0, %v436_v19  ;;  %v459_v19 = vand.u32 2147483647, %v433_v28 }
  0xce   :  { %v451_v29 = vmul.f32 %v2949_v40, %v433_v28  ;;  %vm456_vm4 = vweird.f32 %v2949_v40 }
  0xcf   :  { %v438_v37 = vmul.f32 %v2947_v45, %v437_v39  ;;  %vm457_vm6 = vmor %vm455_vm3, %vm456_vm4  ;;  %vm460_vm8 = vcmp.eq.f32.partialorder %v459_v19, 8.507059e+37 }
  0xd0   :  { %v3953_v14 = vpop.f32.mrf.mxu2  ;;  %v3955_v38 = vpop.f32.mrf.mxu3 }
  0xd1   :  { %6603 = vst [vmem:[#allocation48_spill] sm:$0xff] %v3953_v14  ;;  %v252_v14 = vadd.f32 %v251_v48, %v57_v43  ;;  %v439_v15 = vadd.f32 %v2947_v45, %v438_v37 }
  0xd2   :  { %6604 = vst [vmem:[#allocation49_spill] sm:$0xff] %v3955_v38 }
  0xd8   :  { %v3957_v47 = vpop.f32.mrf.mxu2  ;;  %v3959_v25 = vpop.f32.mrf.mxu3 }
  0xd9   :  { %6605 = vst [vmem:[#allocation50_spill] sm:$0xff] %v3957_v47 }
  0xda   :  { %6606 = vst [vmem:[#allocation51_spill] sm:$0xff] %v3959_v25  ;;  %v452_v25 = vsub.f32 1.0, %v451_v29 }
  0xdc   :  { %v453_v41 = vmul.f32 %v2949_v40, %v452_v25  ;;  %v443_v25 = vsel %vm442_vm5, %v2947_v45, %v439_v15 }
  0xde   :  { %v454_v16 = vadd.f32 %v2949_v40, %v453_v41 }
  0xe0   :  { %v3961_v51 = vpop.f32.mrf.mxu2  ;;  %v3963_v44 = vpop.f32.mrf.mxu3 }
  0xe1   :  { %6607 = vst [vmem:[#allocation52_spill] sm:$0xff] %v3961_v51 }
  0xe2   :  { %6608 = vst [vmem:[#allocation53_spill] sm:$0xff] %v3963_v44 }
  0xe8   :  { %v396_v47 = vpop.f32.mrf.mxu2  ;;  %v416_v38 = vpop.f32.mrf.mxu3 }
  0xe9   :  { %v421_v51 = vadd.f32 %v396_v47, %v211_v46  ;;  %v422_v44 = vadd.f32 %v416_v38, %v252_v14  ;;  %v462_v47 = vor.u32 1.1754944e-38, %v461_v11  ;;  %v447_v38 = vor.u32 1.1754944e-38, %v446_v35 }
  0xeb   :  { %v2903_v27 = vmul.f32 -1.442695, %v421_v51  ;;  %v448_v29 = vsel %vm445_vm7, %v447_v38, %v443_v25  ;;  %v6631_v38 = vld [vmem:[#allocation27_spill] sm:$0xff]  ;;  %v58_v25 = vld [vmem:[%s6414_s3 + $0x20] sm:$0xff] }
  0xed   :  { %2950 = vpow2.f32 %v2903_v27  ;;  %v458_v27 = vsel %vm457_vm6, %v2949_v40, %v454_v16 }
  0xee   :  { %2952 = vtanh.f32 %v422_v44  ;;  %v463_v43 = vsel %vm460_vm8, %v462_v47, %v458_v27  ;;  %v6630_v47 = vld [vmem:[#allocation16_spill] sm:$0xff]  ;;  %v59_v27 = vld [vmem:[%s6414_s3 + $0x28] sm:$0xff] }
  0xef   :  { %v481_v31 = vmul.f32 0.0, %v463_v43  ;;  %v6634_v43 = vld [vmem:[#allocation35_spill] sm:$0xff] }
  0xf3   :  { %v2951_v48 = vpop.eup %2950 }
  0xf4   :  { %v434_v14 = vadd.f32 1.0, %v2951_v48  ;;  %v2953_v51 = vpop.eup %2952  ;;  %v6629_v48 = vld [vmem:[#allocation15_spill] sm:$0xff] }
  0xf5   :  { %v482_v46 = vmul.f32 %v2953_v51, %v448_v29  ;;  %v6633_v51 = vld [vmem:[#allocation34_spill] sm:$0xff] }
  0xf6   :  { %2954 = vrcp.f32 %v434_v14  ;;  %v476_v11 = vand.u32 2147483648, %v434_v14  ;;  %v474_v35 = vand.u32 2147483647, %v434_v14  ;;  %vm470_vm10 = vweird.f32 %v434_v14 }
  0xf7   :  { %v3971_v37 = vadd.f32 %v482_v46, %v481_v31  ;;  %v132_v29 = vadd.f32 %v6633_v51, %v58_v25  ;;  %v173_v46 = vadd.f32 %v6634_v43, %v59_v27 }
  0xf8   :  { %v477_v40 = vor.u32 1.1754944e-38, %v476_v11  ;;  %vm475_vm12 = vcmp.eq.f32.partialorder %v474_v35, 8.507059e+37  ;;  %v60_v11 = vld [vmem:[%s6414_s3 + $0x30] sm:$0xff] }
  0xf9   :  { %2956 = vtanh.f32 %v3971_v37 }
  0xfc   :  { %v2955_v44 = vpop.eup %2954 }
  0xfd   :  { %v466_v41 = vmul.f32 %v2955_v44, %v434_v14  ;;  %vm471_vm9 = vweird.f32 %v2955_v44  ;;  %v6632_v14 = vld [vmem:[#allocation28_spill] sm:$0xff] }
  0xfe   :  { %vm472_vm11 = vmor %vm470_vm10, %vm471_vm9 }
  0xff   :  { %v467_v28 = vsub.f32 1.0, %v466_v41  ;;  %v2957_v15 = vpop.eup %2956 }
 0x101   :  { %v468_v10 = vmul.f32 %v2955_v44, %v467_v28 }
 0x103   :  { %v469_v45 = vadd.f32 %v2955_v44, %v468_v10 }
 0x105   :  { %v473_v39 = vsel %vm472_vm11, %v2955_v44, %v469_v45  ;;  %v6635_v45 = vld [vmem:[#allocation38_spill] sm:$0xff] }
 0x106   :  { %v478_v16 = vsel %vm475_vm12, %v477_v40, %v473_v39  ;;  %v214_v40 = vadd.f32 %v6635_v45, %v60_v11 }
 0x107   :  { %v485_v19 = vmul.f32 %v2957_v15, %v478_v16 }
 0x109   :  { %502 = vmatmul.f32.vlgmr.msra.gmra.mxu0 %v485_v19  ;;  %522 = vmatmul.f32.vlgmr.msra.gmra.mxu1 %v485_v19 }
 0x10a   :  { %542 = vmatmul.f32.vlgmr.msrb.gmra.mxu2 %v485_v19  ;;  %562 = vmatmul.f32.vlgmr.msrb.gmra.mxu3 %v485_v19 }
 0x10b   :  { %780 = vmatpush.msra.mxu0 %v3288_v6  ;;  %800 = vmatpush.msra.mxu1 %v3293_v7  ;;  %v6609_v6 = vld [vmem:[#allocation2_spill] sm:$0xff] }
 0x10c   :  { %820 = vmatpush.msrb.mxu2 %v3508_v42  ;;  %840 = vmatpush.msrb.mxu3 %v3558_v49  ;;  %v6610_v7 = vld [vmem:[#allocation6_spill] sm:$0xff] }
 0x10d   :  { %781 = vmatpush.msra.mxu0 %v3302_v8  ;;  %801 = vmatpush.msra.mxu1 %v3307_v9  ;;  %v6611_v8 = vld [vmem:[#allocation17_spill] sm:$0xff]  ;;  %v6612_v9 = vld [vmem:[#allocation18_spill] sm:$0xff] }
 0x10e   :  { %821 = vmatpush.msrb.mxu2 %v3563_v50  ;;  %841 = vmatpush.msrb.mxu3 %v3572_v52 }
 0x10f   :  { %782 = vmatpush.msra.mxu0 %v3320_v12  ;;  %802 = vmatpush.msra.mxu1 %v3325_v13  ;;  %v6613_v12 = vld [vmem:[#allocation7_spill] sm:$0xff]  ;;  %v6614_v13 = vld [vmem:[#allocation8_spill] sm:$0xff] }
 0x110   :  { %822 = vmatpush.msrb.mxu2 %v3577_v53  ;;  %842 = vmatpush.msrb.mxu3 %v3584_v54 }
 0x111   :  { %783 = vmatpush.msra.mxu0 %v3343_v17  ;;  %803 = vmatpush.msra.mxu1 %v3348_v18  ;;  %v6615_v17 = vld [vmem:[#allocation19_spill] sm:$0xff]  ;;  %v6616_v18 = vld [vmem:[#allocation20_spill] sm:$0xff] }
 0x112   :  { %823 = vmatpush.msrb.mxu2 %v3589_v55  ;;  %843 = vmatpush.msrb.mxu3 %v3598_v56 }
 0x113   :  { %784 = vmatpush.msra.mxu0 %v3364_v20  ;;  %804 = vmatpush.msra.mxu1 %v3369_v21  ;;  %v6617_v20 = vld [vmem:[#allocation9_spill] sm:$0xff]  ;;  %v6618_v21 = vld [vmem:[#allocation10_spill] sm:$0xff] }
 0x114   :  { %824 = vmatpush.msrb.mxu2 %v3611_v57  ;;  %844 = vmatpush.msrb.mxu3 %v3616_v58 }
 0x115   :  { %785 = vmatpush.msra.mxu0 %v3380_v22  ;;  %805 = vmatpush.msra.mxu1 %v3385_v23  ;;  %v6619_v22 = vld [vmem:[#allocation21_spill] sm:$0xff]  ;;  %v6620_v23 = vld [vmem:[#allocation22_spill] sm:$0xff] }
 0x116   :  { %825 = vmatpush.msrb.mxu2 %v3621_v59  ;;  %845 = vmatpush.msrb.mxu3 %v3628_v60 }
 0x117   :  { %786 = vmatpush.msra.mxu0 %v3392_v24  ;;  %806 = vmatpush.msra.mxu1 %v6609_v6  ;;  %v6621_v24 = vld [vmem:[#allocation11_spill] sm:$0xff] }
 0x118   :  { %826 = vmatpush.msrb.mxu2 %v3633_v61  ;;  %846 = vmatpush.msrb.mxu3 %v3642_v62 }
 0x119   :  { %787 = vmatpush.msra.mxu0 %v6578_v26  ;;  %807 = vmatpush.msra.mxu1 %v6579_v36  ;;  %v6627_v26 = vld [vmem:[#allocation25_spill] sm:$0xff]  ;;  %v6628_v36 = vld [vmem:[#allocation26_spill] sm:$0xff] }
 0x11a   :  { %827 = vmatpush.msrb.mxu2 %v3647_v63  ;;  %847 = vmatpush.msrb.mxu3 %v3656_v0 }
 0x11b   :  { %788 = vmatpush.msra.mxu0 %v3430_v30  ;;  %808 = vmatpush.msra.mxu1 %v6580_v4  ;;  %v6622_v30 = vld [vmem:[#allocation12_spill] sm:$0xff]  ;;  %v6626_v4 = vld [vmem:[#allocation14_spill] sm:$0xff] }
 0x11c   :  { %828 = vmatpush.msrb.mxu2 %v3669_v1  ;;  %848 = vmatpush.msrb.mxu3 %v3674_v2 }
 0x11d   :  { %789 = vmatpush.msra.mxu0 %v3446_v32  ;;  %809 = vmatpush.msra.mxu1 %v3451_v33  ;;  %v6623_v32 = vld [vmem:[#allocation23_spill] sm:$0xff]  ;;  %v6624_v33 = vld [vmem:[#allocation24_spill] sm:$0xff] }
 0x11e   :  { %829 = vmatpush.msrb.mxu2 %v3679_v3  ;;  %849 = vmatpush.msrb.mxu3 %v3686_v5 }
 0x11f   :  { %790 = vmatpush.msra.mxu0 %v3458_v34  ;;  %810 = vmatpush.msra.mxu1 %v6610_v7  ;;  %v6625_v34 = vld [vmem:[#allocation13_spill] sm:$0xff] }
 0x120   :  { %830 = vmatpush.msrb.mxu2 %v6611_v8  ;;  %850 = vmatpush.msrb.mxu3 %v6612_v9 }
 0x121   :  { %791 = vmatpush.msra.mxu0 %v6613_v12  ;;  %811 = vmatpush.msra.mxu1 %v6614_v13  ;;  %v61_v13 = vld [vmem:[%s6414_s3 + $0x38] sm:$0xff] }
 0x122   :  { %831 = vmatpush.msrb.mxu2 %v6615_v17  ;;  %851 = vmatpush.msrb.mxu3 %v6616_v18 }
 0x123   :  { %792 = vmatpush.msra.mxu0 %v6617_v20  ;;  %812 = vmatpush.msra.mxu1 %v6618_v21 }
 0x124   :  { %832 = vmatpush.msrb.mxu2 %v6619_v22  ;;  %852 = vmatpush.msrb.mxu3 %v6620_v23 }
 0x125   :  { %793 = vmatpush.msra.mxu0 %v6621_v24  ;;  %813 = vmatpush.msra.mxu1 %v6622_v30  ;;  %v6636_v24 = vld [vmem:[#allocation39_spill] sm:$0xff] }
 0x126   :  { %833 = vmatpush.msrb.mxu2 %v6623_v32  ;;  %853 = vmatpush.msrb.mxu3 %v6624_v33  ;;  %v255_v30 = vadd.f32 %v6636_v24, %v61_v13 }
 0x127   :  { %794 = vmatpush.msra.mxu0 %v6625_v34  ;;  %814 = vmatpush.msra.mxu1 %v6626_v4 }
 0x128   :  { %834 = vmatpush.msrb.mxu2 %v6627_v26  ;;  %854 = vmatpush.msrb.mxu3 %v6628_v36 }
 0x129   :  { %795 = vmatpush.msra.mxu0 %v6629_v48  ;;  %815 = vmatpush.msra.mxu1 %v6630_v47 }
 0x12a   :  { %835 = vmatpush.msrb.mxu2 %v6631_v38  ;;  %855 = vmatpush.msrb.mxu3 %v6632_v14 }
 0x186   :  { %v503_v31 = vpop.f32.mrf.mxu0  ;;  %v523_v44 = vpop.f32.mrf.mxu1 }
 0x187   :  { %v566_v41 = vadd.f32 %v503_v31, %v132_v29  ;;  %v567_v28 = vadd.f32 %v523_v44, %v173_v46 }
 0x189   :  { %v2904_v10 = vmul.f32 -1.442695, %v566_v41  ;;  %v2905_v35 = vmul.f32 -1.442695, %v567_v28 }
 0x18b   :  { %2958 = vpow2.f32 %v2904_v10 }
 0x18c   :  { %2960 = vpow2.f32 %v2905_v35 }
 0x18d   :  { %v543_v39 = vpop.f32.mrf.mxu2  ;;  %v563_v20 = vpop.f32.mrf.mxu3 }
 0x18e   :  { %v568_v15 = vadd.f32 %v543_v39, %v214_v40  ;;  %v569_v48 = vadd.f32 %v563_v20, %v255_v30 }
 0x190   :  { %v2906_v16 = vmul.f32 -1.442695, %v568_v15 }
 0x191   :  { %v2959_v19 = vpop.eup %2958 }
 0x192   :  { %v2961_v6 = vpop.eup %2960  ;;  %v579_v7 = vadd.f32 1.0, %v2959_v19  ;;  %2962 = vpow2.f32 %v2906_v16 }
 0x193   :  { %v580_v12 = vadd.f32 1.0, %v2961_v6 }
 0x194   :  { %2964 = vrcp.f32 %v579_v7  ;;  %v593_v43 = vand.u32 2147483648, %v579_v7  ;;  %v591_v44 = vand.u32 2147483647, %v579_v7  ;;  %vm587_vm15 = vweird.f32 %v579_v7 }
 0x195   :  { %2966 = vrcp.f32 %v580_v12  ;;  %v608_v46 = vand.u32 2147483648, %v580_v12  ;;  %v606_v28 = vand.u32 2147483647, %v580_v12  ;;  %vm602_vm0 = vweird.f32 %v580_v12 }
 0x196   :  { %v594_v45 = vor.u32 1.1754944e-38, %v593_v43  ;;  %vm592_vm3 = vcmp.eq.f32.partialorder %v591_v44, 8.507059e+37  ;;  %v4075_v43 = vld [vmem:[%s6413_s2 + $0x1c0] sm:$0xff] }
 0x197   :  { %v609_v39 = vor.u32 1.1754944e-38, %v608_v46  ;;  %vm607_vm4 = vcmp.eq.f32.partialorder %v606_v28, 8.507059e+37  ;;  %v4081_v46 = vld [vmem:[%s6413_s2 + $0x1c8] sm:$0xff] }
 0x198   :  { %v2963_v21 = vpop.eup %2962 }
 0x199   :  { %v581_v34 = vadd.f32 1.0, %v2963_v21 }
 0x19a   :  { %v2965_v4 = vpop.eup %2964 }
 0x19b   :  { %v2967_v47 = vpop.eup %2966  ;;  %v583_v25 = vmul.f32 %v2965_v4, %v579_v7  ;;  %2968 = vrcp.f32 %v581_v34  ;;  %vm588_vm13 = vweird.f32 %v2965_v4  ;;  %vm617_vm6 = vweird.f32 %v581_v34 }
 0x19c   :  { %v598_v27 = vmul.f32 %v2967_v47, %v580_v12  ;;  %2970 = vtanh.f32 %v569_v48  ;;  %vm603_vm14 = vweird.f32 %v2967_v47  ;;  %vm589_vm1 = vmor %vm587_vm15, %vm588_vm13  ;;  %v623_v48 = vand.u32 2147483648, %v581_v34 }
 0x19d   :  { %v584_v51 = vsub.f32 1.0, %v583_v25  ;;  %vm604_vm2 = vmor %vm602_vm0, %vm603_vm14 }
 0x19e   :  { %v599_v29 = vsub.f32 1.0, %v598_v27  ;;  %v624_v27 = vor.u32 1.1754944e-38, %v623_v48 }
 0x19f   :  { %v585_v31 = vmul.f32 %v2965_v4, %v584_v51 }
 0x1a0   :  { %v600_v41 = vmul.f32 %v2967_v47, %v599_v29 }
 0x1a1   :  { %v2969_v11 = vpop.eup %2968  ;;  %v586_v10 = vadd.f32 %v2965_v4, %v585_v31  ;;  %v6649_v31 = vld [vmem:[#allocation36_spill] sm:$0xff] }
 0x1a2   :  { %v613_v35 = vmul.f32 %v2969_v11, %v581_v34  ;;  %v601_v40 = vadd.f32 %v2967_v47, %v600_v41  ;;  %v2971_v16 = vpop.eup %2970  ;;  %vm618_vm5 = vweird.f32 %v2969_v11  ;;  %v6650_v41 = vld [vmem:[#allocation37_spill] sm:$0xff] }
 0x1a3   :  { %v590_v15 = vsel %vm589_vm1, %v2965_v4, %v586_v10  ;;  %v621_v4 = vand.u32 2147483647, %v581_v34  ;;  %vm619_vm7 = vmor %vm617_vm6, %vm618_vm5  ;;  %v4067_v34 = vld [vmem:[%s6413_s2 + $0x1e8] sm:$0xff] }
 0x1a4   :  { %v614_v19 = vsub.f32 1.0, %v613_v35  ;;  %v595_v6 = vsel %vm592_vm3, %v594_v45, %v590_v15  ;;  %v605_v13 = vsel %vm604_vm2, %v2967_v47, %v601_v40 }
 0x1a5   :  { %v610_v20 = vsel %vm607_vm4, %v609_v39, %v605_v13  ;;  %v629_v21 = vmul.f32 %v2971_v16, %v595_v6  ;;  %vm622_vm8 = vcmp.eq.f32.partialorder %v621_v4, 8.507059e+37  ;;  %v6651_v39 = vld [vmem:[#allocation41_spill] sm:$0xff]  ;;  %v6652_v4 = vld [vmem:[#allocation42_spill] sm:$0xff] }
 0x1a6   :  { %v628_v24 = vmul.f32 %v610_v20, %v3971_v37  ;;  %v615_v30 = vmul.f32 %v2969_v11, %v614_v19  ;;  %v4061_v37 = vld [vmem:[%s6413_s2 + $0x1e0] sm:$0xff] }
 0x1a8   :  { %v4055_v7 = vadd.f32 %v629_v21, %v628_v24  ;;  %v616_v12 = vadd.f32 %v2969_v11, %v615_v30  ;;  %v65_v30 = vld [vmem:[%s6414_s3 + $0x58] sm:$0xff] }
 0x1aa   :  { %2972 = vtanh.f32 %v4055_v7  ;;  %v620_v25 = vsel %vm619_vm7, %v2969_v11, %v616_v12 }
 0x1ab   :  { %v625_v51 = vsel %vm622_vm8, %v624_v27, %v620_v25  ;;  %v258_v25 = vadd.f32 %v6652_v4, %v65_v30 }
 0x1b0   :  { %v2973_v47 = vpop.eup %2972 }
 0x1b1   :  { %v632_v29 = vmul.f32 %v2973_v47, %v625_v51 }
 0x1b3   :  { %649 = vmatmul.f32.vlgmr.msrb.gmra.mxu0 %v632_v29  ;;  %669 = vmatmul.f32.vlgmr.msrb.gmra.mxu1 %v632_v29 }
 0x1b4   :  { %689 = vmatmul.f32.vlgmr.msra.gmra.mxu2 %v632_v29  ;;  %709 = vmatmul.f32.vlgmr.msra.gmra.mxu3 %v632_v29 }
 0x1b5   :  { %927 = vmatpush.msrb.mxu0 %v4061_v37  ;;  %947 = vmatpush.msrb.mxu1 %v4067_v34 }
 0x1b6   :  { %967 = vmatpush.msra.mxu2 %v3508_v42  ;;  %987 = vmatpush.msra.mxu3 %v3558_v49  ;;  %v4089_v42 = vld [vmem:[%s6413_s2 + $0x1a0] sm:$0xff]  ;;  %v4095_v49 = vld [vmem:[%s6413_s2 + $0x1a8] sm:$0xff] }
 0x1b7   :  { %928 = vmatpush.msrb.mxu0 %v4075_v43  ;;  %948 = vmatpush.msrb.mxu1 %v4081_v46 }
 0x1b8   :  { %968 = vmatpush.msra.mxu2 %v3563_v50  ;;  %988 = vmatpush.msra.mxu3 %v3572_v52  ;;  %v4103_v50 = vld [vmem:[%s6413_s2 + $0x180] sm:$0xff]  ;;  %v4109_v52 = vld [vmem:[%s6413_s2 + $0x188] sm:$0xff] }
 0x1b9   :  { %929 = vmatpush.msrb.mxu0 %v4089_v42  ;;  %949 = vmatpush.msrb.mxu1 %v4095_v49 }
 0x1ba   :  { %969 = vmatpush.msra.mxu2 %v3577_v53  ;;  %989 = vmatpush.msra.mxu3 %v3584_v54  ;;  %v4117_v53 = vld [vmem:[%s6413_s2 + $0x160] sm:$0xff]  ;;  %v4123_v54 = vld [vmem:[%s6413_s2 + $0x168] sm:$0xff] }
 0x1bb   :  { %930 = vmatpush.msrb.mxu0 %v4103_v50  ;;  %950 = vmatpush.msrb.mxu1 %v4109_v52 }
 0x1bc   :  { %970 = vmatpush.msra.mxu2 %v3589_v55  ;;  %990 = vmatpush.msra.mxu3 %v3598_v56  ;;  %v4131_v55 = vld [vmem:[%s6413_s2 + $0x140] sm:$0xff]  ;;  %v4137_v56 = vld [vmem:[%s6413_s2 + $0x148] sm:$0xff] }
 0x1bd   :  { %931 = vmatpush.msrb.mxu0 %v4117_v53  ;;  %951 = vmatpush.msrb.mxu1 %v4123_v54 }
 0x1be   :  { %971 = vmatpush.msra.mxu2 %v3611_v57  ;;  %991 = vmatpush.msra.mxu3 %v3616_v58  ;;  %v4145_v57 = vld [vmem:[%s6413_s2 + $0x120] sm:$0xff]  ;;  %v4151_v58 = vld [vmem:[%s6413_s2 + $0x128] sm:$0xff] }
 0x1bf   :  { %932 = vmatpush.msrb.mxu0 %v4131_v55  ;;  %952 = vmatpush.msrb.mxu1 %v4137_v56 }
 0x1c0   :  { %972 = vmatpush.msra.mxu2 %v3621_v59  ;;  %992 = vmatpush.msra.mxu3 %v3628_v60  ;;  %v4159_v59 = vld [vmem:[%s6413_s2 + $0x100] sm:$0xff]  ;;  %v4165_v60 = vld [vmem:[%s6413_s2 + $0x108] sm:$0xff] }
 0x1c1   :  { %933 = vmatpush.msrb.mxu0 %v4145_v57  ;;  %953 = vmatpush.msrb.mxu1 %v4151_v58 }
 0x1c2   :  { %973 = vmatpush.msra.mxu2 %v3633_v61  ;;  %993 = vmatpush.msra.mxu3 %v3642_v62  ;;  %v4173_v61 = vld [vmem:[%s6413_s2 + $0xe0] sm:$0xff]  ;;  %v4179_v62 = vld [vmem:[%s6413_s2 + $0xe8] sm:$0xff] }
 0x1c3   :  { %934 = vmatpush.msrb.mxu0 %v4159_v59  ;;  %954 = vmatpush.msrb.mxu1 %v4165_v60 }
 0x1c4   :  { %974 = vmatpush.msra.mxu2 %v3647_v63  ;;  %994 = vmatpush.msra.mxu3 %v3656_v0  ;;  %v4187_v63 = vld [vmem:[%s6413_s2 + $0xc0] sm:$0xff]  ;;  %v4193_v0 = vld [vmem:[%s6413_s2 + $0xc8] sm:$0xff] }
 0x1c5   :  { %935 = vmatpush.msrb.mxu0 %v4173_v61  ;;  %955 = vmatpush.msrb.mxu1 %v4179_v62 }
 0x1c6   :  { %975 = vmatpush.msra.mxu2 %v3669_v1  ;;  %995 = vmatpush.msra.mxu3 %v3674_v2  ;;  %v4201_v1 = vld [vmem:[%s6413_s2 + $0xa0] sm:$0xff]  ;;  %v4207_v2 = vld [vmem:[%s6413_s2 + $0xa8] sm:$0xff] }
 0x1c7   :  { %936 = vmatpush.msrb.mxu0 %v4187_v63  ;;  %956 = vmatpush.msrb.mxu1 %v4193_v0  ;;  %6637 = vst [vmem:[#allocation2_spill] sm:$0xff] %v4201_v1 }
 0x1c8   :  { %976 = vmatpush.msra.mxu2 %v3679_v3  ;;  %996 = vmatpush.msra.mxu3 %v3686_v5  ;;  %6638 = vst [vmem:[#allocation6_spill] sm:$0xff] %v4207_v2  ;;  %v4215_v3 = vld [vmem:[%s6413_s2 + $0x80] sm:$0xff]  ;;  %v4221_v5 = vld [vmem:[%s6413_s2 + $0x88] sm:$0xff] }
 0x1c9   :  { %937 = vmatpush.msrb.mxu0 %v4201_v1  ;;  %957 = vmatpush.msrb.mxu1 %v4207_v2  ;;  %6639 = vst [vmem:[#allocation17_spill] sm:$0xff] %v4215_v3 }
 0x1ca   :  { %977 = vmatpush.msra.mxu2 %v6611_v8  ;;  %997 = vmatpush.msra.mxu3 %v6612_v9  ;;  %6640 = vst [vmem:[#allocation18_spill] sm:$0xff] %v4221_v5  ;;  %v4229_v8 = vld [vmem:[%s6413_s2 + $0x60] sm:$0xff]  ;;  %v4235_v9 = vld [vmem:[%s6413_s2 + $0x68] sm:$0xff] }
 0x1cb   :  { %938 = vmatpush.msrb.mxu0 %v4215_v3  ;;  %958 = vmatpush.msrb.mxu1 %v4221_v5  ;;  %6641 = vst [vmem:[#allocation7_spill] sm:$0xff] %v4229_v8 }
 0x1cc   :  { %978 = vmatpush.msra.mxu2 %v6615_v17  ;;  %998 = vmatpush.msra.mxu3 %v6616_v18  ;;  %6642 = vst [vmem:[#allocation8_spill] sm:$0xff] %v4235_v9  ;;  %v4243_v17 = vld [vmem:[%s6413_s2 + $0x40] sm:$0xff]  ;;  %v4249_v18 = vld [vmem:[%s6413_s2 + $0x48] sm:$0xff] }
 0x1cd   :  { %939 = vmatpush.msrb.mxu0 %v4229_v8  ;;  %959 = vmatpush.msrb.mxu1 %v4235_v9  ;;  %6643 = vst [vmem:[#allocation19_spill] sm:$0xff] %v4243_v17 }
 0x1ce   :  { %979 = vmatpush.msra.mxu2 %v6619_v22  ;;  %999 = vmatpush.msra.mxu3 %v6620_v23  ;;  %6644 = vst [vmem:[#allocation20_spill] sm:$0xff] %v4249_v18  ;;  %v4257_v22 = vld [vmem:[%s6413_s2 + $0x20] sm:$0xff]  ;;  %v4263_v23 = vld [vmem:[%s6413_s2 + $0x28] sm:$0xff] }
 0x1cf   :  { %940 = vmatpush.msrb.mxu0 %v4243_v17  ;;  %960 = vmatpush.msrb.mxu1 %v4249_v18  ;;  %6645 = vst [vmem:[#allocation9_spill] sm:$0xff] %v4257_v22 }
 0x1d0   :  { %980 = vmatpush.msra.mxu2 %v6623_v32  ;;  %1000 = vmatpush.msra.mxu3 %v6624_v33  ;;  %6646 = vst [vmem:[#allocation10_spill] sm:$0xff] %v4263_v23  ;;  %v4271_v32 = vld [vmem:[%s6413_s2] sm:$0xff]  ;;  %v4277_v33 = vld [vmem:[%s6413_s2 + $0x8] sm:$0xff] }
 0x1d1   :  { %941 = vmatpush.msrb.mxu0 %v4257_v22  ;;  %961 = vmatpush.msrb.mxu1 %v4263_v23  ;;  %6647 = vst [vmem:[#allocation21_spill] sm:$0xff] %v4271_v32 }
 0x1d2   :  { %981 = vmatpush.msra.mxu2 %v6627_v26  ;;  %1001 = vmatpush.msra.mxu3 %v6628_v36  ;;  %6648 = vst [vmem:[#allocation22_spill] sm:$0xff] %v4277_v33  ;;  %v62_v26 = vld [vmem:[%s6414_s3 + $0x40] sm:$0xff]  ;;  %v63_v36 = vld [vmem:[%s6414_s3 + $0x48] sm:$0xff] }
 0x1d3   :  { %942 = vmatpush.msrb.mxu0 %v4271_v32  ;;  %962 = vmatpush.msrb.mxu1 %v4277_v33  ;;  %v135_v44 = vadd.f32 %v6649_v31, %v62_v26  ;;  %v176_v28 = vadd.f32 %v6650_v41, %v63_v36 }
 0x1d4   :  { %982 = vmatpush.msra.mxu2 %v6631_v38  ;;  %1002 = vmatpush.msra.mxu3 %v6632_v14  ;;  %v64_v38 = vld [vmem:[%s6414_s3 + $0x50] sm:$0xff] }
 0x1d5   :  { %v217_v15 = vadd.f32 %v6651_v39, %v64_v38 }
 0x230   :  { %v650_v11 = vpop.f32.mrf.mxu0  ;;  %v670_v10 = vpop.f32.mrf.mxu1 }
 0x231   :  { %v713_v35 = vadd.f32 %v650_v11, %v135_v44  ;;  %v714_v45 = vadd.f32 %v670_v10, %v176_v28 }
 0x233   :  { %v2907_v14 = vmul.f32 -1.442695, %v713_v35  ;;  %v2908_v40 = vmul.f32 -1.442695, %v714_v45 }
 0x235   :  { %2974 = vpow2.f32 %v2907_v14 }
 0x236   :  { %2976 = vpow2.f32 %v2908_v40 }
 0x237   :  { %v690_v16 = vpop.f32.mrf.mxu2  ;;  %v710_v12 = vpop.f32.mrf.mxu3 }
 0x238   :  { %v715_v19 = vadd.f32 %v690_v16, %v217_v15  ;;  %v716_v51 = vadd.f32 %v710_v12, %v258_v25 }
 0x23a   :  { %v2909_v6 = vmul.f32 -1.442695, %v715_v19 }
 0x23b   :  { %v2975_v13 = vpop.eup %2974 }
 0x23c   :  { %v2977_v20 = vpop.eup %2976  ;;  %v726_v21 = vadd.f32 1.0, %v2975_v13  ;;  %2978 = vpow2.f32 %v2909_v6 }
 0x23d   :  { %v727_v24 = vadd.f32 1.0, %v2977_v20 }
 0x23e   :  { %2980 = vrcp.f32 %v726_v21  ;;  %v740_v41 = vand.u32 2147483648, %v726_v21  ;;  %v738_v10 = vand.u32 2147483647, %v726_v21  ;;  %vm734_vm11 = vweird.f32 %v726_v21 }
 0x23f   :  { %2982 = vrcp.f32 %v727_v24  ;;  %v755_v28 = vand.u32 2147483648, %v727_v24  ;;  %v753_v45 = vand.u32 2147483647, %v727_v24  ;;  %vm749_vm12 = vweird.f32 %v727_v24 }
 0x240   :  { %v741_v39 = vor.u32 1.1754944e-38, %v740_v41  ;;  %vm739_vm15 = vcmp.eq.f32.partialorder %v738_v10, 8.507059e+37  ;;  %v4321_v41 = vld [vmem:[%s6413_s2 + $0x1d0] sm:$0xff]  ;;  %v4341_v10 = vld [vmem:[%s6413_s2 + $0x1b8] sm:$0xff] }
 0x241   :  { %v756_v16 = vor.u32 1.1754944e-38, %v755_v28  ;;  %vm754_vm0 = vcmp.eq.f32.partialorder %v753_v45, 8.507059e+37  ;;  %v4327_v28 = vld [vmem:[%s6413_s2 + $0x1d8] sm:$0xff] }
 0x242   :  { %v2979_v48 = vpop.eup %2978  ;;  %v4355_v45 = vld [vmem:[%s6413_s2 + $0x198] sm:$0xff] }
 0x243   :  { %v728_v27 = vadd.f32 1.0, %v2979_v48 }
 0x244   :  { %v2981_v47 = vpop.eup %2980 }
 0x245   :  { %v2983_v29 = vpop.eup %2982  ;;  %v730_v26 = vmul.f32 %v2981_v47, %v726_v21  ;;  %2984 = vrcp.f32 %v728_v27  ;;  %vm735_vm9 = vweird.f32 %v2981_v47  ;;  %vm764_vm2 = vweird.f32 %v728_v27 }
 0x246   :  { %v745_v36 = vmul.f32 %v2983_v29, %v727_v24  ;;  %2986 = vtanh.f32 %v716_v51  ;;  %vm750_vm10 = vweird.f32 %v2983_v29  ;;  %vm736_vm13 = vmor %vm734_vm11, %vm735_vm9  ;;  %v770_v51 = vand.u32 2147483648, %v728_v27 }
 0x247   :  { %v731_v31 = vsub.f32 1.0, %v730_v26  ;;  %vm751_vm14 = vmor %vm749_vm12, %vm750_vm10 }
 0x248   :  { %v746_v44 = vsub.f32 1.0, %v745_v36  ;;  %v771_v36 = vor.u32 1.1754944e-38, %v770_v51  ;;  %v4475_v51 = vld [vmem:[%s6413_s2 + $0x70] sm:$0xff] }
 0x249   :  { %v732_v11 = vmul.f32 %v2981_v47, %v731_v31  ;;  %6659 = vst [vmem:[#allocation25_spill] sm:$0xff] %v4475_v51 }
 0x24a   :  { %v747_v35 = vmul.f32 %v2983_v29, %v746_v44 }
 0x24b   :  { %v2985_v38 = vpop.eup %2984  ;;  %v733_v14 = vadd.f32 %v2981_v47, %v732_v11  ;;  %v4335_v11 = vld [vmem:[%s6413_s2 + $0x1b0] sm:$0xff] }
 0x24c   :  { %v760_v40 = vmul.f32 %v2985_v38, %v728_v27  ;;  %v748_v15 = vadd.f32 %v2983_v29, %v747_v35  ;;  %v2987_v6 = vpop.eup %2986  ;;  %vm765_vm1 = vweird.f32 %v2985_v38  ;;  %v4349_v35 = vld [vmem:[%s6413_s2 + $0x190] sm:$0xff] }
 0x24d   :  { %v737_v19 = vsel %vm736_vm13, %v2981_v47, %v733_v14  ;;  %v768_v47 = vand.u32 2147483647, %v728_v27  ;;  %vm766_vm3 = vmor %vm764_vm2, %vm765_vm1  ;;  %v4313_v27 = vld [vmem:[%s6413_s2 + $0x1f8] sm:$0xff] }
 0x24e   :  { %v761_v13 = vsub.f32 1.0, %v760_v40  ;;  %v742_v20 = vsel %vm739_vm15, %v741_v39, %v737_v19  ;;  %v752_v30 = vsel %vm751_vm14, %v2983_v29, %v748_v15  ;;  %v4369_v14 = vld [vmem:[%s6413_s2 + $0x178] sm:$0xff]  ;;  %v4377_v40 = vld [vmem:[%s6413_s2 + $0x150] sm:$0xff] }
 0x24f   :  { %v757_v12 = vsel %vm754_vm0, %v756_v16, %v752_v30  ;;  %v776_v48 = vmul.f32 %v2987_v6, %v742_v20  ;;  %vm769_vm4 = vcmp.eq.f32.partialorder %v768_v47, 8.507059e+37  ;;  %v4383_v39 = vld [vmem:[%s6413_s2 + $0x158] sm:$0xff]  ;;  %v4391_v15 = vld [vmem:[%s6413_s2 + $0x130] sm:$0xff] }
 0x250   :  { %v775_v4 = vmul.f32 %v757_v12, %v4055_v7  ;;  %v762_v25 = vmul.f32 %v2985_v38, %v761_v13  ;;  %v4307_v7 = vld [vmem:[%s6413_s2 + $0x1f0] sm:$0xff]  ;;  %v4397_v16 = vld [vmem:[%s6413_s2 + $0x138] sm:$0xff] }
 0x251   :  { %v4405_v19 = vld [vmem:[%s6413_s2 + $0x110] sm:$0xff]  ;;  %v4411_v6 = vld [vmem:[%s6413_s2 + $0x118] sm:$0xff] }
 0x252   :  { %v4299_v21 = vadd.f32 %v776_v48, %v775_v4  ;;  %v763_v24 = vadd.f32 %v2985_v38, %v762_v25  ;;  %v4419_v13 = vld [vmem:[%s6413_s2 + $0xf0] sm:$0xff]  ;;  %v4425_v20 = vld [vmem:[%s6413_s2 + $0xf8] sm:$0xff] }
 0x253   :  { %v4433_v30 = vld [vmem:[%s6413_s2 + $0xd0] sm:$0xff]  ;;  %v4439_v12 = vld [vmem:[%s6413_s2 + $0xd8] sm:$0xff] }
 0x254   :  { %2988 = vtanh.f32 %v4299_v21  ;;  %v767_v26 = vsel %vm766_vm3, %v2985_v38, %v763_v24  ;;  %v4363_v38 = vld [vmem:[%s6413_s2 + $0x170] sm:$0xff]  ;;  %6653 = vst [vmem:[#allocation11_spill] sm:$0xff] %v4433_v30  ;;  %v4453_v4 = vld [vmem:[%s6413_s2 + $0xb8] sm:$0xff] }
 0x255   :  { %v772_v31 = vsel %vm769_vm4, %v771_v36, %v767_v26  ;;  %6654 = vst [vmem:[#allocation12_spill] sm:$0xff] %v4439_v12  ;;  %v4447_v48 = vld [vmem:[%s6413_s2 + $0xb0] sm:$0xff]  ;;  %v4467_v24 = vld [vmem:[%s6413_s2 + $0x98] sm:$0xff] }
 0x256   :  { %6655 = vst [vmem:[#allocation23_spill] sm:$0xff] %v4447_v48  ;;  %v4461_v25 = vld [vmem:[%s6413_s2 + $0x90] sm:$0xff]  ;;  %v4481_v47 = vld [vmem:[%s6413_s2 + $0x78] sm:$0xff] }
 0x257   :  { %6656 = vst [vmem:[#allocation24_spill] sm:$0xff] %v4453_v4  ;;  %v4489_v26 = vld [vmem:[%s6413_s2 + $0x50] sm:$0xff]  ;;  %v4495_v36 = vld [vmem:[%s6413_s2 + $0x58] sm:$0xff] }
 0x258   :  { %6657 = vst [vmem:[#allocation13_spill] sm:$0xff] %v4461_v25 }
 0x259   :  { %6658 = vst [vmem:[#allocation14_spill] sm:$0xff] %v4467_v24 }
 0x25a   :  { %v2989_v29 = vpop.eup %2988  ;;  %6660 = vst [vmem:[#allocation26_spill] sm:$0xff] %v4481_v47 }
 0x25b   :  { %v779_v44 = vmul.f32 %v2989_v29, %v772_v31  ;;  %6661 = vst [vmem:[#allocation15_spill] sm:$0xff] %v4489_v26  ;;  %v4503_v29 = vld [vmem:[%s6413_s2 + $0x30] sm:$0xff]  ;;  %v4509_v31 = vld [vmem:[%s6413_s2 + $0x38] sm:$0xff] }
 0x25c   :  { %6662 = vst [vmem:[#allocation16_spill] sm:$0xff] %v4495_v36 }
 0x25d   :  { %796 = vmatmul.f32.vlgmr.msra.gmra.mxu0 %v779_v44  ;;  %816 = vmatmul.f32.vlgmr.msra.gmra.mxu1 %v779_v44  ;;  %6663 = vst [vmem:[#allocation27_spill] sm:$0xff] %v4503_v29 }
 0x25e   :  { %836 = vmatmul.f32.vlgmr.msrb.gmra.mxu2 %v779_v44  ;;  %856 = vmatmul.f32.vlgmr.msrb.gmra.mxu3 %v779_v44  ;;  %6664 = vst [vmem:[#allocation28_spill] sm:$0xff] %v4509_v31  ;;  %v4517_v44 = vld [vmem:[%s6413_s2 + $0x10] sm:$0xff] }
 0x25f   :  { %1074 = vmatpush.msra.mxu0 %v4061_v37  ;;  %1094 = vmatpush.msra.mxu1 %v4067_v34  ;;  %6665 = vst [vmem:[#allocation34_spill] sm:$0xff] %v4517_v44 }
 0x260   :  { %1114 = vmatpush.msrb.mxu2 %v4307_v7  ;;  %1134 = vmatpush.msrb.mxu3 %v4313_v27 }
 0x261   :  { %1075 = vmatpush.msra.mxu0 %v4075_v43  ;;  %1095 = vmatpush.msra.mxu1 %v4081_v46 }
 0x262   :  { %1115 = vmatpush.msrb.mxu2 %v4321_v41  ;;  %1135 = vmatpush.msrb.mxu3 %v4327_v28 }
 0x263   :  { %1076 = vmatpush.msra.mxu0 %v4089_v42  ;;  %1096 = vmatpush.msra.mxu1 %v4095_v49 }
 0x264   :  { %1116 = vmatpush.msrb.mxu2 %v4335_v11  ;;  %1136 = vmatpush.msrb.mxu3 %v4341_v10 }
 0x265   :  { %1077 = vmatpush.msra.mxu0 %v4103_v50  ;;  %1097 = vmatpush.msra.mxu1 %v4109_v52 }
 0x266   :  { %1117 = vmatpush.msrb.mxu2 %v4349_v35  ;;  %1137 = vmatpush.msrb.mxu3 %v4355_v45 }
 0x267   :  { %1078 = vmatpush.msra.mxu0 %v4117_v53  ;;  %1098 = vmatpush.msra.mxu1 %v4123_v54 }
 0x268   :  { %1118 = vmatpush.msrb.mxu2 %v4363_v38  ;;  %1138 = vmatpush.msrb.mxu3 %v4369_v14 }
 0x269   :  { %1079 = vmatpush.msra.mxu0 %v4131_v55  ;;  %1099 = vmatpush.msra.mxu1 %v4137_v56 }
 0x26a   :  { %1119 = vmatpush.msrb.mxu2 %v4377_v40  ;;  %1139 = vmatpush.msrb.mxu3 %v4383_v39 }
 0x26b   :  { %1080 = vmatpush.msra.mxu0 %v4145_v57  ;;  %1100 = vmatpush.msra.mxu1 %v4151_v58 }
 0x26c   :  { %1120 = vmatpush.msrb.mxu2 %v4391_v15  ;;  %1140 = vmatpush.msrb.mxu3 %v4397_v16 }
 0x26d   :  { %1081 = vmatpush.msra.mxu0 %v4159_v59  ;;  %1101 = vmatpush.msra.mxu1 %v4165_v60 }
 0x26e   :  { %1121 = vmatpush.msrb.mxu2 %v4405_v19  ;;  %1141 = vmatpush.msrb.mxu3 %v4411_v6 }
 0x26f   :  { %1082 = vmatpush.msra.mxu0 %v4173_v61  ;;  %1102 = vmatpush.msra.mxu1 %v4179_v62 }
 0x270   :  { %1122 = vmatpush.msrb.mxu2 %v4419_v13  ;;  %1142 = vmatpush.msrb.mxu3 %v4425_v20 }
 0x271   :  { %1083 = vmatpush.msra.mxu0 %v4187_v63  ;;  %1103 = vmatpush.msra.mxu1 %v4193_v0 }
 0x272   :  { %1123 = vmatpush.msrb.mxu2 %v4433_v30  ;;  %1143 = vmatpush.msrb.mxu3 %v4439_v12 }
 0x273   :  { %1084 = vmatpush.msra.mxu0 %v4201_v1  ;;  %1104 = vmatpush.msra.mxu1 %v4207_v2 }
 0x274   :  { %1124 = vmatpush.msrb.mxu2 %v4447_v48  ;;  %1144 = vmatpush.msrb.mxu3 %v4453_v4 }
 0x275   :  { %1085 = vmatpush.msra.mxu0 %v4215_v3  ;;  %1105 = vmatpush.msra.mxu1 %v4221_v5 }
 0x276   :  { %1125 = vmatpush.msrb.mxu2 %v4461_v25  ;;  %1145 = vmatpush.msrb.mxu3 %v4467_v24 }
 0x277   :  { %1086 = vmatpush.msra.mxu0 %v4229_v8  ;;  %1106 = vmatpush.msra.mxu1 %v4235_v9  ;;  %v6669_v9 = vld [vmem:[#allocation44_spill] sm:$0xff] }
 0x278   :  { %1126 = vmatpush.msrb.mxu2 %v4475_v51  ;;  %1146 = vmatpush.msrb.mxu3 %v4481_v47 }
 0x279   :  { %1087 = vmatpush.msra.mxu0 %v4243_v17  ;;  %1107 = vmatpush.msra.mxu1 %v4249_v18 }
 0x27a   :  { %1127 = vmatpush.msrb.mxu2 %v4489_v26  ;;  %1147 = vmatpush.msrb.mxu3 %v4495_v36 }
 0x27b   :  { %1088 = vmatpush.msra.mxu0 %v4257_v22  ;;  %1108 = vmatpush.msra.mxu1 %v4263_v23  ;;  %v6668_v22 = vld [vmem:[#allocation43_spill] sm:$0xff] }
 0x27c   :  { %1128 = vmatpush.msrb.mxu2 %v4503_v29  ;;  %1148 = vmatpush.msrb.mxu3 %v4509_v31  ;;  %v4523_v29 = vld [vmem:[%s6413_s2 + $0x18] sm:$0xff]  ;;  %v6667_v31 = vld [vmem:[#allocation40_spill] sm:$0xff] }
 0x27d   :  { %1089 = vmatpush.msra.mxu0 %v4271_v32  ;;  %1109 = vmatpush.msra.mxu1 %v4277_v33  ;;  %6666 = vst [vmem:[#allocation35_spill] sm:$0xff] %v4523_v29  ;;  %v66_v32 = vld [vmem:[%s6414_s3 + $0x60] sm:$0xff]  ;;  %v67_v33 = vld [vmem:[%s6414_s3 + $0x68] sm:$0xff] }
 0x27e   :  { %1129 = vmatpush.msrb.mxu2 %v4517_v44  ;;  %1149 = vmatpush.msrb.mxu3 %v4523_v29  ;;  %v138_v23 = vadd.f32 %v6667_v31, %v66_v32  ;;  %v179_v36 = vadd.f32 %v6668_v22, %v67_v33  ;;  %v68_v29 = vld [vmem:[%s6414_s3 + $0x70] sm:$0xff] }
 0x27f   :  { %v220_v8 = vadd.f32 %v6669_v9, %v68_v29 }
 0x2da   :  { %v797_v44 = vpop.f32.mrf.mxu0  ;;  %v817_v26 = vpop.f32.mrf.mxu1 }
 0x2db   :  { %v860_v18 = vadd.f32 %v797_v44, %v138_v23  ;;  %v861_v17 = vadd.f32 %v817_v26, %v179_v36  ;;  %v69_v23 = vld [vmem:[%s6414_s3 + $0x78] sm:$0xff] }
 0x2dd   :  { %v2910_v47 = vmul.f32 -1.442695, %v860_v18  ;;  %v2911_v51 = vmul.f32 -1.442695, %v861_v17 }
 0x2df   :  { %2990 = vpow2.f32 %v2910_v47  ;;  %v6670_v47 = vld [vmem:[#allocation45_spill] sm:$0xff] }
 0x2e0   :  { %2992 = vpow2.f32 %v2911_v51  ;;  %v261_v26 = vadd.f32 %v6670_v47, %v69_v23 }
 0x2e1   :  { %v837_v24 = vpop.f32.mrf.mxu2  ;;  %v857_v18 = vpop.f32.mrf.mxu3 }
 0x2e2   :  { %v862_v25 = vadd.f32 %v837_v24, %v220_v8  ;;  %v863_v36 = vadd.f32 %v857_v18, %v261_v26 }
 0x2e4   :  { %v2912_v5 = vmul.f32 -1.442695, %v862_v25 }
 0x2e5   :  { %v2991_v32 = vpop.eup %2990 }
 0x2e6   :  { %v2993_v31 = vpop.eup %2992  ;;  %v873_v22 = vadd.f32 1.0, %v2991_v32  ;;  %2994 = vpow2.f32 %v2912_v5 }
 0x2e7   :  { %v874_v33 = vadd.f32 1.0, %v2993_v31 }
 0x2e8   :  { %2996 = vrcp.f32 %v873_v22  ;;  %v887_v44 = vand.u32 2147483648, %v873_v22  ;;  %v885_v3 = vand.u32 2147483647, %v873_v22  ;;  %vm881_vm7 = vweird.f32 %v873_v22 }
 0x2e9   :  { %2998 = vrcp.f32 %v874_v33  ;;  %v902_v32 = vand.u32 2147483648, %v874_v33  ;;  %v900_v48 = vand.u32 2147483647, %v874_v33  ;;  %vm896_vm8 = vweird.f32 %v874_v33 }
 0x2ea   :  { %vm886_vm11 = vcmp.eq.f32.partialorder %v885_v3, 8.507059e+37 }
 0x2eb   :  { %v903_v26 = vor.u32 1.1754944e-38, %v902_v32  ;;  %vm901_vm12 = vcmp.eq.f32.partialorder %v900_v48, 8.507059e+37  ;;  %v6676_v32 = vld [vmem:[#allocation24_spill] sm:$0xff] }
 0x2ec   :  { %v2995_v17 = vpop.eup %2994 }
 0x2ed   :  { %v875_v9 = vadd.f32 1.0, %v2995_v17  ;;  %v888_v17 = vor.u32 1.1754944e-38, %v887_v44 }
 0x2ee   :  { %v2997_v51 = vpop.eup %2996 }
 0x2ef   :  { %v2999_v8 = vpop.eup %2998  ;;  %v877_v25 = vmul.f32 %v2997_v51, %v873_v22  ;;  %3000 = vrcp.f32 %v875_v9  ;;  %vm882_vm5 = vweird.f32 %v2997_v51  ;;  %vm911_vm14 = vweird.f32 %v875_v9 }
 0x2f0   :  { %v892_v24 = vmul.f32 %v2999_v8, %v874_v33  ;;  %3002 = vtanh.f32 %v863_v36  ;;  %vm897_vm6 = vweird.f32 %v2999_v8  ;;  %vm883_vm9 = vmor %vm881_vm7, %vm882_vm5 }
 0x2f1   :  { %v878_v29 = vsub.f32 1.0, %v877_v25  ;;  %vm898_vm10 = vmor %vm896_vm8, %vm897_vm6 }
 0x2f2   :  { %v893_v5 = vsub.f32 1.0, %v892_v24 }
 0x2f3   :  { %v879_v31 = vmul.f32 %v2997_v51, %v878_v29 }
 0x2f4   :  { %v894_v4 = vmul.f32 %v2999_v8, %v893_v5 }
 0x2f5   :  { %v3001_v2 = vpop.eup %3000  ;;  %v880_v23 = vadd.f32 %v2997_v51, %v879_v31 }
 0x2f6   :  { %v907_v18 = vmul.f32 %v3001_v2, %v875_v9  ;;  %v895_v47 = vadd.f32 %v2999_v8, %v894_v4  ;;  %v3003_v36 = vpop.eup %3002  ;;  %vm912_vm13 = vweird.f32 %v3001_v2  ;;  %v917_v4 = vand.u32 2147483648, %v875_v9 }
 0x2f7   :  { %v884_v25 = vsel %vm883_vm9, %v2997_v51, %v880_v23  ;;  %v915_v51 = vand.u32 2147483647, %v875_v9  ;;  %vm913_vm15 = vmor %vm911_vm14, %vm912_vm13  ;;  %v6675_v9 = vld [vmem:[#allocation23_spill] sm:$0xff]  ;;  %v6677_v23 = vld [vmem:[#allocation17_spill] sm:$0xff] }
 0x2f8   :  { %v908_v24 = vsub.f32 1.0, %v907_v18  ;;  %v889_v29 = vsel %vm886_vm11, %v888_v17, %v884_v25  ;;  %v899_v1 = vsel %vm898_vm10, %v2999_v8, %v895_v47  ;;  %v918_v44 = vor.u32 1.1754944e-38, %v917_v4  ;;  %v6678_v18 = vld [vmem:[#allocation18_spill] sm:$0xff]  ;;  %v6679_v17 = vld [vmem:[#allocation13_spill] sm:$0xff]  ;;  %v6682_v25 = vld [vmem:[#allocation8_spill] sm:$0xff] }
 0x2f9   :  { %v904_v5 = vsel %vm901_vm12, %v903_v26, %v899_v1  ;;  %v923_v12 = vmul.f32 %v3003_v36, %v889_v29  ;;  %vm916_vm0 = vcmp.eq.f32.partialorder %v915_v51, 8.507059e+37  ;;  %v6680_v47 = vld [vmem:[#allocation14_spill] sm:$0xff]  ;;  %v6681_v26 = vld [vmem:[#allocation7_spill] sm:$0xff]  ;;  %v6683_v36 = vld [vmem:[#allocation25_spill] sm:$0xff] }
 0x2fa   :  { %v922_v30 = vmul.f32 %v904_v5, %v4299_v21  ;;  %v909_v31 = vmul.f32 %v3001_v2, %v908_v24  ;;  %v6672_v21 = vld [vmem:[#allocation12_spill] sm:$0xff]  ;;  %v6684_v24 = vld [vmem:[#allocation26_spill] sm:$0xff]  ;;  %v6685_v29 = vld [vmem:[#allocation19_spill] sm:$0xff] }
 0x2fb   :  { %v6686_v5 = vld [vmem:[#allocation20_spill] sm:$0xff]  ;;  %v6689_v4 = vld [vmem:[#allocation9_spill] sm:$0xff]  ;;  %v6690_v51 = vld [vmem:[#allocation10_spill] sm:$0xff] }
 0x2fc   :  { %v4543_v22 = vadd.f32 %v923_v12, %v922_v30  ;;  %v910_v33 = vadd.f32 %v3001_v2, %v909_v31  ;;  %v6673_v30 = vld [vmem:[#allocation2_spill] sm:$0xff]  ;;  %v6687_v31 = vld [vmem:[#allocation15_spill] sm:$0xff] }
 0x2fd   :  { %v6674_v12 = vld [vmem:[#allocation6_spill] sm:$0xff] }
 0x2fe   :  { %3004 = vtanh.f32 %v4543_v22  ;;  %v914_v3 = vsel %vm913_vm15, %v3001_v2, %v910_v33  ;;  %v6671_v2 = vld [vmem:[#allocation11_spill] sm:$0xff]  ;;  %v6688_v33 = vld [vmem:[#allocation16_spill] sm:$0xff] }
 0x2ff   :  { %v919_v48 = vsel %vm916_vm0, %v918_v44, %v914_v3  ;;  %v6691_v3 = vld [vmem:[#allocation27_spill] sm:$0xff]  ;;  %v6692_v44 = vld [vmem:[#allocation28_spill] sm:$0xff] }
 0x304   :  { %v3005_v8 = vpop.eup %3004 }
 0x305   :  { %v926_v1 = vmul.f32 %v3005_v8, %v919_v48  ;;  %v6693_v8 = vld [vmem:[#allocation21_spill] sm:$0xff]  ;;  %v6694_v48 = vld [vmem:[#allocation22_spill] sm:$0xff] }
 0x307   :  { %943 = vmatmul.f32.vlgmr.msrb.gmra.mxu0 %v926_v1  ;;  %963 = vmatmul.f32.vlgmr.msrb.gmra.mxu1 %v926_v1 }
 0x308   :  { %983 = vmatmul.f32.vlgmr.msra.gmra.mxu2 %v926_v1  ;;  %1003 = vmatmul.f32.vlgmr.msra.gmra.mxu3 %v926_v1  ;;  %v6695_v1 = vld [vmem:[#allocation34_spill] sm:$0xff] }
 0x309   :  { %1221 = vmatpush.msrb.mxu0 %v4061_v37  ;;  %1241 = vmatpush.msrb.mxu1 %v4067_v34 }
 0x30a   :  { %1261 = vmatpush.msra.mxu2 %v4307_v7  ;;  %1281 = vmatpush.msra.mxu3 %v4313_v27 }
 0x30b   :  { %1222 = vmatpush.msrb.mxu0 %v4075_v43  ;;  %1242 = vmatpush.msrb.mxu1 %v4081_v46 }
 0x30c   :  { %1262 = vmatpush.msra.mxu2 %v4321_v41  ;;  %1282 = vmatpush.msra.mxu3 %v4327_v28 }
 0x30d   :  { %1223 = vmatpush.msrb.mxu0 %v4089_v42  ;;  %1243 = vmatpush.msrb.mxu1 %v4095_v49 }
 0x30e   :  { %1263 = vmatpush.msra.mxu2 %v4335_v11  ;;  %1283 = vmatpush.msra.mxu3 %v4341_v10 }
 0x30f   :  { %1224 = vmatpush.msrb.mxu0 %v4103_v50  ;;  %1244 = vmatpush.msrb.mxu1 %v4109_v52 }
 0x310   :  { %1264 = vmatpush.msra.mxu2 %v4349_v35  ;;  %1284 = vmatpush.msra.mxu3 %v4355_v45 }
 0x311   :  { %1225 = vmatpush.msrb.mxu0 %v4117_v53  ;;  %1245 = vmatpush.msrb.mxu1 %v4123_v54 }
 0x312   :  { %1265 = vmatpush.msra.mxu2 %v4363_v38  ;;  %1285 = vmatpush.msra.mxu3 %v4369_v14 }
 0x313   :  { %1226 = vmatpush.msrb.mxu0 %v4131_v55  ;;  %1246 = vmatpush.msrb.mxu1 %v4137_v56 }
 0x314   :  { %1266 = vmatpush.msra.mxu2 %v4377_v40  ;;  %1286 = vmatpush.msra.mxu3 %v4383_v39 }
 0x315   :  { %1227 = vmatpush.msrb.mxu0 %v4145_v57  ;;  %1247 = vmatpush.msrb.mxu1 %v4151_v58 }
 0x316   :  { %1267 = vmatpush.msra.mxu2 %v4391_v15  ;;  %1287 = vmatpush.msra.mxu3 %v4397_v16 }
 0x317   :  { %1228 = vmatpush.msrb.mxu0 %v4159_v59  ;;  %1248 = vmatpush.msrb.mxu1 %v4165_v60 }
 0x318   :  { %1268 = vmatpush.msra.mxu2 %v4405_v19  ;;  %1288 = vmatpush.msra.mxu3 %v4411_v6 }
 0x319   :  { %1229 = vmatpush.msrb.mxu0 %v4173_v61  ;;  %1249 = vmatpush.msrb.mxu1 %v4179_v62 }
 0x31a   :  { %1269 = vmatpush.msra.mxu2 %v4419_v13  ;;  %1289 = vmatpush.msra.mxu3 %v4425_v20 }
 0x31b   :  { %1230 = vmatpush.msrb.mxu0 %v4187_v63  ;;  %1250 = vmatpush.msrb.mxu1 %v4193_v0 }
 0x31c   :  { %1270 = vmatpush.msra.mxu2 %v6671_v2  ;;  %1290 = vmatpush.msra.mxu3 %v6672_v21 }
 0x31d   :  { %1231 = vmatpush.msrb.mxu0 %v6673_v30  ;;  %1251 = vmatpush.msrb.mxu1 %v6674_v12 }
 0x31e   :  { %1271 = vmatpush.msra.mxu2 %v6675_v9  ;;  %1291 = vmatpush.msra.mxu3 %v6676_v32 }
 0x31f   :  { %1232 = vmatpush.msrb.mxu0 %v6677_v23  ;;  %1252 = vmatpush.msrb.mxu1 %v6678_v18 }
 0x320   :  { %1272 = vmatpush.msra.mxu2 %v6679_v17  ;;  %1292 = vmatpush.msra.mxu3 %v6680_v47 }
 0x321   :  { %1233 = vmatpush.msrb.mxu0 %v6681_v26  ;;  %1253 = vmatpush.msrb.mxu1 %v6682_v25  ;;  %v6699_v25 = vld [vmem:[#allocation46_spill] sm:$0xff] }
 0x322   :  { %1273 = vmatpush.msra.mxu2 %v6683_v36  ;;  %1293 = vmatpush.msra.mxu3 %v6684_v24 }
 0x323   :  { %1234 = vmatpush.msrb.mxu0 %v6685_v29  ;;  %1254 = vmatpush.msrb.mxu1 %v6686_v5  ;;  %v6696_v29 = vld [vmem:[#allocation35_spill] sm:$0xff] }
 0x324   :  { %1274 = vmatpush.msra.mxu2 %v6687_v31  ;;  %1294 = vmatpush.msra.mxu3 %v6688_v33  ;;  %v70_v33 = vld [vmem:[%s6414_s3 + $0x80] sm:$0xff]  ;;  %v6698_v31 = vld [vmem:[#allocation4_spill] sm:$0xff] }
 0x325   :  { %1235 = vmatpush.msrb.mxu0 %v6689_v4  ;;  %1255 = vmatpush.msrb.mxu1 %v6690_v51  ;;  %v71_v51 = vld [vmem:[%s6414_s3 + $0x88] sm:$0xff] }
 0x326   :  { %1275 = vmatpush.msra.mxu2 %v6691_v3  ;;  %1295 = vmatpush.msra.mxu3 %v6692_v44  ;;  %v6697_v4 = vld [vmem:[#allocation3_spill] sm:$0xff]  ;;  %v182_v44 = vadd.f32 %v6698_v31, %v71_v51 }
 0x327   :  { %1236 = vmatpush.msrb.mxu0 %v6693_v8  ;;  %1256 = vmatpush.msrb.mxu1 %v6694_v48  ;;  %v141_v3 = vadd.f32 %v6697_v4, %v70_v33 }
 0x328   :  { %1276 = vmatpush.msra.mxu2 %v6695_v1  ;;  %1296 = vmatpush.msra.mxu3 %v6696_v29  ;;  %v72_v29 = vld [vmem:[%s6414_s3 + $0x90] sm:$0xff] }
 0x329   :  { %v223_v26 = vadd.f32 %v6699_v25, %v72_v29 }
 0x384   :  { %v944_v5 = vpop.f32.mrf.mxu0  ;;  %v964_v8 = vpop.f32.mrf.mxu1 }
 0x385   :  { %v1007_v24 = vadd.f32 %v944_v5, %v141_v3  ;;  %v1008_v48 = vadd.f32 %v964_v8, %v182_v44  ;;  %v73_v5 = vld [vmem:[%s6414_s3 + $0x98] sm:$0xff]  ;;  %v6700_v44 = vld [vmem:[#allocation47_spill] sm:$0xff] }
 0x386   :  { %v264_v8 = vadd.f32 %v6700_v44, %v73_v5 }
 0x387   :  { %v2913_v1 = vmul.f32 -1.442695, %v1007_v24  ;;  %v2914_v36 = vmul.f32 -1.442695, %v1008_v48 }
 0x389   :  { %3006 = vpow2.f32 %v2913_v1 }
 0x38a   :  { %3008 = vpow2.f32 %v2914_v36 }
 0x38b   :  { %v984_v47 = vpop.f32.mrf.mxu2  ;;  %v1004_v24 = vpop.f32.mrf.mxu3 }
 0x38c   :  { %v1009_v17 = vadd.f32 %v984_v47, %v223_v26  ;;  %v1010_v29 = vadd.f32 %v1004_v24, %v264_v8 }
 0x38e   :  { %v2915_v18 = vmul.f32 -1.442695, %v1009_v17 }
 0x38f   :  { %v3007_v33 = vpop.eup %3006 }
 0x390   :  { %v3009_v4 = vpop.eup %3008  ;;  %v1020_v31 = vadd.f32 1.0, %v3007_v33  ;;  %3010 = vpow2.f32 %v2915_v18 }
 0x391   :  { %v1021_v51 = vadd.f32 1.0, %v3009_v4 }
 0x392   :  { %3012 = vrcp.f32 %v1020_v31  ;;  %v1034_v1 = vand.u32 2147483648, %v1020_v31  ;;  %v1032_v23 = vand.u32 2147483647, %v1020_v31  ;;  %vm1028_vm3 = vweird.f32 %v1020_v31 }
 0x393   :  { %3014 = vrcp.f32 %v1021_v51  ;;  %v1049_v33 = vand.u32 2147483648, %v1021_v51  ;;  %v1047_v9 = vand.u32 2147483647, %v1021_v51  ;;  %vm1043_vm4 = vweird.f32 %v1021_v51 }
 0x394   :  { %vm1033_vm7 = vcmp.eq.f32.partialorder %v1032_v23, 8.507059e+37 }
 0x395   :  { %v1050_v8 = vor.u32 1.1754944e-38, %v1049_v33  ;;  %vm1048_vm8 = vcmp.eq.f32.partialorder %v1047_v9, 8.507059e+37 }
 0x396   :  { %v3011_v3 = vpop.eup %3010 }
 0x397   :  { %v1022_v25 = vadd.f32 1.0, %v3011_v3  ;;  %v1035_v3 = vor.u32 1.1754944e-38, %v1034_v1 }
 0x398   :  { %v3013_v36 = vpop.eup %3012 }
 0x399   :  { %v3015_v47 = vpop.eup %3014  ;;  %v1024_v17 = vmul.f32 %v3013_v36, %v1020_v31  ;;  %3016 = vrcp.f32 %v1022_v25  ;;  %vm1029_vm1 = vweird.f32 %v3013_v36  ;;  %vm1058_vm10 = vweird.f32 %v1022_v25 }
 0x39a   :  { %v1039_v26 = vmul.f32 %v3015_v47, %v1021_v51  ;;  %3018 = vtanh.f32 %v1010_v29  ;;  %vm1044_vm2 = vweird.f32 %v3015_v47  ;;  %vm1030_vm5 = vmor %vm1028_vm3, %vm1029_vm1 }
 0x39b   :  { %v1025_v48 = vsub.f32 1.0, %v1024_v17  ;;  %vm1045_vm6 = vmor %vm1043_vm4, %vm1044_vm2 }
 0x39c   :  { %v1040_v18 = vsub.f32 1.0, %v1039_v26 }
 0x39d   :  { %v1026_v4 = vmul.f32 %v3013_v36, %v1025_v48 }
 0x39e   :  { %v1041_v32 = vmul.f32 %v3015_v47, %v1040_v18 }
 0x39f   :  { %v3017_v12 = vpop.eup %3016  ;;  %v1027_v5 = vadd.f32 %v3013_v36, %v1026_v4 }
 0x3a0   :  { %v1054_v24 = vmul.f32 %v3017_v12, %v1022_v25  ;;  %v1042_v44 = vadd.f32 %v3015_v47, %v1041_v32  ;;  %v3019_v29 = vpop.eup %3018  ;;  %vm1059_vm9 = vweird.f32 %v3017_v12  ;;  %v1064_v32 = vand.u32 2147483648, %v1022_v25 }
 0x3a1   :  { %v1031_v17 = vsel %vm1030_vm5, %v3013_v36, %v1027_v5  ;;  %v1062_v36 = vand.u32 2147483647, %v1022_v25  ;;  %vm1060_vm11 = vmor %vm1058_vm10, %vm1059_vm9 }
 0x3a2   :  { %v1055_v26 = vsub.f32 1.0, %v1054_v24  ;;  %v1036_v48 = vsel %vm1033_vm7, %v1035_v3, %v1031_v17  ;;  %v1046_v30 = vsel %vm1045_vm6, %v3015_v47, %v1042_v44  ;;  %v1065_v1 = vor.u32 1.1754944e-38, %v1064_v32 }
 0x3a3   :  { %v1051_v18 = vsel %vm1048_vm8, %v1050_v8, %v1046_v30  ;;  %v1070_v21 = vmul.f32 %v3019_v29, %v1036_v48  ;;  %vm1063_vm12 = vcmp.eq.f32.partialorder %v1062_v36, 8.507059e+37  ;;  %v77_v8 = vld [vmem:[%s6414_s3 + $0xb8] sm:$0xff] }
 0x3a4   :  { %v1069_v2 = vmul.f32 %v1051_v18, %v4543_v22  ;;  %v1056_v4 = vmul.f32 %v3017_v12, %v1055_v26  ;;  %v6730_v26 = vld [vmem:[#allocation49_spill] sm:$0xff] }
 0x3a5   :  { %v267_v48 = vadd.f32 %v6730_v26, %v77_v8  ;;  %v81_v8 = vld [vmem:[%s6414_s3 + $0xd8] sm:$0xff]  ;;  %v1756_v26 = vld [vmem:[%s6415_s4 + $0x788] sm:$0xff] }
 0x3a6   :  { %v4627_v31 = vadd.f32 %v1070_v21, %v1069_v2  ;;  %v1057_v51 = vadd.f32 %v3017_v12, %v1056_v4  ;;  %v6729_v2 = vld [vmem:[#allocation48_spill] sm:$0xff] }
 0x3a8   :  { %3020 = vtanh.f32 %v4627_v31  ;;  %v1061_v23 = vsel %vm1060_vm11, %v3017_v12, %v1057_v51 }
 0x3a9   :  { %v1066_v9 = vsel %vm1063_vm12, %v1065_v1, %v1061_v23 }
 0x3ae   :  { %v3021_v47 = vpop.eup %3020 }
 0x3af   :  { %v1073_v30 = vmul.f32 %v3021_v47, %v1066_v9 }
 0x3b1   :  { %1090 = vmatmul.f32.vlgmr.msra.gmra.mxu0 %v1073_v30  ;;  %1110 = vmatmul.f32.vlgmr.msra.gmra.mxu1 %v1073_v30 }
 0x3b2   :  { %1130 = vmatmul.f32.vlgmr.msrb.gmra.mxu2 %v1073_v30  ;;  %1150 = vmatmul.f32.vlgmr.msrb.gmra.mxu3 %v1073_v30 }
 0x3b3   :  { %1368 = vmatpush.msra.mxu0 %v4061_v37  ;;  %1388 = vmatpush.msra.mxu1 %v4067_v34  ;;  %v6701_v37 = vld [vmem:[#allocation11_spill] sm:$0xff]  ;;  %v6702_v34 = vld [vmem:[#allocation12_spill] sm:$0xff] }
 0x3b4   :  { %1408 = vmatpush.msrb.mxu2 %v4307_v7  ;;  %1428 = vmatpush.msrb.mxu3 %v4313_v27  ;;  %v6721_v7 = vld [vmem:[#allocation27_spill] sm:$0xff]  ;;  %v6722_v27 = vld [vmem:[#allocation28_spill] sm:$0xff] }
 0x3b5   :  { %1369 = vmatpush.msra.mxu0 %v4075_v43  ;;  %1389 = vmatpush.msra.mxu1 %v4081_v46  ;;  %v6703_v43 = vld [vmem:[#allocation2_spill] sm:$0xff] }
 0x3b6   :  { %1409 = vmatpush.msrb.mxu2 %v4321_v41  ;;  %1429 = vmatpush.msrb.mxu3 %v4327_v28  ;;  %v6704_v46 = vld [vmem:[#allocation6_spill] sm:$0xff]  ;;  %v6723_v41 = vld [vmem:[#allocation21_spill] sm:$0xff] }
 0x3b7   :  { %1370 = vmatpush.msra.mxu0 %v4089_v42  ;;  %1390 = vmatpush.msra.mxu1 %v4095_v49  ;;  %v6705_v42 = vld [vmem:[#allocation23_spill] sm:$0xff]  ;;  %v6706_v49 = vld [vmem:[#allocation24_spill] sm:$0xff]  ;;  %v6724_v28 = vld [vmem:[#allocation22_spill] sm:$0xff] }
 0x3b8   :  { %1410 = vmatpush.msrb.mxu2 %v4335_v11  ;;  %1430 = vmatpush.msrb.mxu3 %v4341_v10  ;;  %v6725_v11 = vld [vmem:[#allocation34_spill] sm:$0xff]  ;;  %v6726_v10 = vld [vmem:[#allocation35_spill] sm:$0xff] }
 0x3b9   :  { %1371 = vmatpush.msra.mxu0 %v4103_v50  ;;  %1391 = vmatpush.msra.mxu1 %v4109_v52  ;;  %v6707_v50 = vld [vmem:[#allocation17_spill] sm:$0xff]  ;;  %v6708_v52 = vld [vmem:[#allocation18_spill] sm:$0xff] }
 0x3ba   :  { %1411 = vmatpush.msrb.mxu2 %v4349_v35  ;;  %1431 = vmatpush.msrb.mxu3 %v4355_v45  ;;  %v74_v35 = vld [vmem:[%s6414_s3 + $0xa0] sm:$0xff]  ;;  %v75_v45 = vld [vmem:[%s6414_s3 + $0xa8] sm:$0xff] }
 0x3bb   :  { %1372 = vmatpush.msra.mxu0 %v4117_v53  ;;  %1392 = vmatpush.msra.mxu1 %v4123_v54  ;;  %v6709_v53 = vld [vmem:[#allocation13_spill] sm:$0xff]  ;;  %v6710_v54 = vld [vmem:[#allocation14_spill] sm:$0xff] }
 0x3bc   :  { %1412 = vmatpush.msrb.mxu2 %v4363_v38  ;;  %1432 = vmatpush.msrb.mxu3 %v4369_v14  ;;  %v6727_v38 = vld [vmem:[#allocation5_spill] sm:$0xff] }
 0x3bd   :  { %1373 = vmatpush.msra.mxu0 %v4131_v55  ;;  %1393 = vmatpush.msra.mxu1 %v4137_v56  ;;  %v6711_v55 = vld [vmem:[#allocation7_spill] sm:$0xff]  ;;  %v6712_v56 = vld [vmem:[#allocation8_spill] sm:$0xff]  ;;  %v144_v14 = vadd.f32 %v6727_v38, %v74_v35 }
 0x3be   :  { %1413 = vmatpush.msrb.mxu2 %v4377_v40  ;;  %1433 = vmatpush.msrb.mxu3 %v4383_v39  ;;  %v6728_v40 = vld [vmem:[#allocation29_spill] sm:$0xff]  ;;  %v79_v38 = vld [vmem:[%s6414_s3 + $0xc8] sm:$0xff] }
 0x3bf   :  { %1374 = vmatpush.msra.mxu0 %v4145_v57  ;;  %1394 = vmatpush.msra.mxu1 %v4151_v58  ;;  %v6713_v57 = vld [vmem:[#allocation25_spill] sm:$0xff]  ;;  %v6714_v58 = vld [vmem:[#allocation26_spill] sm:$0xff]  ;;  %v185_v39 = vadd.f32 %v6728_v40, %v75_v45 }
 0x3c0   :  { %1414 = vmatpush.msrb.mxu2 %v4391_v15  ;;  %1434 = vmatpush.msrb.mxu3 %v4397_v16 }
 0x3c1   :  { %1375 = vmatpush.msra.mxu0 %v4159_v59  ;;  %1395 = vmatpush.msra.mxu1 %v4165_v60  ;;  %v6715_v59 = vld [vmem:[#allocation19_spill] sm:$0xff]  ;;  %v6716_v60 = vld [vmem:[#allocation20_spill] sm:$0xff] }
 0x3c2   :  { %1415 = vmatpush.msrb.mxu2 %v4405_v19  ;;  %1435 = vmatpush.msrb.mxu3 %v4411_v6 }
 0x3c3   :  { %1376 = vmatpush.msra.mxu0 %v4173_v61  ;;  %1396 = vmatpush.msra.mxu1 %v4179_v62  ;;  %v6717_v61 = vld [vmem:[#allocation15_spill] sm:$0xff]  ;;  %v6718_v62 = vld [vmem:[#allocation16_spill] sm:$0xff] }
 0x3c4   :  { %1416 = vmatpush.msrb.mxu2 %v4419_v13  ;;  %1436 = vmatpush.msrb.mxu3 %v4425_v20  ;;  %v76_v13 = vld [vmem:[%s6414_s3 + $0xb0] sm:$0xff] }
 0x3c5   :  { %1377 = vmatpush.msra.mxu0 %v4187_v63  ;;  %1397 = vmatpush.msra.mxu1 %v4193_v0  ;;  %v6719_v63 = vld [vmem:[#allocation9_spill] sm:$0xff]  ;;  %v6720_v0 = vld [vmem:[#allocation10_spill] sm:$0xff]  ;;  %v226_v21 = vadd.f32 %v6729_v2, %v76_v13 }
 0x3c6   :  { %1417 = vmatpush.msrb.mxu2 %v6701_v37  ;;  %1437 = vmatpush.msrb.mxu3 %v6702_v34 }
 0x3c7   :  { %1378 = vmatpush.msra.mxu0 %v6703_v43  ;;  %1398 = vmatpush.msra.mxu1 %v6704_v46 }
 0x3c8   :  { %1418 = vmatpush.msrb.mxu2 %v6705_v42  ;;  %1438 = vmatpush.msrb.mxu3 %v6706_v49 }
 0x3c9   :  { %1379 = vmatpush.msra.mxu0 %v6707_v50  ;;  %1399 = vmatpush.msra.mxu1 %v6708_v52 }
 0x3ca   :  { %1419 = vmatpush.msrb.mxu2 %v6709_v53  ;;  %1439 = vmatpush.msrb.mxu3 %v6710_v54 }
 0x3cb   :  { %1380 = vmatpush.msra.mxu0 %v6711_v55  ;;  %1400 = vmatpush.msra.mxu1 %v6712_v56 }
 0x3cc   :  { %1420 = vmatpush.msrb.mxu2 %v6713_v57  ;;  %1440 = vmatpush.msrb.mxu3 %v6714_v58 }
 0x3cd   :  { %1381 = vmatpush.msra.mxu0 %v6715_v59  ;;  %1401 = vmatpush.msra.mxu1 %v6716_v60 }
 0x3ce   :  { %1421 = vmatpush.msrb.mxu2 %v6717_v61  ;;  %1441 = vmatpush.msrb.mxu3 %v6718_v62 }
 0x3cf   :  { %1382 = vmatpush.msra.mxu0 %v6719_v63  ;;  %1402 = vmatpush.msra.mxu1 %v6720_v0 }
 0x3d0   :  { %1422 = vmatpush.msrb.mxu2 %v6721_v7  ;;  %1442 = vmatpush.msrb.mxu3 %v6722_v27 }
 0x3d1   :  { %1383 = vmatpush.msra.mxu0 %v6723_v41  ;;  %1403 = vmatpush.msra.mxu1 %v6724_v28 }
 0x3d2   :  { %1423 = vmatpush.msrb.mxu2 %v6725_v11  ;;  %1443 = vmatpush.msrb.mxu3 %v6726_v10 }
 0x42e   :  { %v1091_v15 = vpop.f32.mrf.mxu0  ;;  %v1111_v16 = vpop.f32.mrf.mxu1 }
 0x42f   :  { %v1154_v19 = vadd.f32 %v1091_v15, %v144_v14  ;;  %v1155_v6 = vadd.f32 %v1111_v16, %v185_v39  ;;  %v6731_v14 = vld [vmem:[#allocation30_spill] sm:$0xff]  ;;  %v6732_v39 = vld [vmem:[#allocation31_spill] sm:$0xff] }
 0x430   :  { %v188_v15 = vadd.f32 %v6732_v39, %v79_v38 }
 0x431   :  { %v2916_v20 = vmul.f32 -1.442695, %v1154_v19  ;;  %v2917_v22 = vmul.f32 -1.442695, %v1155_v6 }
 0x433   :  { %3022 = vpow2.f32 %v2916_v20  ;;  %v80_v20 = vld [vmem:[%s6414_s3 + $0xd0] sm:$0xff] }
 0x434   :  { %3024 = vpow2.f32 %v2917_v22 }
 0x435   :  { %v1131_v12 = vpop.f32.mrf.mxu2  ;;  %v1151_v17 = vpop.f32.mrf.mxu3 }
 0x436   :  { %v1156_v25 = vadd.f32 %v1131_v12, %v226_v21  ;;  %v1157_v51 = vadd.f32 %v1151_v17, %v267_v48  ;;  %v6733_v21 = vld [vmem:[#allocation50_spill] sm:$0xff]  ;;  %v1757_v48 = vld [vmem:[%s6415_s4 + $0x790] sm:$0xff] }
 0x437   :  { %v229_v12 = vadd.f32 %v6733_v21, %v80_v20  ;;  %v1645_v20 = vld [vmem:[%s6415_s4 + $0x410] sm:$0xff]  ;;  %v1728_v21 = vld [vmem:[%s6415_s4 + $0x6a8] sm:$0xff] }
 0x438   :  { %v2918_v33 = vmul.f32 -1.442695, %v1156_v25 }
 0x439   :  { %v3023_v5 = vpop.eup %3022 }
 0x43a   :  { %v3025_v24 = vpop.eup %3024  ;;  %v1167_v3 = vadd.f32 1.0, %v3023_v5  ;;  %3026 = vpow2.f32 %v2918_v33 }
 0x43b   :  { %v1168_v44 = vadd.f32 1.0, %v3025_v24 }
 0x43c   :  { %3028 = vrcp.f32 %v1167_v3  ;;  %v1181_v9 = vand.u32 2147483648, %v1167_v3  ;;  %v1179_v34 = vand.u32 2147483647, %v1167_v3  ;;  %vm1175_vm15 = vweird.f32 %v1167_v3 }
 0x43d   :  { %3030 = vrcp.f32 %v1168_v44  ;;  %v1196_v30 = vand.u32 2147483648, %v1168_v44  ;;  %v1194_v46 = vand.u32 2147483647, %v1168_v44  ;;  %vm1190_vm0 = vweird.f32 %v1168_v44 }
 0x43e   :  { %v1182_v52 = vor.u32 1.1754944e-38, %v1181_v9  ;;  %vm1180_vm3 = vcmp.eq.f32.partialorder %v1179_v34, 8.507059e+37  ;;  %v1725_v9 = vld [vmem:[%s6415_s4 + $0x690] sm:$0xff]  ;;  %v6734_v34 = vld [vmem:[#allocation51_spill] sm:$0xff] }
 0x43f   :  { %v1197_v54 = vor.u32 1.1754944e-38, %v1196_v30  ;;  %vm1195_vm4 = vcmp.eq.f32.partialorder %v1194_v46, 8.507059e+37  ;;  %v1726_v30 = vld [vmem:[%s6415_s4 + $0x698] sm:$0xff]  ;;  %v1707_v46 = vld [vmem:[%s6415_s4 + $0x600] sm:$0xff] }
 0x440   :  { %v3027_v29 = vpop.eup %3026 }
 0x441   :  { %v1169_v18 = vadd.f32 1.0, %v3027_v29  ;;  %v1755_v29 = vld [vmem:[%s6415_s4 + $0x780] sm:$0xff] }
 0x442   :  { %v3029_v4 = vpop.eup %3028 }
 0x443   :  { %v3031_v32 = vpop.eup %3030  ;;  %v1171_v36 = vmul.f32 %v3029_v4, %v1167_v3  ;;  %3032 = vrcp.f32 %v1169_v18  ;;  %vm1176_vm13 = vweird.f32 %v3029_v4  ;;  %v1211_v27 = vand.u32 2147483648, %v1169_v18 }
 0x444   :  { %v1186_v23 = vmul.f32 %v3031_v32, %v1168_v44  ;;  %3034 = vtanh.f32 %v1157_v51  ;;  %vm1191_vm14 = vweird.f32 %v3031_v32  ;;  %vm1177_vm1 = vmor %vm1175_vm15, %vm1176_vm13  ;;  %vm1205_vm6 = vweird.f32 %v1169_v18  ;;  %v1740_v51 = vld [vmem:[%s6415_s4 + $0x708] sm:$0xff] }
 0x445   :  { %v1172_v1 = vsub.f32 1.0, %v1171_v36  ;;  %vm1192_vm2 = vmor %vm1190_vm0, %vm1191_vm14  ;;  %v1209_v41 = vand.u32 2147483647, %v1169_v18  ;;  %v1212_v11 = vor.u32 1.1754944e-38, %v1211_v27  ;;  %v1742_v36 = vld [vmem:[%s6415_s4 + $0x718] sm:$0xff]  ;;  %v1677_v27 = vld [vmem:[%s6415_s4 + $0x510] sm:$0xff] }
 0x446   :  { %v1187_v47 = vsub.f32 1.0, %v1186_v23  ;;  %v1723_v23 = vld [vmem:[%s6415_s4 + $0x680] sm:$0xff] }
 0x447   :  { %v1173_v37 = vmul.f32 %v3029_v4, %v1172_v1  ;;  %vm1210_vm8 = vcmp.eq.f32.partialorder %v1209_v41, 8.507059e+37  ;;  %v1678_v41 = vld [vmem:[%s6415_s4 + $0x518] sm:$0xff] }
 0x448   :  { %v1188_v43 = vmul.f32 %v3031_v32, %v1187_v47  ;;  %v1724_v47 = vld [vmem:[%s6415_s4 + $0x688] sm:$0xff] }
 0x449   :  { %v3033_v42 = vpop.eup %3032  ;;  %v1174_v49 = vadd.f32 %v3029_v4, %v1173_v37 }
 0x44a   :  { %v1201_v50 = vmul.f32 %v3033_v42, %v1169_v18  ;;  %v1189_v53 = vadd.f32 %v3031_v32, %v1188_v43  ;;  %v3035_v56 = vpop.eup %3034  ;;  %vm1206_vm5 = vweird.f32 %v3033_v42  ;;  %v1758_v18 = vld [vmem:[%s6415_s4 + $0x798] sm:$0xff]  ;;  %v270_v43 = vadd.f32 %v6734_v34, %v81_v8  ;;  %v1629_v8 = vld [vmem:[%s6415_s4 + $0x390] sm:$0xff] }
 0x44b   :  { %v1178_v55 = vsel %vm1177_vm1, %v3029_v4, %v1174_v49  ;;  %vm1207_vm7 = vmor %vm1205_vm6, %vm1206_vm5  ;;  %v1739_v4 = vld [vmem:[%s6415_s4 + $0x700] sm:$0xff] }
 0x44c   :  { %v1202_v57 = vsub.f32 1.0, %v1201_v50  ;;  %v1183_v58 = vsel %vm1180_vm3, %v1182_v52, %v1178_v55  ;;  %v1193_v59 = vsel %vm1192_vm2, %v3031_v32, %v1189_v53  ;;  %v1741_v32 = vld [vmem:[%s6415_s4 + $0x710] sm:$0xff]  ;;  %v1710_v52 = vld [vmem:[%s6415_s4 + $0x618] sm:$0xff]  ;;  %v1691_v55 = vld [vmem:[%s6415_s4 + $0x580] sm:$0xff] }
 0x44d   :  { %v1198_v60 = vsel %vm1195_vm4, %v1197_v54, %v1193_v59  ;;  %v1217_v61 = vmul.f32 %v3035_v56, %v1183_v58  ;;  %v1709_v50 = vld [vmem:[%s6415_s4 + $0x610] sm:$0xff]  ;;  %v1692_v56 = vld [vmem:[%s6415_s4 + $0x588] sm:$0xff] }
 0x44e   :  { %v1216_v62 = vmul.f32 %v1198_v60, %v4627_v31  ;;  %v1203_v63 = vmul.f32 %v3033_v42, %v1202_v57  ;;  %v78_v31 = vld [vmem:[%s6414_s3 + $0xc0] sm:$0xff]  ;;  %v1693_v59 = vld [vmem:[%s6415_s4 + $0x590] sm:$0xff]  ;;  %v1694_v60 = vld [vmem:[%s6415_s4 + $0x598] sm:$0xff] }
 0x44f   :  { %v147_v40 = vadd.f32 %v6731_v14, %v78_v31  ;;  %v1661_v14 = vld [vmem:[%s6415_s4 + $0x490] sm:$0xff] }
 0x450   :  { %v4711_v0 = vadd.f32 %v1217_v61, %v1216_v62  ;;  %v1204_v7 = vadd.f32 %v3033_v42, %v1203_v63  ;;  %v1675_v62 = vld [vmem:[%s6415_s4 + $0x500] sm:$0xff]  ;;  %v1676_v63 = vld [vmem:[%s6415_s4 + $0x508] sm:$0xff] }
 0x452   :  { %3036 = vtanh.f32 %v4711_v0  ;;  %v1208_v28 = vsel %vm1207_vm7, %v3033_v42, %v1204_v7  ;;  %v1708_v42 = vld [vmem:[%s6415_s4 + $0x608] sm:$0xff] }
 0x453   :  { %v1213_v35 = vsel %vm1210_vm8, %v1212_v11, %v1208_v28 }
 0x458   :  { %v3037_v10 = vpop.eup %3036 }
 0x459   :  { %v1220_v45 = vmul.f32 %v3037_v10, %v1213_v35  ;;  %v1659_v10 = vld [vmem:[%s6415_s4 + $0x480] sm:$0xff]  ;;  %v1660_v35 = vld [vmem:[%s6415_s4 + $0x488] sm:$0xff] }
 0x45b   :  { %1237 = vmatmul.f32.vlgmr.msrb.gmra.mxu0 %v1220_v45  ;;  %1257 = vmatmul.f32.vlgmr.msrb.gmra.mxu1 %v1220_v45 }
 0x45c   :  { %1277 = vmatmul.f32.vlgmr.msra.gmra.mxu2 %v1220_v45  ;;  %1297 = vmatmul.f32.vlgmr.msra.gmra.mxu3 %v1220_v45 }
 0x45d   :  { %1787 = vmatpush.msrb.mxu0 %v1755_v29  ;;  %1807 = vmatpush.msrb.mxu1 %v1756_v26 }
 0x45e   :  { %1827 = vmatpush.msra.mxu2 %v1757_v48  ;;  %1847 = vmatpush.msra.mxu3 %v1758_v18 }
 0x45f   :  { %1788 = vmatpush.msrb.mxu0 %v1739_v4  ;;  %1808 = vmatpush.msrb.mxu1 %v1740_v51 }
 0x460   :  { %1828 = vmatpush.msra.mxu2 %v1741_v32  ;;  %1848 = vmatpush.msra.mxu3 %v1742_v36 }
 0x461   :  { %1789 = vmatpush.msrb.mxu0 %v1723_v23  ;;  %1809 = vmatpush.msrb.mxu1 %v1724_v47 }
 0x462   :  { %1829 = vmatpush.msra.mxu2 %v1725_v9  ;;  %1849 = vmatpush.msra.mxu3 %v1726_v30 }
 0x463   :  { %1790 = vmatpush.msrb.mxu0 %v1707_v46  ;;  %1810 = vmatpush.msrb.mxu1 %v1708_v42  ;;  %v1611_v46 = vld [vmem:[%s6415_s4 + $0x300] sm:$0xff]  ;;  %v1612_v42 = vld [vmem:[%s6415_s4 + $0x308] sm:$0xff] }
 0x464   :  { %1830 = vmatpush.msra.mxu2 %v1709_v50  ;;  %1850 = vmatpush.msra.mxu3 %v1710_v52  ;;  %v1614_v50 = vld [vmem:[%s6415_s4 + $0x318] sm:$0xff]  ;;  %v1595_v52 = vld [vmem:[%s6415_s4 + $0x280] sm:$0xff] }
 0x465   :  { %1791 = vmatpush.msrb.mxu0 %v1691_v55  ;;  %1811 = vmatpush.msrb.mxu1 %v1692_v56  ;;  %v1598_v55 = vld [vmem:[%s6415_s4 + $0x298] sm:$0xff]  ;;  %v1579_v56 = vld [vmem:[%s6415_s4 + $0x200] sm:$0xff] }
 0x466   :  { %1831 = vmatpush.msra.mxu2 %v1693_v59  ;;  %1851 = vmatpush.msra.mxu3 %v1694_v60  ;;  %v1582_v59 = vld [vmem:[%s6415_s4 + $0x218] sm:$0xff]  ;;  %v1563_v60 = vld [vmem:[%s6415_s4 + $0x180] sm:$0xff] }
 0x467   :  { %1792 = vmatpush.msrb.mxu0 %v1675_v62  ;;  %1812 = vmatpush.msrb.mxu1 %v1676_v63  ;;  %v1565_v62 = vld [vmem:[%s6415_s4 + $0x190] sm:$0xff]  ;;  %v1566_v63 = vld [vmem:[%s6415_s4 + $0x198] sm:$0xff] }
 0x468   :  { %1832 = vmatpush.msra.mxu2 %v1677_v27  ;;  %1852 = vmatpush.msra.mxu3 %v1678_v41  ;;  %v1548_v27 = vld [vmem:[%s6415_s4 + $0x108] sm:$0xff]  ;;  %v1549_v41 = vld [vmem:[%s6415_s4 + $0x110] sm:$0xff] }
 0x469   :  { %1793 = vmatpush.msrb.mxu0 %v1659_v10  ;;  %1813 = vmatpush.msrb.mxu1 %v1660_v35  ;;  %v1532_v10 = vld [vmem:[%s6415_s4 + $0x88] sm:$0xff]  ;;  %v1533_v35 = vld [vmem:[%s6415_s4 + $0x90] sm:$0xff] }
 0x46a   :  { %1833 = vmatpush.msra.mxu2 %v1661_v14  ;;  %v1517_v14 = vld [vmem:[%s6415_s4 + $0x10] sm:$0xff] }
 0x46c   :  { %1834 = vmatpush.msra.mxu2 %v1645_v20  ;;  %v1745_v20 = vld [vmem:[%s6415_s4 + $0x730] sm:$0xff] }
 0x46e   :  { %1835 = vmatpush.msra.mxu2 %v1629_v8  ;;  %v1696_v8 = vld [vmem:[%s6415_s4 + $0x5a8] sm:$0xff] }
 0x4d8   :  { %v1238_v16 = vpop.f32.mrf.mxu0  ;;  %v1258_v19 = vpop.f32.mrf.mxu1 }
 0x4d9   :  { %v1301_v6 = vadd.f32 %v1238_v16, %v147_v40  ;;  %v1302_v13 = vadd.f32 %v1258_v19, %v188_v15  ;;  %v1662_v40 = vld [vmem:[%s6415_s4 + $0x498] sm:$0xff]  ;;  %v1643_v16 = vld [vmem:[%s6415_s4 + $0x400] sm:$0xff]  ;;  %v1644_v19 = vld [vmem:[%s6415_s4 + $0x408] sm:$0xff] }
 0x4da   :  { %1853 = vmatpush.msra.mxu3 %v1662_v40  ;;  %1794 = vmatpush.msrb.mxu0 %v1643_v16  ;;  %v1518_v40 = vld [vmem:[%s6415_s4 + $0x18] sm:$0xff]  ;;  %v1761_v16 = vld [vmem:[%s6415_s4 + $0x7b0] sm:$0xff] }
 0x4db   :  { %v2919_v22 = vmul.f32 -1.442695, %v1301_v6  ;;  %v2920_v2 = vmul.f32 -1.442695, %v1302_v13  ;;  %1814 = vmatpush.msrb.mxu1 %v1644_v19  ;;  %v1762_v19 = vld [vmem:[%s6415_s4 + $0x7b8] sm:$0xff] }
 0x4dd   :  { %3038 = vpow2.f32 %v2919_v22  ;;  %v1646_v22 = vld [vmem:[%s6415_s4 + $0x418] sm:$0xff] }
 0x4de   :  { %3040 = vpow2.f32 %v2920_v2  ;;  %1854 = vmatpush.msra.mxu3 %v1646_v22  ;;  %v1746_v22 = vld [vmem:[%s6415_s4 + $0x738] sm:$0xff] }
 0x4df   :  { %v1278_v25 = vpop.f32.mrf.mxu2  ;;  %v1298_v1 = vpop.f32.mrf.mxu3 }
 0x4e0   :  { %v1303_v33 = vadd.f32 %v1278_v25, %v229_v12  ;;  %v1304_v54 = vadd.f32 %v1298_v1, %v270_v43 }
 0x4e2   :  { %v2921_v5 = vmul.f32 -1.442695, %v1303_v33  ;;  %v1627_v33 = vld [vmem:[%s6415_s4 + $0x380] sm:$0xff] }
 0x4e3   :  { %v3039_v24 = vpop.eup %3038  ;;  %1795 = vmatpush.msrb.mxu0 %v1627_v33  ;;  %v1711_v33 = vld [vmem:[%s6415_s4 + $0x620] sm:$0xff] }
 0x4e4   :  { %v3041_v3 = vpop.eup %3040  ;;  %v4726_v44 = vadd.f32 1.0, %v3039_v24  ;;  %3042 = vpow2.f32 %v2921_v5  ;;  %v1628_v5 = vld [vmem:[%s6415_s4 + $0x388] sm:$0xff]  ;;  %v1713_v24 = vld [vmem:[%s6415_s4 + $0x630] sm:$0xff] }
 0x4e5   :  { %v4731_v17 = vadd.f32 1.0, %v3041_v3  ;;  %1815 = vmatpush.msrb.mxu1 %v1628_v5  ;;  %1796 = vmatpush.msrb.mxu0 %v1611_v46  ;;  %v1712_v5 = vld [vmem:[%s6415_s4 + $0x628] sm:$0xff] }
 0x4e6   :  { %3044 = vrcp.f32 %v4726_v44  ;;  %v1328_v11 = vand.u32 2147483648, %v4726_v44  ;;  %v1326_v38 = vand.u32 2147483647, %v4726_v44  ;;  %vm1322_vm11 = vweird.f32 %v4726_v44  ;;  %v1632_v46 = vld [vmem:[%s6415_s4 + $0x3a8] sm:$0xff] }
 0x4e7   :  { %3046 = vrcp.f32 %v4731_v17  ;;  %v1343_v45 = vand.u32 2147483648, %v4731_v17  ;;  %v1341_v15 = vand.u32 2147483647, %v4731_v17  ;;  %vm1337_vm12 = vweird.f32 %v4731_v17  ;;  %1816 = vmatpush.msrb.mxu1 %v1612_v42  ;;  %1797 = vmatpush.msrb.mxu0 %v1595_v52  ;;  %v1633_v42 = vld [vmem:[%s6415_s4 + $0x3b0] sm:$0xff]  ;;  %v6740_v52 = vld [vmem:[#allocation33_spill] sm:$0xff] }
 0x4e8   :  { %v1329_v12 = vor.u32 1.1754944e-38, %v1328_v11  ;;  %vm1327_vm15 = vcmp.eq.f32.partialorder %v1326_v38, 8.507059e+37  ;;  %v1531_v11 = vld [vmem:[%s6415_s4 + $0x80] sm:$0xff]  ;;  %v1516_v38 = vld [vmem:[%s6415_s4 + $0x8] sm:$0xff] }
 0x4e9   :  { %v1344_v3 = vor.u32 1.1754944e-38, %v1343_v45  ;;  %vm1342_vm0 = vcmp.eq.f32.partialorder %v1341_v15, 8.507059e+37  ;;  %1798 = vmatpush.msrb.mxu0 %v1579_v56  ;;  %v1534_v45 = vld [vmem:[%s6415_s4 + $0x98] sm:$0xff]  ;;  %v1760_v15 = vld [vmem:[%s6415_s4 + $0x7a8] sm:$0xff] }
 0x4ea   :  { %v3043_v37 = vpop.eup %3042 }
 0x4eb   :  { %v4778_v49 = vadd.f32 1.0, %v3043_v37  ;;  %1799 = vmatpush.msrb.mxu0 %v1563_v60 }
 0x4ec   :  { %v4786_v53 = vpop.eup %3044 }
 0x4ed   :  { %v4794_v57 = vpop.eup %3046  ;;  %v1318_v58 = vmul.f32 %v4786_v53, %v4726_v44  ;;  %3048 = vrcp.f32 %v4778_v49  ;;  %vm1323_vm9 = vweird.f32 %v4786_v53  ;;  %v1358_v47 = vand.u32 2147483648, %v4778_v49 }
 0x4ee   :  { %v1333_v61 = vmul.f32 %v4794_v57, %v4731_v17  ;;  %3050 = vtanh.f32 %v1304_v54  ;;  %vm1338_vm10 = vweird.f32 %v4794_v57  ;;  %vm4857_vm13 = vmor %vm1322_vm11, %vm1323_vm9  ;;  %v1630_v17 = vld [vmem:[%s6415_s4 + $0x398] sm:$0xff]  ;;  %vm1352_vm2 = vweird.f32 %v4778_v49  ;;  %v1597_v54 = vld [vmem:[%s6415_s4 + $0x290] sm:$0xff] }
 0x4ef   :  { %v1319_v7 = vsub.f32 1.0, %v1318_v58  ;;  %vm4870_vm14 = vmor %vm1337_vm12, %vm1338_vm10  ;;  %1855 = vmatpush.msra.mxu3 %v1630_v17  ;;  %v1356_v9 = vand.u32 2147483647, %v4778_v49  ;;  %v1359_v37 = vor.u32 1.1754944e-38, %v1358_v47  ;;  %v1581_v58 = vld [vmem:[%s6415_s4 + $0x210] sm:$0xff]  ;;  %v83_v47 = vld [vmem:[%s6414_s3 + $0xe8] sm:$0xff] }
 0x4f0   :  { %v1334_v28 = vsub.f32 1.0, %v1333_v61  ;;  %v1564_v61 = vld [vmem:[%s6415_s4 + $0x188] sm:$0xff]  ;;  %v1697_v17 = vld [vmem:[%s6415_s4 + $0x5b0] sm:$0xff] }
 0x4f1   :  { %v1320_v31 = vmul.f32 %v4786_v53, %v1319_v7  ;;  %vm1357_vm4 = vcmp.eq.f32.partialorder %v1356_v9, 8.507059e+37  ;;  %1856 = vmatpush.msra.mxu3 %v1614_v50  ;;  %v1547_v7 = vld [vmem:[%s6415_s4 + $0x100] sm:$0xff]  ;;  %v1666_v9 = vld [vmem:[%s6415_s4 + $0x4b8] sm:$0xff] }
 0x4f2   :  { %v1335_v39 = vmul.f32 %v4794_v57, %v1334_v28  ;;  %1800 = vmatpush.msrb.mxu0 %v1547_v7  ;;  %v1550_v28 = vld [vmem:[%s6415_s4 + $0x118] sm:$0xff]  ;;  %v1600_v7 = vld [vmem:[%s6415_s4 + $0x2a8] sm:$0xff] }
 0x4f3   :  { %v3049_v6 = vpop.eup %3048  ;;  %v1321_v13 = vadd.f32 %v4786_v53, %v1320_v31  ;;  %1857 = vmatpush.msra.mxu3 %v1598_v55  ;;  %v1515_v31 = vld [vmem:[%s6415_s4] sm:$0xff] }
 0x4f4   :  { %v1348_v2 = vmul.f32 %v3049_v6, %v4778_v49  ;;  %v1336_v25 = vadd.f32 %v4794_v57, %v1335_v39  ;;  %v3051_v29 = vpop.eup %3050  ;;  %vm1353_vm1 = vweird.f32 %v3049_v6  ;;  %v1613_v49 = vld [vmem:[%s6415_s4 + $0x310] sm:$0xff]  ;;  %1801 = vmatpush.msrb.mxu0 %v1531_v11  ;;  %v1759_v39 = vld [vmem:[%s6415_s4 + $0x7a0] sm:$0xff] }
 0x4f5   :  { %v1325_v44 = vsel %vm4857_vm13, %v4786_v53, %v1321_v13  ;;  %vm1354_vm3 = vmor %vm1352_vm2, %vm1353_vm1  ;;  %1836 = vmatpush.msra.mxu2 %v1613_v49  ;;  %v1596_v53 = vld [vmem:[%s6415_s4 + $0x288] sm:$0xff]  ;;  %1858 = vmatpush.msra.mxu3 %v1582_v59  ;;  %v6739_v49 = vld [vmem:[#allocation32_spill] sm:$0xff] }
 0x4f6   :  { %v1349_v26 = vsub.f32 1.0, %v1348_v2  ;;  %v1330_v48 = vsel %vm1327_vm15, %v1329_v12, %v1325_v44  ;;  %v1340_v18 = vsel %vm4870_vm14, %v4794_v57, %v1336_v25  ;;  %1817 = vmatpush.msrb.mxu1 %v1596_v53  ;;  %v1580_v57 = vld [vmem:[%s6415_s4 + $0x208] sm:$0xff]  ;;  %1802 = vmatpush.msrb.mxu0 %v1515_v31  ;;  %v1727_v2 = vld [vmem:[%s6415_s4 + $0x6a0] sm:$0xff]  ;;  %v1729_v12 = vld [vmem:[%s6415_s4 + $0x6b0] sm:$0xff]  ;;  %v191_v53 = vadd.f32 %v6740_v52, %v83_v47 }
 0x4f7   :  { %v1345_v4 = vsel %vm1342_vm0, %v1344_v3, %v1340_v18  ;;  %v1364_v51 = vmul.f32 %v3051_v29, %v1330_v48  ;;  %1837 = vmatpush.msra.mxu2 %v1597_v54  ;;  %1859 = vmatpush.msra.mxu3 %v1566_v63  ;;  %v1744_v13 = vld [vmem:[%s6415_s4 + $0x728] sm:$0xff]  ;;  %v1730_v25 = vld [vmem:[%s6415_s4 + $0x6b8] sm:$0xff]  ;;  %v1695_v44 = vld [vmem:[%s6415_s4 + $0x5a0] sm:$0xff] }
 0x4f8   :  { %v1363_v32 = vmul.f32 %v1345_v4, %v4711_v0  ;;  %v1350_v36 = vmul.f32 %v3049_v6, %v1349_v26  ;;  %1818 = vmatpush.msrb.mxu1 %v1580_v57  ;;  %v1714_v3 = vld [vmem:[%s6415_s4 + $0x638] sm:$0xff]  ;;  %v1679_v26 = vld [vmem:[%s6415_s4 + $0x520] sm:$0xff]  ;;  %v1680_v48 = vld [vmem:[%s6415_s4 + $0x528] sm:$0xff] }
 0x4f9   :  { %1838 = vmatpush.msra.mxu2 %v1581_v58  ;;  %1860 = vmatpush.msra.mxu3 %v1550_v28  ;;  %v1698_v29 = vld [vmem:[%s6415_s4 + $0x5b8] sm:$0xff]  ;;  %v1681_v18 = vld [vmem:[%s6415_s4 + $0x530] sm:$0xff]  ;;  %v1615_v57 = vld [vmem:[%s6415_s4 + $0x320] sm:$0xff] }
 0x4fa   :  { %v4887_v23 = vadd.f32 %v1364_v51, %v1363_v32  ;;  %v1351_v1 = vadd.f32 %v3049_v6, %v1350_v36  ;;  %1819 = vmatpush.msrb.mxu1 %v1564_v61  ;;  %v1682_v4 = vld [vmem:[%s6415_s4 + $0x538] sm:$0xff]  ;;  %v1663_v51 = vld [vmem:[%s6415_s4 + $0x4a0] sm:$0xff]  ;;  %v1664_v32 = vld [vmem:[%s6415_s4 + $0x4a8] sm:$0xff] }
 0x4fb   :  { %1839 = vmatpush.msra.mxu2 %v1565_v62  ;;  %1861 = vmatpush.msra.mxu3 %v1534_v45  ;;  %v1665_v36 = vld [vmem:[%s6415_s4 + $0x4b0] sm:$0xff]  ;;  %v1634_v54 = vld [vmem:[%s6415_s4 + $0x3b8] sm:$0xff]  ;;  %v1616_v58 = vld [vmem:[%s6415_s4 + $0x328] sm:$0xff] }
 0x4fc   :  { %3052 = vtanh.f32 %v4887_v23  ;;  %v1355_v30 = vsel %vm1354_vm3, %v3049_v6, %v1351_v1  ;;  %1820 = vmatpush.msrb.mxu1 %v1548_v27  ;;  %v1743_v6 = vld [vmem:[%s6415_s4 + $0x720] sm:$0xff]  ;;  %v1617_v59 = vld [vmem:[%s6415_s4 + $0x330] sm:$0xff]  ;;  %v1618_v62 = vld [vmem:[%s6415_s4 + $0x338] sm:$0xff] }
 0x4fd   :  { %v1360_v34 = vsel %vm1357_vm4, %v1359_v37, %v1355_v30  ;;  %1840 = vmatpush.msra.mxu2 %v1549_v41  ;;  %1862 = vmatpush.msra.mxu3 %v1518_v40  ;;  %v82_v1 = vld [vmem:[%s6414_s3 + $0xe0] sm:$0xff]  ;;  %v1648_v37 = vld [vmem:[%s6415_s4 + $0x428] sm:$0xff]  ;;  %v1601_v27 = vld [vmem:[%s6415_s4 + $0x2b0] sm:$0xff] }
 0x4fe   :  { %1821 = vmatpush.msrb.mxu1 %v1532_v10  ;;  %v1647_v30 = vld [vmem:[%s6415_s4 + $0x420] sm:$0xff]  ;;  %v150_v50 = vadd.f32 %v6739_v49, %v82_v1  ;;  %v84_v41 = vld [vmem:[%s6414_s3 + $0xf0] sm:$0xff]  ;;  %v1602_v10 = vld [vmem:[%s6415_s4 + $0x2b8] sm:$0xff] }
 0x4ff   :  { %1841 = vmatpush.msra.mxu2 %v1533_v35  ;;  %v1599_v63 = vld [vmem:[%s6415_s4 + $0x2a0] sm:$0xff]  ;;  %v1584_v45 = vld [vmem:[%s6415_s4 + $0x228] sm:$0xff]  ;;  %v1585_v31 = vld [vmem:[%s6415_s4 + $0x230] sm:$0xff] }
 0x500   :  { %1822 = vmatpush.msrb.mxu1 %v1516_v38  ;;  %v1583_v35 = vld [vmem:[%s6415_s4 + $0x220] sm:$0xff]  ;;  %v1586_v38 = vld [vmem:[%s6415_s4 + $0x238] sm:$0xff] }
 0x501   :  { %1842 = vmatpush.msra.mxu2 %v1517_v14  ;;  %v6741_v14 = vld [vmem:[#allocation52_spill] sm:$0xff] }
 0x502   :  { %v3053_v0 = vpop.eup %3052  ;;  %v232_v40 = vadd.f32 %v6741_v14, %v84_v41 }
 0x503   :  { %v1367_v43 = vmul.f32 %v3053_v0, %v1360_v34  ;;  %v1649_v0 = vld [vmem:[%s6415_s4 + $0x430] sm:$0xff]  ;;  %v1650_v34 = vld [vmem:[%s6415_s4 + $0x438] sm:$0xff] }
 0x505   :  { %1384 = vmatmul.f32.vlgmr.msra.gmra.mxu0 %v1367_v43  ;;  %1404 = vmatmul.f32.vlgmr.msra.gmra.mxu1 %v1367_v43 }
 0x506   :  { %1424 = vmatmul.f32.vlgmr.msrb.gmra.mxu2 %v1367_v43  ;;  %1444 = vmatmul.f32.vlgmr.msrb.gmra.mxu3 %v1367_v43  ;;  %v1631_v43 = vld [vmem:[%s6415_s4 + $0x3a0] sm:$0xff] }
 0x507   :  { %1867 = vmatpush.msra.mxu0 %v1759_v39  ;;  %1887 = vmatpush.msra.mxu1 %v1760_v15  ;;  %v1567_v39 = vld [vmem:[%s6415_s4 + $0x1a0] sm:$0xff]  ;;  %v1568_v15 = vld [vmem:[%s6415_s4 + $0x1a8] sm:$0xff] }
 0x508   :  { %1907 = vmatpush.msrb.mxu2 %v1761_v16  ;;  %1927 = vmatpush.msrb.mxu3 %v1762_v19  ;;  %v1569_v16 = vld [vmem:[%s6415_s4 + $0x1b0] sm:$0xff] }
 0x509   :  { %1868 = vmatpush.msra.mxu0 %v1743_v6  ;;  %1888 = vmatpush.msra.mxu1 %v1744_v13  ;;  %v1570_v6 = vld [vmem:[%s6415_s4 + $0x1b8] sm:$0xff] }
 0x50a   :  { %1908 = vmatpush.msrb.mxu2 %v1745_v20  ;;  %1928 = vmatpush.msrb.mxu3 %v1746_v22  ;;  %v1551_v20 = vld [vmem:[%s6415_s4 + $0x120] sm:$0xff]  ;;  %v1552_v22 = vld [vmem:[%s6415_s4 + $0x128] sm:$0xff] }
 0x50b   :  { %1869 = vmatpush.msra.mxu0 %v1727_v2  ;;  %1889 = vmatpush.msra.mxu1 %v1728_v21  ;;  %v1553_v2 = vld [vmem:[%s6415_s4 + $0x130] sm:$0xff]  ;;  %v1554_v21 = vld [vmem:[%s6415_s4 + $0x138] sm:$0xff] }
 0x50c   :  { %1909 = vmatpush.msrb.mxu2 %v1729_v12  ;;  %1929 = vmatpush.msrb.mxu3 %v1730_v25  ;;  %v1535_v25 = vld [vmem:[%s6415_s4 + $0xa0] sm:$0xff] }
 0x50d   :  { %1870 = vmatpush.msra.mxu0 %v1711_v33  ;;  %1890 = vmatpush.msra.mxu1 %v1712_v5  ;;  %v1536_v33 = vld [vmem:[%s6415_s4 + $0xa8] sm:$0xff]  ;;  %v1537_v5 = vld [vmem:[%s6415_s4 + $0xb0] sm:$0xff] }
 0x50e   :  { %1910 = vmatpush.msrb.mxu2 %v1713_v24  ;;  %1930 = vmatpush.msrb.mxu3 %v1714_v3  ;;  %v1538_v3 = vld [vmem:[%s6415_s4 + $0xb8] sm:$0xff] }
 0x50f   :  { %1871 = vmatpush.msra.mxu0 %v1695_v44  ;;  %1891 = vmatpush.msra.mxu1 %v1696_v8  ;;  %v1519_v44 = vld [vmem:[%s6415_s4 + $0x20] sm:$0xff]  ;;  %v1520_v8 = vld [vmem:[%s6415_s4 + $0x28] sm:$0xff] }
 0x510   :  { %1911 = vmatpush.msrb.mxu2 %v1697_v17  ;;  %1931 = vmatpush.msrb.mxu3 %v1698_v29 }
 0x511   :  { %1872 = vmatpush.msra.mxu0 %v1679_v26  ;;  %1892 = vmatpush.msra.mxu1 %v1680_v48  ;;  %v1521_v26 = vld [vmem:[%s6415_s4 + $0x30] sm:$0xff]  ;;  %v1522_v48 = vld [vmem:[%s6415_s4 + $0x38] sm:$0xff] }
 0x512   :  { %1912 = vmatpush.msrb.mxu2 %v1681_v18  ;;  %1932 = vmatpush.msrb.mxu3 %v1682_v4  ;;  %v85_v4 = vld [vmem:[%s6414_s3 + $0xf8] sm:$0xff] }
 0x513   :  { %1873 = vmatpush.msra.mxu0 %v1663_v51  ;;  %1893 = vmatpush.msra.mxu1 %v1664_v32 }
 0x514   :  { %1913 = vmatpush.msrb.mxu2 %v1665_v36  ;;  %1933 = vmatpush.msrb.mxu3 %v1666_v9  ;;  %v6742_v36 = vld [vmem:[#allocation53_spill] sm:$0xff] }
 0x515   :  { %1874 = vmatpush.msra.mxu0 %v1647_v30  ;;  %1894 = vmatpush.msra.mxu1 %v1648_v37  ;;  %v273_v1 = vadd.f32 %v6742_v36, %v85_v4  ;;  %v1684_v4 = vld [vmem:[%s6415_s4 + $0x548] sm:$0xff]  ;;  %v1667_v36 = vld [vmem:[%s6415_s4 + $0x4c0] sm:$0xff] }
 0x516   :  { %1914 = vmatpush.msrb.mxu2 %v1649_v0  ;;  %1934 = vmatpush.msrb.mxu3 %v1650_v34 }
 0x517   :  { %1875 = vmatpush.msra.mxu0 %v1631_v43  ;;  %1895 = vmatpush.msra.mxu1 %v1632_v46 }
 0x518   :  { %1915 = vmatpush.msrb.mxu2 %v1633_v42  ;;  %1935 = vmatpush.msrb.mxu3 %v1634_v54 }
 0x519   :  { %1876 = vmatpush.msra.mxu0 %v1615_v57  ;;  %1896 = vmatpush.msra.mxu1 %v1616_v58 }
 0x51a   :  { %1916 = vmatpush.msrb.mxu2 %v1617_v59  ;;  %1936 = vmatpush.msrb.mxu3 %v1618_v62 }
 0x51b   :  { %1877 = vmatpush.msra.mxu0 %v1599_v63  ;;  %1897 = vmatpush.msra.mxu1 %v1600_v7 }
 0x51c   :  { %1917 = vmatpush.msrb.mxu2 %v1601_v27  ;;  %1937 = vmatpush.msrb.mxu3 %v1602_v10 }
 0x51d   :  { %1878 = vmatpush.msra.mxu0 %v1583_v35  ;;  %1898 = vmatpush.msra.mxu1 %v1584_v45 }
 0x51e   :  { %1918 = vmatpush.msrb.mxu2 %v1585_v31  ;;  %1938 = vmatpush.msrb.mxu3 %v1586_v38 }
 0x51f   :  { %1879 = vmatpush.msra.mxu0 %v1567_v39  ;;  %1899 = vmatpush.msra.mxu1 %v1568_v15 }
 0x520   :  { %1919 = vmatpush.msrb.mxu2 %v1569_v16  ;;  %1939 = vmatpush.msrb.mxu3 %v1570_v6  ;;  %v1765_v6 = vld [vmem:[%s6415_s4 + $0x7d0] sm:$0xff] }
 0x521   :  { %1880 = vmatpush.msra.mxu0 %v1551_v20  ;;  %1900 = vmatpush.msra.mxu1 %v1552_v22  ;;  %v1747_v20 = vld [vmem:[%s6415_s4 + $0x740] sm:$0xff]  ;;  %v1748_v22 = vld [vmem:[%s6415_s4 + $0x748] sm:$0xff] }
 0x522   :  { %1920 = vmatpush.msrb.mxu2 %v1553_v2  ;;  %1940 = vmatpush.msrb.mxu3 %v1554_v21  ;;  %v1749_v2 = vld [vmem:[%s6415_s4 + $0x750] sm:$0xff]  ;;  %v1750_v21 = vld [vmem:[%s6415_s4 + $0x758] sm:$0xff] }
 0x523   :  { %1881 = vmatpush.msra.mxu0 %v1535_v25  ;;  %1901 = vmatpush.msra.mxu1 %v1536_v33  ;;  %v1732_v25 = vld [vmem:[%s6415_s4 + $0x6c8] sm:$0xff]  ;;  %v1733_v33 = vld [vmem:[%s6415_s4 + $0x6d0] sm:$0xff] }
 0x524   :  { %1921 = vmatpush.msrb.mxu2 %v1537_v5  ;;  %1941 = vmatpush.msrb.mxu3 %v1538_v3  ;;  %v1734_v5 = vld [vmem:[%s6415_s4 + $0x6d8] sm:$0xff]  ;;  %v1716_v3 = vld [vmem:[%s6415_s4 + $0x648] sm:$0xff] }
 0x525   :  { %1882 = vmatpush.msra.mxu0 %v1519_v44  ;;  %1902 = vmatpush.msra.mxu1 %v1520_v8  ;;  %v1717_v44 = vld [vmem:[%s6415_s4 + $0x650] sm:$0xff]  ;;  %v1718_v8 = vld [vmem:[%s6415_s4 + $0x658] sm:$0xff] }
 0x526   :  { %1922 = vmatpush.msrb.mxu2 %v1521_v26  ;;  %1942 = vmatpush.msrb.mxu3 %v1522_v48  ;;  %v1701_v26 = vld [vmem:[%s6415_s4 + $0x5d0] sm:$0xff]  ;;  %v1702_v48 = vld [vmem:[%s6415_s4 + $0x5d8] sm:$0xff] }
 0x582   :  { %v1385_v55 = vpop.f32.mrf.mxu0  ;;  %v1405_v56 = vpop.f32.mrf.mxu1 }
 0x583   :  { %v1448_v60 = vadd.f32 %v1385_v55, %v150_v50  ;;  %v1449_v61 = vadd.f32 %v1405_v56, %v191_v53 }
 0x585   :  { %v2922_v28 = vmul.f32 -1.442695, %v1448_v60  ;;  %v2923_v11 = vmul.f32 -1.442695, %v1449_v61 }
 0x587   :  { %3054 = vpow2.f32 %v2922_v28 }
 0x588   :  { %3056 = vpow2.f32 %v2923_v11 }
 0x589   :  { %v1425_v19 = vpop.f32.mrf.mxu2  ;;  %v1445_v51 = vpop.f32.mrf.mxu3 }
 0x58a   :  { %v1450_v13 = vadd.f32 %v1425_v19, %v232_v40  ;;  %v1451_v30 = vadd.f32 %v1445_v51, %v273_v1  ;;  %v1763_v19 = vld [vmem:[%s6415_s4 + $0x7c0] sm:$0xff]  ;;  %v1685_v51 = vld [vmem:[%s6415_s4 + $0x550] sm:$0xff]  ;;  %v1668_v1 = vld [vmem:[%s6415_s4 + $0x4c8] sm:$0xff] }
 0x58c   :  { %v2924_v12 = vmul.f32 -1.442695, %v1450_v13  ;;  %v1766_v13 = vld [vmem:[%s6415_s4 + $0x7d8] sm:$0xff] }
 0x58d   :  { %v3055_v24 = vpop.eup %3054 }
 0x58e   :  { %v3057_v17 = vpop.eup %3056  ;;  %v1461_v29 = vadd.f32 1.0, %v3055_v24  ;;  %3058 = vpow2.f32 %v2924_v12  ;;  %v1731_v12 = vld [vmem:[%s6415_s4 + $0x6c0] sm:$0xff] }
 0x58f   :  { %v1462_v18 = vadd.f32 1.0, %v3057_v17  ;;  %v1715_v24 = vld [vmem:[%s6415_s4 + $0x640] sm:$0xff] }
 0x590   :  { %3060 = vrcp.f32 %v1461_v29  ;;  %v1475_v42 = vand.u32 2147483648, %v1461_v29  ;;  %v1473_v52 = vand.u32 2147483647, %v1461_v29  ;;  %vm1469_vm7 = vweird.f32 %v1461_v29  ;;  %v1699_v17 = vld [vmem:[%s6415_s4 + $0x5c0] sm:$0xff] }
 0x591   :  { %3062 = vrcp.f32 %v1462_v18  ;;  %v1490_v49 = vand.u32 2147483648, %v1462_v18  ;;  %v1488_v54 = vand.u32 2147483647, %v1462_v18  ;;  %vm1484_vm8 = vweird.f32 %v1462_v18 }
 0x592   :  { %v1476_v58 = vor.u32 1.1754944e-38, %v1475_v42  ;;  %vm1474_vm11 = vcmp.eq.f32.partialorder %v1473_v52, 8.507059e+37  ;;  %v1637_v42 = vld [vmem:[%s6415_s4 + $0x3d0] sm:$0xff]  ;;  %v1620_v52 = vld [vmem:[%s6415_s4 + $0x348] sm:$0xff] }
 0x593   :  { %v1491_v60 = vor.u32 1.1754944e-38, %v1490_v49  ;;  %vm1489_vm12 = vcmp.eq.f32.partialorder %v1488_v54, 8.507059e+37  ;;  %v1638_v49 = vld [vmem:[%s6415_s4 + $0x3d8] sm:$0xff] }
 0x594   :  { %v3059_v32 = vpop.eup %3058  ;;  %v1622_v54 = vld [vmem:[%s6415_s4 + $0x358] sm:$0xff] }
 0x595   :  { %v1463_v47 = vadd.f32 1.0, %v3059_v32  ;;  %v1686_v32 = vld [vmem:[%s6415_s4 + $0x558] sm:$0xff] }
 0x596   :  { %v3061_v9 = vpop.eup %3060 }
 0x597   :  { %v3063_v37 = vpop.eup %3062  ;;  %v1465_v0 = vmul.f32 %v3061_v9, %v1461_v29  ;;  %3064 = vrcp.f32 %v1463_v47  ;;  %vm1470_vm5 = vweird.f32 %v3061_v9  ;;  %v1505_v31 = vand.u32 2147483648, %v1463_v47  ;;  %v1700_v29 = vld [vmem:[%s6415_s4 + $0x5c8] sm:$0xff] }
 0x598   :  { %v1480_v34 = vmul.f32 %v3063_v37, %v1462_v18  ;;  %3066 = vtanh.f32 %v1451_v30  ;;  %vm1485_vm6 = vweird.f32 %v3063_v37  ;;  %vm1471_vm9 = vmor %vm1469_vm7, %vm1470_vm5  ;;  %vm1499_vm14 = vweird.f32 %v1463_v47  ;;  %v1683_v18 = vld [vmem:[%s6415_s4 + $0x540] sm:$0xff] }
 0x599   :  { %v1466_v43 = vsub.f32 1.0, %v1465_v0  ;;  %vm1486_vm10 = vmor %vm1484_vm8, %vm1485_vm6  ;;  %v1503_v38 = vand.u32 2147483647, %v1463_v47  ;;  %v1506_v40 = vor.u32 1.1754944e-38, %v1505_v31  ;;  %v1651_v30 = vld [vmem:[%s6415_s4 + $0x440] sm:$0xff]  ;;  %v1653_v0 = vld [vmem:[%s6415_s4 + $0x450] sm:$0xff] }
 0x59a   :  { %v1481_v46 = vsub.f32 1.0, %v1480_v34  ;;  %v1654_v34 = vld [vmem:[%s6415_s4 + $0x458] sm:$0xff]  ;;  %v1540_v31 = vld [vmem:[%s6415_s4 + $0xc8] sm:$0xff] }
 0x59b   :  { %v1467_v50 = vmul.f32 %v3061_v9, %v1466_v43  ;;  %vm1504_vm0 = vcmp.eq.f32.partialorder %v1503_v38, 8.507059e+37  ;;  %v1635_v43 = vld [vmem:[%s6415_s4 + $0x3c0] sm:$0xff]  ;;  %v1541_v38 = vld [vmem:[%s6415_s4 + $0xd0] sm:$0xff] }
 0x59c   :  { %v1482_v53 = vmul.f32 %v3063_v37, %v1481_v46  ;;  %v1636_v46 = vld [vmem:[%s6415_s4 + $0x3c8] sm:$0xff] }
 0x59d   :  { %v3065_v55 = vpop.eup %3064  ;;  %v1468_v56 = vadd.f32 %v3061_v9, %v1467_v50  ;;  %v1619_v50 = vld [vmem:[%s6415_s4 + $0x340] sm:$0xff] }
 0x59e   :  { %v1495_v57 = vmul.f32 %v3065_v55, %v1463_v47  ;;  %v1483_v59 = vadd.f32 %v3063_v37, %v1482_v53  ;;  %v3067_v62 = vpop.eup %3066  ;;  %vm1500_vm13 = vweird.f32 %v3065_v55  ;;  %v1669_v47 = vld [vmem:[%s6415_s4 + $0x4d0] sm:$0xff] }
 0x59f   :  { %v1472_v61 = vsel %vm1471_vm9, %v3061_v9, %v1468_v56  ;;  %vm1501_vm15 = vmor %vm1499_vm14, %vm1500_vm13  ;;  %v1670_v9 = vld [vmem:[%s6415_s4 + $0x4d8] sm:$0xff]  ;;  %v1621_v53 = vld [vmem:[%s6415_s4 + $0x350] sm:$0xff] }
 0x5a0   :  { %v1496_v63 = vsub.f32 1.0, %v1495_v57  ;;  %v1477_v7 = vsel %vm1474_vm11, %v1476_v58, %v1472_v61  ;;  %v1487_v27 = vsel %vm1486_vm10, %v3063_v37, %v1483_v59  ;;  %v1652_v37 = vld [vmem:[%s6415_s4 + $0x448] sm:$0xff]  ;;  %v1605_v57 = vld [vmem:[%s6415_s4 + $0x2d0] sm:$0xff]  ;;  %v1606_v58 = vld [vmem:[%s6415_s4 + $0x2d8] sm:$0xff] }
 0x5a1   :  { %v1492_v41 = vsel %vm1489_vm12, %v1491_v60, %v1487_v27  ;;  %v1511_v28 = vmul.f32 %v3067_v62, %v1477_v7  ;;  %v1604_v56 = vld [vmem:[%s6415_s4 + $0x2c8] sm:$0xff]  ;;  %v1587_v59 = vld [vmem:[%s6415_s4 + $0x240] sm:$0xff]  ;;  %v1589_v61 = vld [vmem:[%s6415_s4 + $0x250] sm:$0xff] }
 0x5a2   :  { %v1497_v11 = vmul.f32 %v3065_v55, %v1496_v63  ;;  %v1510_v10 = vmul.f32 %v1492_v41, %v4887_v23  ;;  %v1764_v23 = vld [vmem:[%s6415_s4 + $0x7c8] sm:$0xff]  ;;  %v1590_v62 = vld [vmem:[%s6415_s4 + $0x258] sm:$0xff]  ;;  %v1571_v63 = vld [vmem:[%s6415_s4 + $0x1c0] sm:$0xff] }
 0x5a3   :  { %v1588_v60 = vld [vmem:[%s6415_s4 + $0x248] sm:$0xff]  ;;  %v1573_v27 = vld [vmem:[%s6415_s4 + $0x1d0] sm:$0xff]  ;;  %v1574_v41 = vld [vmem:[%s6415_s4 + $0x1d8] sm:$0xff] }
 0x5a4   :  { %v1512_v35 = vadd.f32 %v1511_v28, %v1510_v10  ;;  %v1498_v45 = vadd.f32 %v3065_v55, %v1497_v11  ;;  %v1572_v7 = vld [vmem:[%s6415_s4 + $0x1c8] sm:$0xff]  ;;  %v1555_v28 = vld [vmem:[%s6415_s4 + $0x140] sm:$0xff]  ;;  %v1557_v10 = vld [vmem:[%s6415_s4 + $0x150] sm:$0xff] }
 0x5a5   :  { %v1556_v11 = vld [vmem:[%s6415_s4 + $0x148] sm:$0xff] }
 0x5a6   :  { %3068 = vtanh.f32 %v1512_v35  ;;  %v1502_v14 = vsel %vm1501_vm15, %v3065_v55, %v1498_v45  ;;  %v1603_v55 = vld [vmem:[%s6415_s4 + $0x2c0] sm:$0xff]  ;;  %v1558_v35 = vld [vmem:[%s6415_s4 + $0x158] sm:$0xff] }
 0x5a7   :  { %v1507_v15 = vsel %vm1504_vm0, %v1506_v40, %v1502_v14  ;;  %v1539_v45 = vld [vmem:[%s6415_s4 + $0xc0] sm:$0xff]  ;;  %v1542_v14 = vld [vmem:[%s6415_s4 + $0xd8] sm:$0xff] }
 0x5a8   :  { %v1523_v40 = vld [vmem:[%s6415_s4 + $0x40] sm:$0xff] }
 0x5ac   :  { %v3069_v39 = vpop.eup %3068 }
 0x5ad   :  { %v5186_v16 = vmul.f32 %v3069_v39, %v1507_v15  ;;  %v1524_v39 = vld [vmem:[%s6415_s4 + $0x48] sm:$0xff]  ;;  %v1525_v15 = vld [vmem:[%s6415_s4 + $0x50] sm:$0xff] }
 0x5af   :  { %1803 = vmatmul.f32.vlgmr.msrb.gmra.mxu0 %v5186_v16  ;;  %1823 = vmatmul.f32.vlgmr.msrb.gmra.mxu1 %v5186_v16 }
 0x5b0   :  { %1843 = vmatmul.f32.vlgmr.msra.gmra.mxu2 %v5186_v16  ;;  %1863 = vmatmul.f32.vlgmr.msra.gmra.mxu3 %v5186_v16 }
 0x5b1   :  { %1947 = vmatpush.msrb.mxu0 %v1763_v19  ;;  %1967 = vmatpush.msrb.mxu1 %v1764_v23  ;;  %v1526_v19 = vld [vmem:[%s6415_s4 + $0x58] sm:$0xff]  ;;  %v1767_v23 = vld [vmem:[%s6415_s4 + $0x7e0] sm:$0xff] }
 0x5b2   :  { %1987 = vmatpush.msra.mxu2 %v1765_v6  ;;  %2007 = vmatpush.msra.mxu3 %v1766_v13  ;;  %v1768_v6 = vld [vmem:[%s6415_s4 + $0x7e8] sm:$0xff]  ;;  %v1769_v13 = vld [vmem:[%s6415_s4 + $0x7f0] sm:$0xff] }
 0x5b3   :  { %1948 = vmatpush.msrb.mxu0 %v1747_v20  ;;  %1968 = vmatpush.msrb.mxu1 %v1748_v22  ;;  %v1770_v20 = vld [vmem:[%s6415_s4 + $0x7f8] sm:$0xff]  ;;  %v1751_v22 = vld [vmem:[%s6415_s4 + $0x760] sm:$0xff] }
 0x5b4   :  { %1988 = vmatpush.msra.mxu2 %v1749_v2  ;;  %2008 = vmatpush.msra.mxu3 %v1750_v21  ;;  %v1752_v2 = vld [vmem:[%s6415_s4 + $0x768] sm:$0xff]  ;;  %v1753_v21 = vld [vmem:[%s6415_s4 + $0x770] sm:$0xff] }
 0x5b5   :  { %1949 = vmatpush.msrb.mxu0 %v1731_v12  ;;  %1969 = vmatpush.msrb.mxu1 %v1732_v25  ;;  %v1754_v12 = vld [vmem:[%s6415_s4 + $0x778] sm:$0xff]  ;;  %v1735_v25 = vld [vmem:[%s6415_s4 + $0x6e0] sm:$0xff] }
 0x5b6   :  { %1989 = vmatpush.msra.mxu2 %v1733_v33  ;;  %2009 = vmatpush.msra.mxu3 %v1734_v5  ;;  %v1736_v33 = vld [vmem:[%s6415_s4 + $0x6e8] sm:$0xff]  ;;  %v1737_v5 = vld [vmem:[%s6415_s4 + $0x6f0] sm:$0xff] }
 0x5b7   :  { %1950 = vmatpush.msrb.mxu0 %v1715_v24  ;;  %1970 = vmatpush.msrb.mxu1 %v1716_v3  ;;  %v1738_v24 = vld [vmem:[%s6415_s4 + $0x6f8] sm:$0xff]  ;;  %v1719_v3 = vld [vmem:[%s6415_s4 + $0x660] sm:$0xff] }
 0x5b8   :  { %1990 = vmatpush.msra.mxu2 %v1717_v44  ;;  %2010 = vmatpush.msra.mxu3 %v1718_v8  ;;  %v1720_v44 = vld [vmem:[%s6415_s4 + $0x668] sm:$0xff]  ;;  %v1721_v8 = vld [vmem:[%s6415_s4 + $0x670] sm:$0xff] }
 0x5b9   :  { %1883 = vmatmul.f32.vlgmr.msra.gmra.mxu0 %v5186_v16  ;;  %1903 = vmatmul.f32.vlgmr.msra.gmra.mxu1 %v5186_v16 }
 0x5ba   :  { %1923 = vmatmul.f32.vlgmr.msrb.gmra.mxu2 %v5186_v16  ;;  %1943 = vmatmul.f32.vlgmr.msrb.gmra.mxu3 %v5186_v16 }
 0x5bb   :  { %1951 = vmatpush.msrb.mxu0 %v1699_v17  ;;  %1971 = vmatpush.msrb.mxu1 %v1700_v29  ;;  %v1722_v17 = vld [vmem:[%s6415_s4 + $0x678] sm:$0xff]  ;;  %v1703_v29 = vld [vmem:[%s6415_s4 + $0x5e0] sm:$0xff] }
 0x5bc   :  { %1991 = vmatpush.msra.mxu2 %v1701_v26  ;;  %2011 = vmatpush.msra.mxu3 %v1702_v48  ;;  %v1704_v26 = vld [vmem:[%s6415_s4 + $0x5e8] sm:$0xff]  ;;  %v1705_v48 = vld [vmem:[%s6415_s4 + $0x5f0] sm:$0xff] }
 0x5bd   :  { %1952 = vmatpush.msrb.mxu0 %v1683_v18  ;;  %1972 = vmatpush.msrb.mxu1 %v1684_v4  ;;  %v1706_v18 = vld [vmem:[%s6415_s4 + $0x5f8] sm:$0xff]  ;;  %v1687_v4 = vld [vmem:[%s6415_s4 + $0x560] sm:$0xff] }
 0x5be   :  { %1992 = vmatpush.msra.mxu2 %v1685_v51  ;;  %2012 = vmatpush.msra.mxu3 %v1686_v32  ;;  %v1688_v51 = vld [vmem:[%s6415_s4 + $0x568] sm:$0xff]  ;;  %v1689_v32 = vld [vmem:[%s6415_s4 + $0x570] sm:$0xff] }
 0x5bf   :  { %1953 = vmatpush.msrb.mxu0 %v1667_v36  ;;  %1973 = vmatpush.msrb.mxu1 %v1668_v1  ;;  %v1690_v36 = vld [vmem:[%s6415_s4 + $0x578] sm:$0xff]  ;;  %v1671_v1 = vld [vmem:[%s6415_s4 + $0x4e0] sm:$0xff] }
 0x5c0   :  { %1993 = vmatpush.msra.mxu2 %v1669_v47  ;;  %2013 = vmatpush.msra.mxu3 %v1670_v9  ;;  %v1672_v47 = vld [vmem:[%s6415_s4 + $0x4e8] sm:$0xff]  ;;  %v1673_v9 = vld [vmem:[%s6415_s4 + $0x4f0] sm:$0xff] }
 0x5c1   :  { %1954 = vmatpush.msrb.mxu0 %v1651_v30  ;;  %1974 = vmatpush.msrb.mxu1 %v1652_v37  ;;  %v1674_v30 = vld [vmem:[%s6415_s4 + $0x4f8] sm:$0xff]  ;;  %v1655_v37 = vld [vmem:[%s6415_s4 + $0x460] sm:$0xff] }
 0x5c2   :  { %1994 = vmatpush.msra.mxu2 %v1653_v0  ;;  %2014 = vmatpush.msra.mxu3 %v1654_v34  ;;  %v1656_v0 = vld [vmem:[%s6415_s4 + $0x468] sm:$0xff]  ;;  %v1657_v34 = vld [vmem:[%s6415_s4 + $0x470] sm:$0xff] }
 0x5c3   :  { %1955 = vmatpush.msrb.mxu0 %v1635_v43  ;;  %1975 = vmatpush.msrb.mxu1 %v1636_v46  ;;  %v1658_v43 = vld [vmem:[%s6415_s4 + $0x478] sm:$0xff]  ;;  %v1639_v46 = vld [vmem:[%s6415_s4 + $0x3e0] sm:$0xff] }
 0x5c4   :  { %1995 = vmatpush.msra.mxu2 %v1637_v42  ;;  %2015 = vmatpush.msra.mxu3 %v1638_v49  ;;  %v1640_v42 = vld [vmem:[%s6415_s4 + $0x3e8] sm:$0xff]  ;;  %v1641_v49 = vld [vmem:[%s6415_s4 + $0x3f0] sm:$0xff] }
 0x5c5   :  { %1956 = vmatpush.msrb.mxu0 %v1619_v50  ;;  %1976 = vmatpush.msrb.mxu1 %v1620_v52  ;;  %v1642_v50 = vld [vmem:[%s6415_s4 + $0x3f8] sm:$0xff]  ;;  %v1623_v52 = vld [vmem:[%s6415_s4 + $0x360] sm:$0xff] }
 0x5c6   :  { %1996 = vmatpush.msra.mxu2 %v1621_v53  ;;  %2016 = vmatpush.msra.mxu3 %v1622_v54  ;;  %v1624_v53 = vld [vmem:[%s6415_s4 + $0x368] sm:$0xff]  ;;  %v1625_v54 = vld [vmem:[%s6415_s4 + $0x370] sm:$0xff] }
 0x5c7   :  { %1957 = vmatpush.msrb.mxu0 %v1603_v55  ;;  %1977 = vmatpush.msrb.mxu1 %v1604_v56  ;;  %v1626_v55 = vld [vmem:[%s6415_s4 + $0x378] sm:$0xff]  ;;  %v1607_v56 = vld [vmem:[%s6415_s4 + $0x2e0] sm:$0xff] }
 0x5c8   :  { %1997 = vmatpush.msra.mxu2 %v1605_v57  ;;  %2017 = vmatpush.msra.mxu3 %v1606_v58  ;;  %v1608_v57 = vld [vmem:[%s6415_s4 + $0x2e8] sm:$0xff]  ;;  %v1609_v58 = vld [vmem:[%s6415_s4 + $0x2f0] sm:$0xff] }
 0x5c9   :  { %1958 = vmatpush.msrb.mxu0 %v1587_v59  ;;  %1978 = vmatpush.msrb.mxu1 %v1588_v60  ;;  %v1610_v59 = vld [vmem:[%s6415_s4 + $0x2f8] sm:$0xff]  ;;  %v1591_v60 = vld [vmem:[%s6415_s4 + $0x260] sm:$0xff] }
 0x5ca   :  { %1998 = vmatpush.msra.mxu2 %v1589_v61  ;;  %2018 = vmatpush.msra.mxu3 %v1590_v62  ;;  %v1592_v61 = vld [vmem:[%s6415_s4 + $0x268] sm:$0xff]  ;;  %v1593_v62 = vld [vmem:[%s6415_s4 + $0x270] sm:$0xff] }
 0x5cb   :  { %1959 = vmatpush.msrb.mxu0 %v1571_v63  ;;  %1979 = vmatpush.msrb.mxu1 %v1572_v7  ;;  %v1594_v63 = vld [vmem:[%s6415_s4 + $0x278] sm:$0xff]  ;;  %v1575_v7 = vld [vmem:[%s6415_s4 + $0x1e0] sm:$0xff] }
 0x5cc   :  { %1999 = vmatpush.msra.mxu2 %v1573_v27  ;;  %2019 = vmatpush.msra.mxu3 %v1574_v41  ;;  %v1576_v27 = vld [vmem:[%s6415_s4 + $0x1e8] sm:$0xff]  ;;  %v1577_v41 = vld [vmem:[%s6415_s4 + $0x1f0] sm:$0xff] }
 0x5cd   :  { %1960 = vmatpush.msrb.mxu0 %v1555_v28  ;;  %1980 = vmatpush.msrb.mxu1 %v1556_v11  ;;  %v1578_v28 = vld [vmem:[%s6415_s4 + $0x1f8] sm:$0xff]  ;;  %v1559_v11 = vld [vmem:[%s6415_s4 + $0x160] sm:$0xff] }
 0x5ce   :  { %2000 = vmatpush.msra.mxu2 %v1557_v10  ;;  %2020 = vmatpush.msra.mxu3 %v1558_v35  ;;  %v1560_v10 = vld [vmem:[%s6415_s4 + $0x168] sm:$0xff]  ;;  %v1561_v35 = vld [vmem:[%s6415_s4 + $0x170] sm:$0xff] }
 0x5cf   :  { %1961 = vmatpush.msrb.mxu0 %v1539_v45  ;;  %1981 = vmatpush.msrb.mxu1 %v1540_v31  ;;  %v1562_v45 = vld [vmem:[%s6415_s4 + $0x178] sm:$0xff]  ;;  %v1543_v31 = vld [vmem:[%s6415_s4 + $0xe0] sm:$0xff] }
 0x5d0   :  { %2001 = vmatpush.msra.mxu2 %v1541_v38  ;;  %2021 = vmatpush.msra.mxu3 %v1542_v14  ;;  %v1544_v38 = vld [vmem:[%s6415_s4 + $0xe8] sm:$0xff]  ;;  %v1545_v14 = vld [vmem:[%s6415_s4 + $0xf0] sm:$0xff] }
 0x5d1   :  { %1962 = vmatpush.msrb.mxu0 %v1523_v40  ;;  %1982 = vmatpush.msrb.mxu1 %v1524_v39  ;;  %v1546_v40 = vld [vmem:[%s6415_s4 + $0xf8] sm:$0xff]  ;;  %v1527_v39 = vld [vmem:[%s6415_s4 + $0x60] sm:$0xff] }
 0x5d2   :  { %2002 = vmatpush.msra.mxu2 %v1525_v15  ;;  %2022 = vmatpush.msra.mxu3 %v1526_v19  ;;  %v1528_v15 = vld [vmem:[%s6415_s4 + $0x68] sm:$0xff]  ;;  %v1529_v19 = vld [vmem:[%s6415_s4 + $0x70] sm:$0xff] }
 0x5d3   :  { %1963 = vmatmul.f32.vlgmr.msrb.gmra.mxu0 %v5186_v16  ;;  %1983 = vmatmul.f32.vlgmr.msrb.gmra.mxu1 %v5186_v16 }
 0x5d4   :  { %2003 = vmatmul.f32.vlgmr.msra.gmra.mxu2 %v5186_v16  ;;  %2023 = vmatmul.f32.vlgmr.msra.gmra.mxu3 %v5186_v16 }
 0x5d5   :  { %2027 = vmatpush.msra.mxu0 %v1767_v23  ;;  %2047 = vmatpush.msra.mxu1 %v1768_v6  ;;  %v1530_v23 = vld [vmem:[%s6415_s4 + $0x78] sm:$0xff]  ;;  %v5587_v6 = vld [vmem:[%s6416_s6 + $0x1e0] sm:$0xff] }
 0x5d6   :  { %2067 = vmatpush.msrb.mxu2 %v1769_v13  ;;  %2087 = vmatpush.msrb.mxu3 %v1770_v20  ;;  %v5592_v13 = vld [vmem:[%s6416_s6 + $0x1e8] sm:$0xff]  ;;  %v5599_v20 = vld [vmem:[%s6416_s6 + $0x1f0] sm:$0xff] }
 0x5d7   :  { %2028 = vmatpush.msra.mxu0 %v1751_v22  ;;  %2048 = vmatpush.msra.mxu1 %v1752_v2  ;;  %v5604_v22 = vld [vmem:[%s6416_s6 + $0x1f8] sm:$0xff]  ;;  %v5611_v2 = vld [vmem:[%s6416_s6 + $0x1c0] sm:$0xff] }
 0x5d8   :  { %2068 = vmatpush.msrb.mxu2 %v1753_v21  ;;  %2088 = vmatpush.msrb.mxu3 %v1754_v12  ;;  %v5616_v21 = vld [vmem:[%s6416_s6 + $0x1c8] sm:$0xff]  ;;  %v5623_v12 = vld [vmem:[%s6416_s6 + $0x1d0] sm:$0xff] }
 0x5d9   :  { %2029 = vmatpush.msra.mxu0 %v1735_v25  ;;  %2049 = vmatpush.msra.mxu1 %v1736_v33  ;;  %v5635_v25 = vld [vmem:[%s6416_s6 + $0x1a0] sm:$0xff]  ;;  %v5640_v33 = vld [vmem:[%s6416_s6 + $0x1a8] sm:$0xff] }
 0x5da   :  { %2069 = vmatpush.msrb.mxu2 %v1737_v5  ;;  %2089 = vmatpush.msrb.mxu3 %v1738_v24  ;;  %v5647_v5 = vld [vmem:[%s6416_s6 + $0x1b0] sm:$0xff]  ;;  %v5652_v24 = vld [vmem:[%s6416_s6 + $0x1b8] sm:$0xff] }
 0x5db   :  { %2030 = vmatpush.msra.mxu0 %v1719_v3  ;;  %2050 = vmatpush.msra.mxu1 %v1720_v44  ;;  %v5659_v3 = vld [vmem:[%s6416_s6 + $0x180] sm:$0xff]  ;;  %v5664_v44 = vld [vmem:[%s6416_s6 + $0x188] sm:$0xff] }
 0x5dc   :  { %2070 = vmatpush.msrb.mxu2 %v1721_v8  ;;  %2090 = vmatpush.msrb.mxu3 %v1722_v17  ;;  %v5671_v8 = vld [vmem:[%s6416_s6 + $0x190] sm:$0xff]  ;;  %v5676_v17 = vld [vmem:[%s6416_s6 + $0x198] sm:$0xff] }
 0x5dd   :  { %2031 = vmatpush.msra.mxu0 %v1703_v29  ;;  %2051 = vmatpush.msra.mxu1 %v1704_v26  ;;  %v5683_v29 = vld [vmem:[%s6416_s6 + $0x160] sm:$0xff]  ;;  %v5688_v26 = vld [vmem:[%s6416_s6 + $0x168] sm:$0xff] }
 0x5de   :  { %2071 = vmatpush.msrb.mxu2 %v1705_v48  ;;  %2091 = vmatpush.msrb.mxu3 %v1706_v18  ;;  %v5695_v48 = vld [vmem:[%s6416_s6 + $0x170] sm:$0xff]  ;;  %v5700_v18 = vld [vmem:[%s6416_s6 + $0x178] sm:$0xff] }
 0x5df   :  { %2032 = vmatpush.msra.mxu0 %v1687_v4  ;;  %2052 = vmatpush.msra.mxu1 %v1688_v51  ;;  %v5707_v4 = vld [vmem:[%s6416_s6 + $0x140] sm:$0xff]  ;;  %v5712_v51 = vld [vmem:[%s6416_s6 + $0x148] sm:$0xff] }
 0x5e0   :  { %2072 = vmatpush.msrb.mxu2 %v1689_v32  ;;  %2092 = vmatpush.msrb.mxu3 %v1690_v36  ;;  %v5719_v32 = vld [vmem:[%s6416_s6 + $0x150] sm:$0xff]  ;;  %v5724_v36 = vld [vmem:[%s6416_s6 + $0x158] sm:$0xff] }
 0x5e1   :  { %2033 = vmatpush.msra.mxu0 %v1671_v1  ;;  %2053 = vmatpush.msra.mxu1 %v1672_v47  ;;  %v5731_v1 = vld [vmem:[%s6416_s6 + $0x120] sm:$0xff]  ;;  %v5736_v47 = vld [vmem:[%s6416_s6 + $0x128] sm:$0xff] }
 0x5e2   :  { %2073 = vmatpush.msrb.mxu2 %v1673_v9  ;;  %2093 = vmatpush.msrb.mxu3 %v1674_v30  ;;  %v5743_v9 = vld [vmem:[%s6416_s6 + $0x130] sm:$0xff]  ;;  %v5748_v30 = vld [vmem:[%s6416_s6 + $0x138] sm:$0xff] }
 0x5e3   :  { %2034 = vmatpush.msra.mxu0 %v1655_v37  ;;  %2054 = vmatpush.msra.mxu1 %v1656_v0  ;;  %v5755_v37 = vld [vmem:[%s6416_s6 + $0x100] sm:$0xff]  ;;  %v5760_v0 = vld [vmem:[%s6416_s6 + $0x108] sm:$0xff] }
 0x5e4   :  { %2074 = vmatpush.msrb.mxu2 %v1657_v34  ;;  %2094 = vmatpush.msrb.mxu3 %v1658_v43  ;;  %v5767_v34 = vld [vmem:[%s6416_s6 + $0x110] sm:$0xff]  ;;  %v5772_v43 = vld [vmem:[%s6416_s6 + $0x118] sm:$0xff] }
 0x5e5   :  { %2035 = vmatpush.msra.mxu0 %v1639_v46  ;;  %2055 = vmatpush.msra.mxu1 %v1640_v42  ;;  %v5779_v46 = vld [vmem:[%s6416_s6 + $0xe0] sm:$0xff]  ;;  %v5784_v42 = vld [vmem:[%s6416_s6 + $0xe8] sm:$0xff] }
 0x5e6   :  { %2075 = vmatpush.msrb.mxu2 %v1641_v49  ;;  %2095 = vmatpush.msrb.mxu3 %v1642_v50  ;;  %v5791_v49 = vld [vmem:[%s6416_s6 + $0xf0] sm:$0xff]  ;;  %v5796_v50 = vld [vmem:[%s6416_s6 + $0xf8] sm:$0xff] }
 0x5e7   :  { %2036 = vmatpush.msra.mxu0 %v1623_v52  ;;  %2056 = vmatpush.msra.mxu1 %v1624_v53  ;;  %v5803_v52 = vld [vmem:[%s6416_s6 + $0xc0] sm:$0xff]  ;;  %v5808_v53 = vld [vmem:[%s6416_s6 + $0xc8] sm:$0xff] }
 0x5e8   :  { %2076 = vmatpush.msrb.mxu2 %v1625_v54  ;;  %2096 = vmatpush.msrb.mxu3 %v1626_v55  ;;  %v5815_v54 = vld [vmem:[%s6416_s6 + $0xd0] sm:$0xff]  ;;  %v5820_v55 = vld [vmem:[%s6416_s6 + $0xd8] sm:$0xff] }
 0x5e9   :  { %2037 = vmatpush.msra.mxu0 %v1607_v56  ;;  %2057 = vmatpush.msra.mxu1 %v1608_v57  ;;  %6743 = vst [vmem:[#allocation38_spill] sm:$0xff] %v5815_v54  ;;  %v5827_v56 = vld [vmem:[%s6416_s6 + $0xa0] sm:$0xff]  ;;  %v5832_v57 = vld [vmem:[%s6416_s6 + $0xa8] sm:$0xff] }
 0x5ea   :  { %2077 = vmatpush.msrb.mxu2 %v1609_v58  ;;  %2097 = vmatpush.msrb.mxu3 %v1610_v59  ;;  %6744 = vst [vmem:[#allocation39_spill] sm:$0xff] %v5820_v55  ;;  %v5839_v58 = vld [vmem:[%s6416_s6 + $0xb0] sm:$0xff]  ;;  %v5844_v59 = vld [vmem:[%s6416_s6 + $0xb8] sm:$0xff] }
 0x5eb   :  { %2038 = vmatpush.msra.mxu0 %v1591_v60  ;;  %2058 = vmatpush.msra.mxu1 %v1592_v61  ;;  %6745 = vst [vmem:[#allocation36_spill] sm:$0xff] %v5827_v56  ;;  %v5851_v60 = vld [vmem:[%s6416_s6 + $0x80] sm:$0xff]  ;;  %v5856_v61 = vld [vmem:[%s6416_s6 + $0x88] sm:$0xff] }
 0x5ec   :  { %2078 = vmatpush.msrb.mxu2 %v1593_v62  ;;  %2098 = vmatpush.msrb.mxu3 %v1594_v63  ;;  %6746 = vst [vmem:[#allocation37_spill] sm:$0xff] %v5832_v57  ;;  %v5863_v62 = vld [vmem:[%s6416_s6 + $0x90] sm:$0xff]  ;;  %v5868_v63 = vld [vmem:[%s6416_s6 + $0x98] sm:$0xff] }
 0x5ed   :  { %2039 = vmatpush.msra.mxu0 %v1575_v7  ;;  %2059 = vmatpush.msra.mxu1 %v1576_v27  ;;  %6747 = vst [vmem:[#allocation41_spill] sm:$0xff] %v5839_v58  ;;  %v5875_v7 = vld [vmem:[%s6416_s6 + $0x60] sm:$0xff]  ;;  %v5880_v27 = vld [vmem:[%s6416_s6 + $0x68] sm:$0xff] }
 0x5ee   :  { %2079 = vmatpush.msrb.mxu2 %v1577_v41  ;;  %2099 = vmatpush.msrb.mxu3 %v1578_v28  ;;  %6748 = vst [vmem:[#allocation42_spill] sm:$0xff] %v5844_v59  ;;  %v5887_v41 = vld [vmem:[%s6416_s6 + $0x70] sm:$0xff]  ;;  %v5892_v28 = vld [vmem:[%s6416_s6 + $0x78] sm:$0xff] }
 0x5ef   :  { %2040 = vmatpush.msra.mxu0 %v1559_v11  ;;  %2060 = vmatpush.msra.mxu1 %v1560_v10  ;;  %6749 = vst [vmem:[#allocation40_spill] sm:$0xff] %v5851_v60  ;;  %v5899_v11 = vld [vmem:[%s6416_s6 + $0x40] sm:$0xff]  ;;  %v5904_v10 = vld [vmem:[%s6416_s6 + $0x48] sm:$0xff] }
 0x5f0   :  { %2080 = vmatpush.msrb.mxu2 %v1561_v35  ;;  %2100 = vmatpush.msrb.mxu3 %v1562_v45  ;;  %6750 = vst [vmem:[#allocation43_spill] sm:$0xff] %v5856_v61  ;;  %v5911_v35 = vld [vmem:[%s6416_s6 + $0x50] sm:$0xff]  ;;  %v5916_v45 = vld [vmem:[%s6416_s6 + $0x58] sm:$0xff] }
 0x5f1   :  { %2041 = vmatpush.msra.mxu0 %v1543_v31  ;;  %2061 = vmatpush.msra.mxu1 %v1544_v38  ;;  %6751 = vst [vmem:[#allocation44_spill] sm:$0xff] %v5863_v62  ;;  %v5923_v31 = vld [vmem:[%s6416_s6 + $0x20] sm:$0xff]  ;;  %v5928_v38 = vld [vmem:[%s6416_s6 + $0x28] sm:$0xff] }
 0x5f2   :  { %2081 = vmatpush.msrb.mxu2 %v1545_v14  ;;  %2101 = vmatpush.msrb.mxu3 %v1546_v40  ;;  %6752 = vst [vmem:[#allocation45_spill] sm:$0xff] %v5868_v63  ;;  %v5935_v14 = vld [vmem:[%s6416_s6 + $0x30] sm:$0xff]  ;;  %v5940_v40 = vld [vmem:[%s6416_s6 + $0x38] sm:$0xff] }
 0x5f3   :  { %2042 = vmatpush.msra.mxu0 %v1527_v39  ;;  %2062 = vmatpush.msra.mxu1 %v1528_v15  ;;  %6753 = vst [vmem:[#allocation3_spill] sm:$0xff] %v5875_v7  ;;  %v5947_v39 = vld [vmem:[%s6416_s6] sm:$0xff]  ;;  %v5952_v15 = vld [vmem:[%s6416_s6 + $0x8] sm:$0xff] }
 0x5f4   :  { %2082 = vmatpush.msrb.mxu2 %v1529_v19  ;;  %2102 = vmatpush.msrb.mxu3 %v1530_v23  ;;  %6754 = vst [vmem:[#allocation4_spill] sm:$0xff] %v5880_v27  ;;  %v5959_v19 = vld [vmem:[%s6416_s6 + $0x10] sm:$0xff]  ;;  %v5964_v23 = vld [vmem:[%s6416_s6 + $0x18] sm:$0xff] }
 0x5f5   :  { %2043 = vmatmul.f32.vlgmr.msra.gmra.mxu0 %v5186_v16  ;;  %2063 = vmatmul.f32.vlgmr.msra.gmra.mxu1 %v5186_v16  ;;  %6755 = vst [vmem:[#allocation46_spill] sm:$0xff] %v5887_v41 }
 0x5f6   :  { %2083 = vmatmul.f32.vlgmr.msrb.gmra.mxu2 %v5186_v16  ;;  %2103 = vmatmul.f32.vlgmr.msrb.gmra.mxu3 %v5186_v16  ;;  %v5628_v16 = vld [vmem:[%s6416_s6 + $0x1d8] sm:$0xff]  ;;  %6756 = vst [vmem:[#allocation47_spill] sm:$0xff] %v5892_v28 }
 0x5f7   :  { %2171 = vmatpush.msrb.mxu0 %v5587_v6  ;;  %2191 = vmatpush.msrb.mxu1 %v5592_v13  ;;  %6757 = vst [vmem:[#allocation11_spill] sm:$0xff] %v5899_v11 }
 0x5f8   :  { %2211 = vmatpush.msra.mxu2 %v5599_v20  ;;  %2231 = vmatpush.msra.mxu3 %v5604_v22  ;;  %6758 = vst [vmem:[#allocation12_spill] sm:$0xff] %v5904_v10 }
 0x5f9   :  { %2172 = vmatpush.msrb.mxu0 %v5611_v2  ;;  %2192 = vmatpush.msrb.mxu1 %v5616_v21  ;;  %6759 = vst [vmem:[#allocation2_spill] sm:$0xff] %v5911_v35 }
 0x5fa   :  { %2212 = vmatpush.msra.mxu2 %v5623_v12  ;;  %2232 = vmatpush.msra.mxu3 %v5628_v16  ;;  %6760 = vst [vmem:[#allocation6_spill] sm:$0xff] %v5916_v45 }
 0x5fb   :  { %2173 = vmatpush.msrb.mxu0 %v5635_v25  ;;  %2193 = vmatpush.msrb.mxu1 %v5640_v33  ;;  %6761 = vst [vmem:[#allocation23_spill] sm:$0xff] %v5923_v31 }
 0x5fc   :  { %2213 = vmatpush.msra.mxu2 %v5647_v5  ;;  %2233 = vmatpush.msra.mxu3 %v5652_v24  ;;  %6762 = vst [vmem:[#allocation24_spill] sm:$0xff] %v5928_v38 }
 0x5fd   :  { %2174 = vmatpush.msrb.mxu0 %v5659_v3  ;;  %2194 = vmatpush.msrb.mxu1 %v5664_v44  ;;  %6763 = vst [vmem:[#allocation17_spill] sm:$0xff] %v5935_v14 }
 0x5fe   :  { %2214 = vmatpush.msra.mxu2 %v5671_v8  ;;  %2234 = vmatpush.msra.mxu3 %v5676_v17  ;;  %6764 = vst [vmem:[#allocation18_spill] sm:$0xff] %v5940_v40 }
 0x5ff   :  { %2175 = vmatpush.msrb.mxu0 %v5683_v29  ;;  %2195 = vmatpush.msrb.mxu1 %v5688_v26  ;;  %6765 = vst [vmem:[#allocation13_spill] sm:$0xff] %v5947_v39 }
 0x600   :  { %2215 = vmatpush.msra.mxu2 %v5695_v48  ;;  %2235 = vmatpush.msra.mxu3 %v5700_v18  ;;  %6766 = vst [vmem:[#allocation14_spill] sm:$0xff] %v5952_v15 }
 0x601   :  { %2176 = vmatpush.msrb.mxu0 %v5707_v4  ;;  %2196 = vmatpush.msrb.mxu1 %v5712_v51  ;;  %6767 = vst [vmem:[#allocation7_spill] sm:$0xff] %v5959_v19 }
 0x602   :  { %2216 = vmatpush.msra.mxu2 %v5719_v32  ;;  %2236 = vmatpush.msra.mxu3 %v5724_v36  ;;  %6768 = vst [vmem:[#allocation8_spill] sm:$0xff] %v5964_v23 }
 0x603   :  { %2177 = vmatpush.msrb.mxu0 %v5731_v1  ;;  %2197 = vmatpush.msrb.mxu1 %v5736_v47 }
 0x604   :  { %2217 = vmatpush.msra.mxu2 %v5743_v9  ;;  %2237 = vmatpush.msra.mxu3 %v5748_v30 }
 0x605   :  { %2178 = vmatpush.msrb.mxu0 %v5755_v37  ;;  %2198 = vmatpush.msrb.mxu1 %v5760_v0 }
 0x606   :  { %2218 = vmatpush.msra.mxu2 %v5767_v34  ;;  %2238 = vmatpush.msra.mxu3 %v5772_v43 }
 0x607   :  { %2179 = vmatpush.msrb.mxu0 %v5779_v46  ;;  %2199 = vmatpush.msrb.mxu1 %v5784_v42 }
 0x608   :  { %2219 = vmatpush.msra.mxu2 %v5791_v49  ;;  %2239 = vmatpush.msra.mxu3 %v5796_v50 }
 0x609   :  { %2180 = vmatpush.msrb.mxu0 %v5803_v52  ;;  %2200 = vmatpush.msrb.mxu1 %v5808_v53 }
 0x60a   :  { %2220 = vmatpush.msra.mxu2 %v5815_v54  ;;  %2240 = vmatpush.msra.mxu3 %v5820_v55 }
 0x60b   :  { %2181 = vmatpush.msrb.mxu0 %v5827_v56  ;;  %2201 = vmatpush.msrb.mxu1 %v5832_v57 }
 0x60c   :  { %2221 = vmatpush.msra.mxu2 %v5839_v58  ;;  %2241 = vmatpush.msra.mxu3 %v5844_v59 }
 0x60d   :  { %2182 = vmatpush.msrb.mxu0 %v5851_v60  ;;  %2202 = vmatpush.msrb.mxu1 %v5856_v61 }
 0x60e   :  { %2222 = vmatpush.msra.mxu2 %v5863_v62  ;;  %2242 = vmatpush.msra.mxu3 %v5868_v63 }
 0x60f   :  { %2183 = vmatpush.msrb.mxu0 %v5875_v7  ;;  %2203 = vmatpush.msrb.mxu1 %v5880_v27 }
 0x610   :  { %2223 = vmatpush.msra.mxu2 %v5887_v41  ;;  %2243 = vmatpush.msra.mxu3 %v5892_v28 }
 0x611   :  { %2184 = vmatpush.msrb.mxu0 %v5899_v11  ;;  %2204 = vmatpush.msrb.mxu1 %v5904_v10 }
 0x612   :  { %2224 = vmatpush.msra.mxu2 %v5911_v35  ;;  %2244 = vmatpush.msra.mxu3 %v5916_v45 }
 0x613   :  { %2185 = vmatpush.msrb.mxu0 %v5923_v31  ;;  %2205 = vmatpush.msrb.mxu1 %v5928_v38  ;;  %v6769_v38 = vmov 0.0  }
 0x614   :  { %2225 = vmatpush.msra.mxu2 %v5935_v14  ;;  %2245 = vmatpush.msra.mxu3 %v5940_v40 }
 0x615   :  { %2186 = vmatpush.msrb.mxu0 %v5947_v39  ;;  %2206 = vmatpush.msrb.mxu1 %v5952_v15 }
 0x616   :  { %2226 = vmatpush.msra.mxu2 %v5959_v19  ;;  %2246 = vmatpush.msra.mxu3 %v5964_v23 }
 0x617   :  { %2187 = vmatmul.f32.vlgmr.msrb.gmra.mxu0 %v6769_v38  ;;  %2207 = vmatmul.f32.vlgmr.msrb.gmra.mxu1 %v6769_v38 }
 0x618   :  { %2227 = vmatmul.f32.vlgmr.msra.gmra.mxu2 %v6769_v38  ;;  %2247 = vmatmul.f32.vlgmr.msra.gmra.mxu3 %v6769_v38  ;;  %v6770_v38 = vld [vmem:[#allocation24_spill] sm:$0xff] }
 0x619   :  { %2318 = vmatpush.msra.mxu0 %v5587_v6  ;;  %2338 = vmatpush.msra.mxu1 %v5592_v13 }
 0x61a   :  { %2358 = vmatpush.msrb.mxu2 %v5599_v20  ;;  %2378 = vmatpush.msrb.mxu3 %v5604_v22 }
 0x61b   :  { %2319 = vmatpush.msra.mxu0 %v5611_v2  ;;  %2339 = vmatpush.msra.mxu1 %v5616_v21 }
 0x61c   :  { %2359 = vmatpush.msrb.mxu2 %v5623_v12  ;;  %2379 = vmatpush.msrb.mxu3 %v5628_v16 }
 0x61d   :  { %2320 = vmatpush.msra.mxu0 %v5635_v25  ;;  %2340 = vmatpush.msra.mxu1 %v5640_v33 }
 0x61e   :  { %2360 = vmatpush.msrb.mxu2 %v5647_v5  ;;  %2380 = vmatpush.msrb.mxu3 %v5652_v24 }
 0x61f   :  { %2321 = vmatpush.msra.mxu0 %v5659_v3  ;;  %2341 = vmatpush.msra.mxu1 %v5664_v44 }
 0x620   :  { %2361 = vmatpush.msrb.mxu2 %v5671_v8  ;;  %2381 = vmatpush.msrb.mxu3 %v5676_v17 }
 0x621   :  { %2322 = vmatpush.msra.mxu0 %v5683_v29  ;;  %2342 = vmatpush.msra.mxu1 %v5688_v26 }
 0x622   :  { %2362 = vmatpush.msrb.mxu2 %v5695_v48  ;;  %2382 = vmatpush.msrb.mxu3 %v5700_v18 }
 0x623   :  { %2323 = vmatpush.msra.mxu0 %v5707_v4  ;;  %2343 = vmatpush.msra.mxu1 %v5712_v51 }
 0x624   :  { %2363 = vmatpush.msrb.mxu2 %v5719_v32  ;;  %2383 = vmatpush.msrb.mxu3 %v5724_v36 }
 0x625   :  { %2324 = vmatpush.msra.mxu0 %v5731_v1  ;;  %2344 = vmatpush.msra.mxu1 %v5736_v47 }
 0x626   :  { %2364 = vmatpush.msrb.mxu2 %v5743_v9  ;;  %2384 = vmatpush.msrb.mxu3 %v5748_v30 }
 0x627   :  { %2325 = vmatpush.msra.mxu0 %v5755_v37  ;;  %2345 = vmatpush.msra.mxu1 %v5760_v0 }
 0x628   :  { %2365 = vmatpush.msrb.mxu2 %v5767_v34  ;;  %2385 = vmatpush.msrb.mxu3 %v5772_v43 }
 0x629   :  { %2326 = vmatpush.msra.mxu0 %v5779_v46  ;;  %2346 = vmatpush.msra.mxu1 %v5784_v42 }
 0x62a   :  { %2366 = vmatpush.msrb.mxu2 %v5791_v49  ;;  %2386 = vmatpush.msrb.mxu3 %v5796_v50 }
 0x62b   :  { %2327 = vmatpush.msra.mxu0 %v5803_v52  ;;  %2347 = vmatpush.msra.mxu1 %v5808_v53 }
 0x62c   :  { %2367 = vmatpush.msrb.mxu2 %v5815_v54  ;;  %2387 = vmatpush.msrb.mxu3 %v5820_v55 }
 0x62d   :  { %2328 = vmatpush.msra.mxu0 %v5827_v56  ;;  %2348 = vmatpush.msra.mxu1 %v5832_v57 }
 0x62e   :  { %2368 = vmatpush.msrb.mxu2 %v5839_v58  ;;  %2388 = vmatpush.msrb.mxu3 %v5844_v59 }
 0x62f   :  { %2329 = vmatpush.msra.mxu0 %v5851_v60  ;;  %2349 = vmatpush.msra.mxu1 %v5856_v61 }
 0x630   :  { %2369 = vmatpush.msrb.mxu2 %v5863_v62  ;;  %2389 = vmatpush.msrb.mxu3 %v5868_v63 }
 0x631   :  { %2330 = vmatpush.msra.mxu0 %v5875_v7  ;;  %2350 = vmatpush.msra.mxu1 %v5880_v27 }
 0x632   :  { %2370 = vmatpush.msrb.mxu2 %v5887_v41  ;;  %2390 = vmatpush.msrb.mxu3 %v5892_v28 }
 0x633   :  { %2331 = vmatpush.msra.mxu0 %v5899_v11  ;;  %2351 = vmatpush.msra.mxu1 %v5904_v10 }
 0x634   :  { %2371 = vmatpush.msrb.mxu2 %v5911_v35  ;;  %2391 = vmatpush.msrb.mxu3 %v5916_v45 }
 0x635   :  { %2332 = vmatpush.msra.mxu0 %v5923_v31  ;;  %2352 = vmatpush.msra.mxu1 %v6770_v38 }
 0x636   :  { %2372 = vmatpush.msrb.mxu2 %v5935_v14  ;;  %2392 = vmatpush.msrb.mxu3 %v5940_v40 }
 0x637   :  { %2333 = vmatpush.msra.mxu0 %v5947_v39  ;;  %2353 = vmatpush.msra.mxu1 %v5952_v15 }
 0x638   :  { %2373 = vmatpush.msrb.mxu2 %v5959_v19  ;;  %2393 = vmatpush.msrb.mxu3 %v5964_v23 }
 0x639   :  { %2465 = vmatpush.msrb.mxu0 %v5587_v6  ;;  %2485 = vmatpush.msrb.mxu1 %v5592_v13 }
 0x63a   :  { %2505 = vmatpush.msra.mxu2 %v5599_v20  ;;  %2525 = vmatpush.msra.mxu3 %v5604_v22 }
 0x63b   :  { %2466 = vmatpush.msrb.mxu0 %v5611_v2  ;;  %2486 = vmatpush.msrb.mxu1 %v5616_v21 }
 0x63c   :  { %2506 = vmatpush.msra.mxu2 %v5623_v12  ;;  %2526 = vmatpush.msra.mxu3 %v5628_v16 }
 0x63d   :  { %2467 = vmatpush.msrb.mxu0 %v5635_v25  ;;  %2487 = vmatpush.msrb.mxu1 %v5640_v33 }
 0x63e   :  { %2507 = vmatpush.msra.mxu2 %v5647_v5  ;;  %2527 = vmatpush.msra.mxu3 %v5652_v24 }
 0x63f   :  { %2468 = vmatpush.msrb.mxu0 %v5659_v3  ;;  %2488 = vmatpush.msrb.mxu1 %v5664_v44 }
 0x640   :  { %2508 = vmatpush.msra.mxu2 %v5671_v8  ;;  %2528 = vmatpush.msra.mxu3 %v5676_v17 }
 0x641   :  { %2469 = vmatpush.msrb.mxu0 %v5683_v29  ;;  %2489 = vmatpush.msrb.mxu1 %v5688_v26 }
 0x642   :  { %2509 = vmatpush.msra.mxu2 %v5695_v48  ;;  %2529 = vmatpush.msra.mxu3 %v5700_v18 }
 0x643   :  { %2470 = vmatpush.msrb.mxu0 %v5707_v4  ;;  %2490 = vmatpush.msrb.mxu1 %v5712_v51 }
 0x644   :  { %2510 = vmatpush.msra.mxu2 %v5719_v32  ;;  %2530 = vmatpush.msra.mxu3 %v5724_v36 }
 0x645   :  { %2471 = vmatpush.msrb.mxu0 %v5731_v1  ;;  %2491 = vmatpush.msrb.mxu1 %v5736_v47 }
 0x646   :  { %2511 = vmatpush.msra.mxu2 %v5743_v9  ;;  %2531 = vmatpush.msra.mxu3 %v5748_v30 }
 0x647   :  { %2472 = vmatpush.msrb.mxu0 %v5755_v37  ;;  %2492 = vmatpush.msrb.mxu1 %v5760_v0 }
 0x648   :  { %2512 = vmatpush.msra.mxu2 %v5767_v34  ;;  %2532 = vmatpush.msra.mxu3 %v5772_v43 }
 0x649   :  { %2473 = vmatpush.msrb.mxu0 %v5779_v46  ;;  %2493 = vmatpush.msrb.mxu1 %v5784_v42 }
 0x64a   :  { %2513 = vmatpush.msra.mxu2 %v5791_v49  ;;  %2533 = vmatpush.msra.mxu3 %v5796_v50 }
 0x64b   :  { %2474 = vmatpush.msrb.mxu0 %v5803_v52  ;;  %2494 = vmatpush.msrb.mxu1 %v5808_v53 }
 0x64c   :  { %2514 = vmatpush.msra.mxu2 %v5815_v54  ;;  %2534 = vmatpush.msra.mxu3 %v5820_v55 }
 0x64d   :  { %2475 = vmatpush.msrb.mxu0 %v5827_v56  ;;  %2495 = vmatpush.msrb.mxu1 %v5832_v57 }
 0x64e   :  { %2515 = vmatpush.msra.mxu2 %v5839_v58  ;;  %2535 = vmatpush.msra.mxu3 %v5844_v59 }
 0x64f   :  { %2476 = vmatpush.msrb.mxu0 %v5851_v60  ;;  %2496 = vmatpush.msrb.mxu1 %v5856_v61 }
 0x650   :  { %2516 = vmatpush.msra.mxu2 %v5863_v62  ;;  %2536 = vmatpush.msra.mxu3 %v5868_v63 }
 0x651   :  { %2477 = vmatpush.msrb.mxu0 %v5875_v7  ;;  %2497 = vmatpush.msrb.mxu1 %v5880_v27 }
 0x652   :  { %2517 = vmatpush.msra.mxu2 %v5887_v41  ;;  %2537 = vmatpush.msra.mxu3 %v5892_v28 }
 0x653   :  { %2478 = vmatpush.msrb.mxu0 %v5899_v11  ;;  %2498 = vmatpush.msrb.mxu1 %v5904_v10  ;;  %v1804_v10 = vpop.f32.mrf.mxu0  ;;  %v1844_v11 = vpop.f32.mrf.mxu2 }
 0x654   :  { %2518 = vmatpush.msra.mxu2 %v5911_v35  ;;  %2538 = vmatpush.msra.mxu3 %v5916_v45  ;;  %v1824_v35 = vpop.f32.mrf.mxu1 }
 0x655   :  { %2479 = vmatpush.msrb.mxu0 %v5923_v31  ;;  %2499 = vmatpush.msrb.mxu1 %v6770_v38  ;;  %v1864_v38 = vpop.f32.mrf.mxu3 }
 0x656   :  { %2519 = vmatpush.msra.mxu2 %v5935_v14  ;;  %2539 = vmatpush.msra.mxu3 %v5940_v40 }
 0x657   :  { %2480 = vmatpush.msrb.mxu0 %v5947_v39  ;;  %2500 = vmatpush.msrb.mxu1 %v5952_v15 }
 0x658   :  { %2520 = vmatpush.msra.mxu2 %v5959_v19  ;;  %2540 = vmatpush.msra.mxu3 %v5964_v23 }
 0x65b   :  { %v6104_v45 = vpop.f32.mrf.mxu0  ;;  %v6108_v28 = vpop.f32.mrf.mxu2 }
 0x65c   :  { %6771 = vst [vmem:[#allocation25_spill] sm:$0xff] %v6104_v45  ;;  %v6106_v31 = vpop.f32.mrf.mxu1  ;;  %v1771_v45 = vld [vmem:[%s6417_s5] sm:$0xff] }
 0x65d   :  { %6772 = vst [vmem:[#allocation26_spill] sm:$0xff] %v6106_v31  ;;  %v6120_v23 = vpop.f32.mrf.mxu3  ;;  %v1805_v31 = vadd.f32 %v1804_v10, %v1771_v45 }
 0x65e   :  { %6773 = vst [vmem:[#allocation19_spill] sm:$0xff] %v6108_v28  ;;  %v1772_v28 = vld [vmem:[%s6417_s5 + $0x8] sm:$0xff] }
 0x65f   :  { %6779 = vst [vmem:[#allocation27_spill] sm:$0xff] %v6120_v23  ;;  %v1773_v23 = vld [vmem:[%s6417_s5 + $0x10] sm:$0xff] }
 0x660   :  { %v1845_v62 = vadd.f32 %v1844_v11, %v1773_v23 }
 0x663   :  { %v6110_v14 = vpop.f32.mrf.mxu0  ;;  %v6114_v39 = vpop.f32.mrf.mxu2 }
 0x664   :  { %6774 = vst [vmem:[#allocation20_spill] sm:$0xff] %v6110_v14  ;;  %v6112_v40 = vpop.f32.mrf.mxu1  ;;  %v1825_v14 = vadd.f32 %v1824_v35, %v1772_v28 }
 0x665   :  { %6775 = vst [vmem:[#allocation15_spill] sm:$0xff] %v6112_v40  ;;  %v6130_v27 = vpop.f32.mrf.mxu3 }
 0x666   :  { %6776 = vst [vmem:[#allocation16_spill] sm:$0xff] %v6114_v39 }
 0x667   :  { %6781 = vst [vmem:[#allocation21_spill] sm:$0xff] %v6130_v27 }
 0x672   :  { %v6116_v15 = vpop.f32.mrf.mxu0  ;;  %v6118_v19 = vpop.f32.mrf.mxu1 }
 0x673   :  { %6777 = vst [vmem:[#allocation9_spill] sm:$0xff] %v6116_v15 }
 0x674   :  { %6778 = vst [vmem:[#allocation10_spill] sm:$0xff] %v6118_v19 }
 0x679   :  { %v6128_v41 = vpop.f32.mrf.mxu2  ;;  %v6135_v28 = vpop.f32.mrf.mxu3 }
 0x67a   :  { %6780 = vst [vmem:[#allocation28_spill] sm:$0xff] %v6128_v41 }
 0x67b   :  { %6782 = vst [vmem:[#allocation22_spill] sm:$0xff] %v6135_v28 }
 0x694   :  { %v2188_v40 = vpop.f32.mrf.mxu0  ;;  %v2208_v39 = vpop.f32.mrf.mxu1 }
 0x695   :  { %v2251_v15 = vadd.f32 %v2188_v40, %v1805_v31  ;;  %v2252_v19 = vadd.f32 %v2208_v39, %v1825_v14  ;;  %v1774_v14 = vld [vmem:[%s6417_s5 + $0x18] sm:$0xff] }
 0x696   :  { %v1865_v11 = vadd.f32 %v1864_v38, %v1774_v14 }
 0x697   :  { %v2925_v7 = vmul.f32 -1.442695, %v2251_v15  ;;  %v2926_v63 = vmul.f32 -1.442695, %v2252_v19 }
 0x699   :  { %3070 = vpow2.f32 %v2925_v7 }
 0x69a   :  { %3072 = vpow2.f32 %v2926_v63 }
 0x69b   :  { %v2228_v61 = vpop.f32.mrf.mxu2  ;;  %v2248_v40 = vpop.f32.mrf.mxu3 }
 0x69c   :  { %v2253_v10 = vadd.f32 %v2228_v61, %v1845_v62  ;;  %v2254_v61 = vadd.f32 %v2248_v40, %v1865_v11 }
 0x69e   :  { %v2927_v35 = vmul.f32 -1.442695, %v2253_v10 }
 0x69f   :  { %v3071_v45 = vpop.eup %3070 }
 0x6a0   :  { %v3073_v41 = vpop.eup %3072  ;;  %v2264_v60 = vadd.f32 1.0, %v3071_v45  ;;  %3074 = vpow2.f32 %v2927_v35 }
 0x6a1   :  { %v2265_v31 = vadd.f32 1.0, %v3073_v41 }
 0x6a2   :  { %3076 = vrcp.f32 %v2264_v60  ;;  %v2278_v35 = vand.u32 2147483648, %v2264_v60  ;;  %v2276_v28 = vand.u32 2147483647, %v2264_v60  ;;  %vm2272_vm3 = vweird.f32 %v2264_v60 }
 0x6a3   :  { %3078 = vrcp.f32 %v2265_v31  ;;  %v2293_v41 = vand.u32 2147483648, %v2265_v31  ;;  %v2291_v59 = vand.u32 2147483647, %v2265_v31  ;;  %vm2287_vm4 = vweird.f32 %v2265_v31 }
 0x6a4   :  { %v2279_v40 = vor.u32 1.1754944e-38, %v2278_v35  ;;  %vm2277_vm6 = vcmp.eq.f32.partialorder %v2276_v28, 8.507059e+37 }
 0x6a5   :  { %v2294_v11 = vor.u32 1.1754944e-38, %v2293_v41  ;;  %vm2292_vm8 = vcmp.eq.f32.partialorder %v2291_v59, 8.507059e+37 }
 0x6a6   :  { %v3075_v7 = vpop.eup %3074 }
 0x6a7   :  { %v2266_v63 = vadd.f32 1.0, %v3075_v7 }
 0x6a8   :  { %v3077_v39 = vpop.eup %3076 }
 0x6a9   :  { %v3079_v62 = vpop.eup %3078  ;;  %v2268_v15 = vmul.f32 %v3077_v39, %v2264_v60  ;;  %3080 = vrcp.f32 %v2266_v63  ;;  %vm2273_vm1 = vweird.f32 %v3077_v39  ;;  %vm2302_vm10 = vweird.f32 %v2266_v63 }
 0x6aa   :  { %v2283_v19 = vmul.f32 %v3079_v62, %v2265_v31  ;;  %3082 = vtanh.f32 %v2254_v61  ;;  %vm2288_vm2 = vweird.f32 %v3079_v62  ;;  %vm2274_vm5 = vmor %vm2272_vm3, %vm2273_vm1  ;;  %v2308_v31 = vand.u32 2147483648, %v2266_v63 }
 0x6ab   :  { %v2269_v23 = vsub.f32 1.0, %v2268_v15  ;;  %vm2289_vm7 = vmor %vm2287_vm4, %vm2288_vm2 }
 0x6ac   :  { %v2284_v10 = vsub.f32 1.0, %v2283_v19 }
 0x6ad   :  { %v2270_v45 = vmul.f32 %v3077_v39, %v2269_v23 }
 0x6ae   :  { %v2285_v27 = vmul.f32 %v3079_v62, %v2284_v10 }
 0x6af   :  { %v3081_v58 = vpop.eup %3080  ;;  %v2271_v38 = vadd.f32 %v3077_v39, %v2270_v45 }
 0x6b0   :  { %v2298_v14 = vmul.f32 %v3081_v58, %v2266_v63  ;;  %v2286_v7 = vadd.f32 %v3079_v62, %v2285_v27  ;;  %v3083_v61 = vpop.eup %3082  ;;  %vm2303_vm9 = vweird.f32 %v3081_v58  ;;  %v2306_v27 = vand.u32 2147483647, %v2266_v63 }
 0x6b1   :  { %v2275_v15 = vsel %vm2274_vm5, %v3077_v39, %v2271_v38  ;;  %vm2304_vm11 = vmor %vm2302_vm10, %vm2303_vm9  ;;  %v2309_v39 = vor.u32 1.1754944e-38, %v2308_v31 }
 0x6b2   :  { %v2299_v19 = vsub.f32 1.0, %v2298_v14  ;;  %v2280_v23 = vsel %vm2277_vm6, %v2279_v40, %v2275_v15  ;;  %v2290_v57 = vsel %vm2289_vm7, %v3079_v62, %v2286_v7  ;;  %vm2307_vm12 = vcmp.eq.f32.partialorder %v2306_v27, 8.507059e+37  ;;  %v1778_v7 = vld [vmem:[%s6417_s5 + $0x38] sm:$0xff] }
 0x6b3   :  { %v2295_v10 = vsel %vm2292_vm8, %v2294_v11, %v2290_v57  ;;  %v2314_v56 = vmul.f32 %v3083_v61, %v2280_v23  ;;  %v6812_v61 = vld [vmem:[#allocation27_spill] sm:$0xff] }
 0x6b4   :  { %v2300_v55 = vmul.f32 %v3081_v58, %v2299_v19  ;;  %v2313_v54 = vmul.f32 0.0, %v2295_v10  ;;  %v1945_v19 = vadd.f32 %v6812_v61, %v1778_v7  ;;  %v2767_v7 = vld [vmem:[%s6418_s7 + $0x40] sm:$0xff] }
 0x6b6   :  { %v6140_v45 = vadd.f32 %v2314_v56, %v2313_v54  ;;  %v2301_v60 = vadd.f32 %v3081_v58, %v2300_v55  ;;  %v6811_v55 = vld [vmem:[#allocation19_spill] sm:$0xff] }
 0x6b8   :  { %3084 = vtanh.f32 %v6140_v45  ;;  %v2305_v28 = vsel %vm2304_vm11, %v3081_v58, %v2301_v60 }
 0x6b9   :  { %v2310_v62 = vsel %vm2307_vm12, %v2309_v39, %v2305_v28 }
 0x6be   :  { %v3085_v35 = vpop.eup %3084 }
 0x6bf   :  { %v6143_v59 = vmul.f32 %v3085_v35, %v2310_v62 }
 0x6c1   :  { %2334 = vmatmul.f32.vlgmr.msra.gmra.mxu0 %v6143_v59  ;;  %2354 = vmatmul.f32.vlgmr.msra.gmra.mxu1 %v6143_v59 }
 0x6c2   :  { %2374 = vmatmul.f32.vlgmr.msrb.gmra.mxu2 %v6143_v59  ;;  %2394 = vmatmul.f32.vlgmr.msrb.gmra.mxu3 %v6143_v59 }
 0x6c3   :  { %2612 = vmatpush.msra.mxu0 %v5587_v6  ;;  %2632 = vmatpush.msra.mxu1 %v5592_v13  ;;  %v6783_v6 = vld [vmem:[#allocation38_spill] sm:$0xff]  ;;  %v6784_v13 = vld [vmem:[#allocation39_spill] sm:$0xff] }
 0x6c4   :  { %2652 = vmatpush.msrb.mxu2 %v5599_v20  ;;  %2672 = vmatpush.msrb.mxu3 %v5604_v22  ;;  %v6785_v20 = vld [vmem:[#allocation36_spill] sm:$0xff]  ;;  %v6786_v22 = vld [vmem:[#allocation37_spill] sm:$0xff] }
 0x6c5   :  { %2613 = vmatpush.msra.mxu0 %v5611_v2  ;;  %2633 = vmatpush.msra.mxu1 %v5616_v21  ;;  %v6787_v2 = vld [vmem:[#allocation41_spill] sm:$0xff]  ;;  %v6788_v21 = vld [vmem:[#allocation42_spill] sm:$0xff] }
 0x6c6   :  { %2653 = vmatpush.msrb.mxu2 %v5623_v12  ;;  %2673 = vmatpush.msrb.mxu3 %v5628_v16  ;;  %v6789_v12 = vld [vmem:[#allocation40_spill] sm:$0xff]  ;;  %v6790_v16 = vld [vmem:[#allocation43_spill] sm:$0xff] }
 0x6c7   :  { %2614 = vmatpush.msra.mxu0 %v5635_v25  ;;  %2634 = vmatpush.msra.mxu1 %v5640_v33  ;;  %v6791_v25 = vld [vmem:[#allocation44_spill] sm:$0xff]  ;;  %v6792_v33 = vld [vmem:[#allocation45_spill] sm:$0xff] }
 0x6c8   :  { %2654 = vmatpush.msrb.mxu2 %v5647_v5  ;;  %2674 = vmatpush.msrb.mxu3 %v5652_v24  ;;  %v6793_v5 = vld [vmem:[#allocation3_spill] sm:$0xff]  ;;  %v6794_v24 = vld [vmem:[#allocation4_spill] sm:$0xff] }
 0x6c9   :  { %2615 = vmatpush.msra.mxu0 %v5659_v3  ;;  %2635 = vmatpush.msra.mxu1 %v5664_v44  ;;  %v6795_v3 = vld [vmem:[#allocation46_spill] sm:$0xff]  ;;  %v6796_v44 = vld [vmem:[#allocation47_spill] sm:$0xff] }
 0x6ca   :  { %2655 = vmatpush.msrb.mxu2 %v5671_v8  ;;  %2675 = vmatpush.msrb.mxu3 %v5676_v17  ;;  %v6797_v8 = vld [vmem:[#allocation11_spill] sm:$0xff]  ;;  %v6798_v17 = vld [vmem:[#allocation12_spill] sm:$0xff] }
 0x6cb   :  { %2616 = vmatpush.msra.mxu0 %v5683_v29  ;;  %2636 = vmatpush.msra.mxu1 %v5688_v26  ;;  %v6799_v29 = vld [vmem:[#allocation2_spill] sm:$0xff] }
 0x6cc   :  { %2656 = vmatpush.msrb.mxu2 %v5695_v48  ;;  %2676 = vmatpush.msrb.mxu3 %v5700_v18  ;;  %v6800_v26 = vld [vmem:[#allocation6_spill] sm:$0xff]  ;;  %v6801_v48 = vld [vmem:[#allocation23_spill] sm:$0xff]  ;;  %v6802_v18 = vld [vmem:[#allocation24_spill] sm:$0xff] }
 0x6cd   :  { %2617 = vmatpush.msra.mxu0 %v5707_v4  ;;  %2637 = vmatpush.msra.mxu1 %v5712_v51  ;;  %v6803_v4 = vld [vmem:[#allocation17_spill] sm:$0xff]  ;;  %v6804_v51 = vld [vmem:[#allocation18_spill] sm:$0xff] }
 0x6ce   :  { %2657 = vmatpush.msrb.mxu2 %v5719_v32  ;;  %2677 = vmatpush.msrb.mxu3 %v5724_v36  ;;  %v6805_v32 = vld [vmem:[#allocation13_spill] sm:$0xff]  ;;  %v6806_v36 = vld [vmem:[#allocation14_spill] sm:$0xff] }
 0x6cf   :  { %2618 = vmatpush.msra.mxu0 %v5731_v1  ;;  %2638 = vmatpush.msra.mxu1 %v5736_v47  ;;  %v6807_v1 = vld [vmem:[#allocation7_spill] sm:$0xff]  ;;  %v6808_v47 = vld [vmem:[#allocation8_spill] sm:$0xff] }
 0x6d0   :  { %2658 = vmatpush.msrb.mxu2 %v5743_v9  ;;  %2678 = vmatpush.msrb.mxu3 %v5748_v30  ;;  %v1775_v9 = vld [vmem:[%s6417_s5 + $0x20] sm:$0xff]  ;;  %v1776_v30 = vld [vmem:[%s6417_s5 + $0x28] sm:$0xff] }
 0x6d1   :  { %2619 = vmatpush.msra.mxu0 %v5755_v37  ;;  %2639 = vmatpush.msra.mxu1 %v5760_v0  ;;  %v6809_v37 = vld [vmem:[#allocation25_spill] sm:$0xff] }
 0x6d2   :  { %2659 = vmatpush.msrb.mxu2 %v5767_v34  ;;  %2679 = vmatpush.msrb.mxu3 %v5772_v43  ;;  %v1885_v0 = vadd.f32 %v6809_v37, %v1775_v9  ;;  %v6810_v34 = vld [vmem:[#allocation26_spill] sm:$0xff] }
 0x6d3   :  { %2620 = vmatpush.msra.mxu0 %v5779_v46  ;;  %2640 = vmatpush.msra.mxu1 %v5784_v42  ;;  %v1905_v43 = vadd.f32 %v6810_v34, %v1776_v30  ;;  %v2772_v34 = vld [vmem:[%s6418_s7 + $0x68] sm:$0xff] }
 0x6d4   :  { %2660 = vmatpush.msrb.mxu2 %v5791_v49  ;;  %2680 = vmatpush.msrb.mxu3 %v5796_v50 }
 0x6d5   :  { %2621 = vmatpush.msra.mxu0 %v5803_v52  ;;  %2641 = vmatpush.msra.mxu1 %v5808_v53  ;;  %v1777_v52 = vld [vmem:[%s6417_s5 + $0x30] sm:$0xff] }
 0x6d6   :  { %2661 = vmatpush.msrb.mxu2 %v6783_v6  ;;  %2681 = vmatpush.msrb.mxu3 %v6784_v13  ;;  %v1925_v56 = vadd.f32 %v6811_v55, %v1777_v52 }
 0x6d7   :  { %2622 = vmatpush.msra.mxu0 %v6785_v20  ;;  %2642 = vmatpush.msra.mxu1 %v6786_v22 }
 0x6d8   :  { %2662 = vmatpush.msrb.mxu2 %v6787_v2  ;;  %2682 = vmatpush.msrb.mxu3 %v6788_v21 }
 0x6d9   :  { %2623 = vmatpush.msra.mxu0 %v6789_v12  ;;  %2643 = vmatpush.msra.mxu1 %v6790_v16 }
 0x6da   :  { %2663 = vmatpush.msrb.mxu2 %v6791_v25  ;;  %2683 = vmatpush.msrb.mxu3 %v6792_v33 }
 0x6db   :  { %2624 = vmatpush.msra.mxu0 %v6793_v5  ;;  %2644 = vmatpush.msra.mxu1 %v6794_v24 }
 0x6dc   :  { %2664 = vmatpush.msrb.mxu2 %v6795_v3  ;;  %2684 = vmatpush.msrb.mxu3 %v6796_v44 }
 0x6dd   :  { %2625 = vmatpush.msra.mxu0 %v6797_v8  ;;  %2645 = vmatpush.msra.mxu1 %v6798_v17 }
 0x6de   :  { %2665 = vmatpush.msrb.mxu2 %v6799_v29  ;;  %2685 = vmatpush.msrb.mxu3 %v6800_v26 }
 0x6df   :  { %2626 = vmatpush.msra.mxu0 %v6801_v48  ;;  %2646 = vmatpush.msra.mxu1 %v6802_v18 }
 0x6e0   :  { %2666 = vmatpush.msrb.mxu2 %v6803_v4  ;;  %2686 = vmatpush.msrb.mxu3 %v6804_v51 }
 0x6e1   :  { %2627 = vmatpush.msra.mxu0 %v6805_v32  ;;  %2647 = vmatpush.msra.mxu1 %v6806_v36 }
 0x6e2   :  { %2667 = vmatpush.msrb.mxu2 %v6807_v1  ;;  %2687 = vmatpush.msrb.mxu3 %v6808_v47 }
 0x73e   :  { %v2335_v46 = vpop.f32.mrf.mxu0  ;;  %v2355_v42 = vpop.f32.mrf.mxu1 }
 0x73f   :  { %v2398_v49 = vadd.f32 %v2335_v46, %v1885_v0  ;;  %v2399_v50 = vadd.f32 %v2355_v42, %v1905_v43  ;;  %v2773_v0 = vld [vmem:[%s6418_s7 + $0x70] sm:$0xff]  ;;  %v1779_v43 = vld [vmem:[%s6417_s5 + $0x40] sm:$0xff]  ;;  %v1780_v46 = vld [vmem:[%s6417_s5 + $0x48] sm:$0xff] }
 0x740   :  { %v2771_v42 = vld [vmem:[%s6418_s7 + $0x60] sm:$0xff] }
 0x741   :  { %v2928_v53 = vmul.f32 -1.442695, %v2398_v49  ;;  %v2929_v54 = vmul.f32 -1.442695, %v2399_v50  ;;  %v2770_v49 = vld [vmem:[%s6418_s7 + $0x58] sm:$0xff]  ;;  %v6813_v50 = vld [vmem:[#allocation20_spill] sm:$0xff] }
 0x742   :  { %v1965_v52 = vadd.f32 %v6813_v50, %v1779_v43 }
 0x743   :  { %3086 = vpow2.f32 %v2928_v53  ;;  %v6814_v53 = vld [vmem:[#allocation15_spill] sm:$0xff] }
 0x744   :  { %3088 = vpow2.f32 %v2929_v54  ;;  %v1985_v54 = vadd.f32 %v6814_v53, %v1780_v46 }
 0x745   :  { %v2375_v57 = vpop.f32.mrf.mxu2  ;;  %v2395_v11 = vpop.f32.mrf.mxu3 }
 0x746   :  { %v2400_v58 = vadd.f32 %v2375_v57, %v1925_v56  ;;  %v2401_v60 = vadd.f32 %v2395_v11, %v1945_v19  ;;  %v2769_v57 = vld [vmem:[%s6418_s7 + $0x50] sm:$0xff]  ;;  %v2766_v11 = vld [vmem:[%s6418_s7 + $0x38] sm:$0xff] }
 0x747   :  { %v2765_v19 = vld [vmem:[%s6418_s7 + $0x30] sm:$0xff] }
 0x748   :  { %v2930_v63 = vmul.f32 -1.442695, %v2400_v58 }
 0x749   :  { %v3087_v41 = vpop.eup %3086 }
 0x74a   :  { %v3089_v38 = vpop.eup %3088  ;;  %v2411_v14 = vadd.f32 1.0, %v3087_v41  ;;  %3090 = vpow2.f32 %v2930_v63  ;;  %v2768_v41 = vld [vmem:[%s6418_s7 + $0x48] sm:$0xff] }
 0x74b   :  { %v2412_v40 = vadd.f32 1.0, %v3089_v38  ;;  %v1781_v38 = vld [vmem:[%s6417_s5 + $0x50] sm:$0xff] }
 0x74c   :  { %3092 = vrcp.f32 %v2411_v14  ;;  %v2425_v62 = vand.u32 2147483648, %v2411_v14  ;;  %v2423_v20 = vand.u32 2147483647, %v2411_v14  ;;  %vm2419_vm15 = vweird.f32 %v2411_v14 }
 0x74d   :  { %3094 = vrcp.f32 %v2412_v40  ;;  %v2440_v6 = vand.u32 2147483648, %v2412_v40  ;;  %v2438_v2 = vand.u32 2147483647, %v2412_v40  ;;  %vm2434_vm0 = vweird.f32 %v2412_v40 }
 0x74e   :  { %v2426_v25 = vor.u32 1.1754944e-38, %v2425_v62  ;;  %vm2424_vm3 = vcmp.eq.f32.partialorder %v2423_v20, 8.507059e+37  ;;  %v1782_v20 = vld [vmem:[%s6417_s5 + $0x58] sm:$0xff] }
 0x74f   :  { %v2441_v5 = vor.u32 1.1754944e-38, %v2440_v6  ;;  %vm2439_vm4 = vcmp.eq.f32.partialorder %v2438_v2, 8.507059e+37  ;;  %v2762_v6 = vld [vmem:[%s6418_s7 + $0x18] sm:$0xff] }
 0x750   :  { %v3091_v15 = vpop.eup %3090 }
 0x751   :  { %v2413_v23 = vadd.f32 1.0, %v3091_v15  ;;  %v6815_v15 = vld [vmem:[#allocation16_spill] sm:$0xff] }
 0x752   :  { %v3093_v10 = vpop.eup %3092  ;;  %v2005_v61 = vadd.f32 %v6815_v15, %v1781_v38  ;;  %v2825_v38 = vld [vmem:[%s6419_s9 + $0x68] sm:$0xff] }
 0x753   :  { %v3095_v31 = vpop.eup %3094  ;;  %v2415_v27 = vmul.f32 %v3093_v10, %v2411_v14  ;;  %3096 = vrcp.f32 %v2413_v23  ;;  %vm2420_vm13 = vweird.f32 %v3093_v10  ;;  %v2455_v32 = vand.u32 2147483648, %v2413_v23 }
 0x754   :  { %v2430_v28 = vmul.f32 %v3095_v31, %v2412_v40  ;;  %3098 = vtanh.f32 %v2401_v60  ;;  %vm2435_vm14 = vweird.f32 %v3095_v31  ;;  %vm2421_vm1 = vmor %vm2419_vm15, %vm2420_vm13  ;;  %vm2449_vm6 = vweird.f32 %v2413_v23  ;;  %v2764_v60 = vld [vmem:[%s6418_s7 + $0x28] sm:$0xff] }
 0x755   :  { %v2416_v39 = vsub.f32 1.0, %v2415_v27  ;;  %vm2436_vm2 = vmor %vm2434_vm0, %vm2435_vm14  ;;  %v2453_v36 = vand.u32 2147483647, %v2413_v23  ;;  %v2456_v47 = vor.u32 1.1754944e-38, %v2455_v32  ;;  %v2763_v27 = vld [vmem:[%s6418_s7 + $0x20] sm:$0xff] }
 0x756   :  { %v2431_v35 = vsub.f32 1.0, %v2430_v28 }
 0x757   :  { %v2417_v13 = vmul.f32 %v3093_v10, %v2416_v39  ;;  %vm2454_vm8 = vcmp.eq.f32.partialorder %v2453_v36, 8.507059e+37 }
 0x758   :  { %v2432_v22 = vmul.f32 %v3095_v31, %v2431_v35 }
 0x759   :  { %v3097_v21 = vpop.eup %3096  ;;  %v2418_v12 = vadd.f32 %v3093_v10, %v2417_v13  ;;  %v2761_v13 = vld [vmem:[%s6418_s7 + $0x10] sm:$0xff] }
 0x75a   :  { %v2445_v16 = vmul.f32 %v3097_v21, %v2413_v23  ;;  %v2433_v33 = vadd.f32 %v3095_v31, %v2432_v22  ;;  %v3099_v3 = vpop.eup %3098  ;;  %vm2450_vm5 = vweird.f32 %v3097_v21  ;;  %v2760_v22 = vld [vmem:[%s6418_s7 + $0x8] sm:$0xff] }
 0x75b   :  { %v2422_v24 = vsel %vm2421_vm1, %v3093_v10, %v2418_v12  ;;  %vm2451_vm7 = vmor %vm2449_vm6, %vm2450_vm5  ;;  %v6816_v12 = vld [vmem:[#allocation21_spill] sm:$0xff] }
 0x75c   :  { %v2446_v44 = vsub.f32 1.0, %v2445_v16  ;;  %v2427_v8 = vsel %vm2424_vm3, %v2426_v25, %v2422_v24  ;;  %v2437_v17 = vsel %vm2436_vm2, %v3095_v31, %v2433_v33  ;;  %v2025_v16 = vadd.f32 %v6816_v12, %v1782_v20  ;;  %v2759_v25 = vld [vmem:[%s6418_s7] sm:$0xff] }
 0x75d   :  { %v2442_v29 = vsel %vm2439_vm4, %v2441_v5, %v2437_v17  ;;  %v2461_v26 = vmul.f32 %v3099_v3, %v2427_v8 }
 0x75e   :  { %v2447_v48 = vmul.f32 %v3097_v21, %v2446_v44  ;;  %v2460_v18 = vmul.f32 %v2442_v29, %v6140_v45  ;;  %v2774_v45 = vld [vmem:[%s6418_s7 + $0x78] sm:$0xff] }
 0x760   :  { %v6230_v4 = vadd.f32 %v2461_v26, %v2460_v18  ;;  %v2448_v51 = vadd.f32 %v3097_v21, %v2447_v48 }
 0x762   :  { %3100 = vtanh.f32 %v6230_v4  ;;  %v2452_v1 = vsel %vm2451_vm7, %v3097_v21, %v2448_v51 }
 0x763   :  { %v2457_v30 = vsel %vm2454_vm8, %v2456_v47, %v2452_v1 }
 0x768   :  { %v3101_v9 = vpop.eup %3100 }
 0x769   :  { %v6233_v37 = vmul.f32 %v3101_v9, %v2457_v30 }
 0x76b   :  { %2481 = vmatmul.f32.vlgmr.msrb.gmra.mxu0 %v6233_v37  ;;  %2501 = vmatmul.f32.vlgmr.msrb.gmra.mxu1 %v6233_v37 }
 0x76c   :  { %2521 = vmatmul.f32.vlgmr.msra.gmra.mxu2 %v6233_v37  ;;  %2541 = vmatmul.f32.vlgmr.msra.gmra.mxu3 %v6233_v37 }
 0x76d   :  { %2779 = vmatpush.msrb.mxu0 %v2774_v45 }
 0x76f   :  { %2780 = vmatpush.msrb.mxu0 %v2773_v0 }
 0x771   :  { %2781 = vmatpush.msrb.mxu0 %v2772_v34 }
 0x773   :  { %2782 = vmatpush.msrb.mxu0 %v2771_v42 }
 0x775   :  { %2783 = vmatpush.msrb.mxu0 %v2770_v49 }
 0x777   :  { %2784 = vmatpush.msrb.mxu0 %v2769_v57 }
 0x779   :  { %2785 = vmatpush.msrb.mxu0 %v2768_v41  ;;  %v2826_v41 = vld [vmem:[%s6419_s9 + $0x70] sm:$0xff] }
 0x77b   :  { %2786 = vmatpush.msrb.mxu0 %v2767_v7 }
 0x77d   :  { %2787 = vmatpush.msrb.mxu0 %v2766_v11 }
 0x77f   :  { %2788 = vmatpush.msrb.mxu0 %v2765_v19  ;;  %v2822_v19 = vld [vmem:[%s6419_s9 + $0x50] sm:$0xff] }
 0x781   :  { %2789 = vmatpush.msrb.mxu0 %v2764_v60  ;;  %v2819_v60 = vld [vmem:[%s6419_s9 + $0x38] sm:$0xff] }
 0x783   :  { %2790 = vmatpush.msrb.mxu0 %v2763_v27  ;;  %v2817_v27 = vld [vmem:[%s6419_s9 + $0x28] sm:$0xff] }
 0x785   :  { %2791 = vmatpush.msrb.mxu0 %v2762_v6  ;;  %v1784_v6 = vld [vmem:[%s6417_s5 + $0x68] sm:$0xff] }
 0x787   :  { %2792 = vmatpush.msrb.mxu0 %v2761_v13  ;;  %v6817_v13 = vld [vmem:[#allocation9_spill] sm:$0xff] }
 0x789   :  { %2793 = vmatpush.msrb.mxu0 %v2760_v22  ;;  %v6818_v22 = vld [vmem:[#allocation10_spill] sm:$0xff] }
 0x78b   :  { %2794 = vmatpush.msrb.mxu0 %v2759_v25 }
 0x7e8   :  { %v2482_v55 = vpop.f32.mrf.mxu0  ;;  %v2502_v56 = vpop.f32.mrf.mxu1 }
 0x7e9   :  { %v2545_v58 = vadd.f32 %v2482_v55, %v1965_v52  ;;  %v2546_v63 = vadd.f32 %v2502_v56, %v1985_v54 }
 0x7eb   :  { %v2931_v14 = vmul.f32 -1.442695, %v2545_v58  ;;  %v2932_v40 = vmul.f32 -1.442695, %v2546_v63  ;;  %v2827_v63 = vld [vmem:[%s6419_s9 + $0x78] sm:$0xff] }
 0x7ec   :  { %2832 = vmatpush.msrb.mxu1 %v2827_v63 }
 0x7ed   :  { %3102 = vpow2.f32 %v2931_v14 }
 0x7ee   :  { %3104 = vpow2.f32 %v2932_v40  ;;  %2833 = vmatpush.msrb.mxu1 %v2826_v41  ;;  %v2824_v40 = vld [vmem:[%s6419_s9 + $0x60] sm:$0xff] }
 0x7ef   :  { %v2522_v23 = vpop.f32.mrf.mxu2  ;;  %v2542_v2 = vpop.f32.mrf.mxu3 }
 0x7f0   :  { %v2547_v10 = vadd.f32 %v2522_v23, %v2005_v61  ;;  %v2548_v24 = vadd.f32 %v2542_v2, %v2025_v16  ;;  %2834 = vmatpush.msrb.mxu1 %v2825_v38  ;;  %v2823_v61 = vld [vmem:[%s6419_s9 + $0x58] sm:$0xff]  ;;  %v2821_v23 = vld [vmem:[%s6419_s9 + $0x48] sm:$0xff]  ;;  %v2065_v2 = vadd.f32 %v6818_v22, %v1784_v6 }
 0x7f2   :  { %v2933_v31 = vmul.f32 -1.442695, %v2547_v10  ;;  %2835 = vmatpush.msrb.mxu1 %v2824_v40  ;;  %v2820_v10 = vld [vmem:[%s6419_s9 + $0x40] sm:$0xff] }
 0x7f3   :  { %v3103_v28 = vpop.eup %3102 }
 0x7f4   :  { %v3105_v39 = vpop.eup %3104  ;;  %v2558_v35 = vadd.f32 1.0, %v3103_v28  ;;  %3106 = vpow2.f32 %v2933_v31  ;;  %2836 = vmatpush.msrb.mxu1 %v2823_v61  ;;  %v2818_v31 = vld [vmem:[%s6419_s9 + $0x30] sm:$0xff]  ;;  %v2816_v28 = vld [vmem:[%s6419_s9 + $0x20] sm:$0xff] }
 0x7f5   :  { %v2559_v62 = vadd.f32 1.0, %v3105_v39  ;;  %v2813_v39 = vld [vmem:[%s6419_s9 + $0x8] sm:$0xff] }
 0x7f6   :  { %3108 = vrcp.f32 %v2558_v35  ;;  %v2572_v26 = vand.u32 2147483648, %v2558_v35  ;;  %v2570_v51 = vand.u32 2147483647, %v2558_v35  ;;  %vm2566_vm11 = vweird.f32 %v2558_v35  ;;  %2837 = vmatpush.msrb.mxu1 %v2822_v19 }
 0x7f7   :  { %3110 = vrcp.f32 %v2559_v62  ;;  %v2587_v48 = vand.u32 2147483648, %v2559_v62  ;;  %v2585_v36 = vand.u32 2147483647, %v2559_v62  ;;  %vm2581_vm12 = vweird.f32 %v2559_v62 }
 0x7f8   :  { %v2573_v30 = vor.u32 1.1754944e-38, %v2572_v26  ;;  %vm2571_vm15 = vcmp.eq.f32.partialorder %v2570_v51, 8.507059e+37  ;;  %2838 = vmatpush.msrb.mxu1 %v2821_v23 }
 0x7f9   :  { %v2588_v0 = vor.u32 1.1754944e-38, %v2587_v48  ;;  %vm2586_vm0 = vcmp.eq.f32.partialorder %v2585_v36, 8.507059e+37 }
 0x7fa   :  { %v3107_v21 = vpop.eup %3106  ;;  %2839 = vmatpush.msrb.mxu1 %v2820_v10 }
 0x7fb   :  { %v2560_v33 = vadd.f32 1.0, %v3107_v21 }
 0x7fc   :  { %v3109_v5 = vpop.eup %3108  ;;  %2840 = vmatpush.msrb.mxu1 %v2819_v60 }
 0x7fd   :  { %v3111_v3 = vpop.eup %3110  ;;  %v2562_v44 = vmul.f32 %v3109_v5, %v2558_v35  ;;  %3112 = vrcp.f32 %v2560_v33  ;;  %vm2567_vm9 = vweird.f32 %v3109_v5  ;;  %v2602_v57 = vand.u32 2147483648, %v2560_v33  ;;  %v2812_v35 = vld [vmem:[%s6419_s9] sm:$0xff] }
 0x7fe   :  { %v2577_v8 = vmul.f32 %v3111_v3, %v2559_v62  ;;  %3114 = vtanh.f32 %v2548_v24  ;;  %vm2582_vm10 = vweird.f32 %v3111_v3  ;;  %vm2568_vm13 = vmor %vm2566_vm11, %vm2567_vm9  ;;  %vm2596_vm2 = vweird.f32 %v2560_v33  ;;  %2841 = vmatpush.msrb.mxu1 %v2818_v31  ;;  %v1783_v62 = vld [vmem:[%s6417_s5 + $0x60] sm:$0xff] }
 0x7ff   :  { %v2563_v17 = vsub.f32 1.0, %v2562_v44  ;;  %vm2583_vm14 = vmor %vm2581_vm12, %vm2582_vm10  ;;  %v2600_v58 = vand.u32 2147483647, %v2560_v33  ;;  %v2603_v14 = vor.u32 1.1754944e-38, %v2602_v57  ;;  %v2045_v20 = vadd.f32 %v6817_v13, %v1783_v62 }
 0x800   :  { %v2578_v29 = vsub.f32 1.0, %v2577_v8  ;;  %2842 = vmatpush.msrb.mxu1 %v2817_v27  ;;  %v2775_v8 = vld [vmem:[%s6420_s8] sm:$0xff] }
 0x801   :  { %v2564_v18 = vmul.f32 %v3109_v5, %v2563_v17  ;;  %vm2601_vm4 = vcmp.eq.f32.partialorder %v2600_v58, 8.507059e+37  ;;  %v2777_v58 = vld [vmem:[%s6420_s8 + $0x10] sm:$0xff] }
 0x802   :  { %v2579_v32 = vmul.f32 %v3111_v3, %v2578_v29  ;;  %2843 = vmatpush.msrb.mxu1 %v2816_v28 }
 0x803   :  { %v3113_v1 = vpop.eup %3112  ;;  %v2565_v47 = vadd.f32 %v3109_v5, %v2564_v18 }
 0x804   :  { %v2592_v9 = vmul.f32 %v3113_v1, %v2560_v33  ;;  %v2580_v45 = vadd.f32 %v3111_v3, %v2579_v32  ;;  %v3115_v43 = vpop.eup %3114  ;;  %vm2597_vm1 = vweird.f32 %v3113_v1  ;;  %v1785_v33 = vld [vmem:[%s6417_s5 + $0x70] sm:$0xff] }
 0x805   :  { %v2569_v34 = vsel %vm2568_vm13, %v3109_v5, %v2565_v47  ;;  %vm2598_vm3 = vmor %vm2596_vm2, %vm2597_vm1 }
 0x806   :  { %v2593_v46 = vsub.f32 1.0, %v2592_v9  ;;  %v2574_v42 = vsel %vm2571_vm15, %v2573_v30, %v2569_v34  ;;  %v2584_v49 = vsel %vm2583_vm14, %v3111_v3, %v2580_v45  ;;  %v6819_v3 = vld [vmem:[#allocation28_spill] sm:$0xff]  ;;  %v2776_v9 = vld [vmem:[%s6420_s8 + $0x8] sm:$0xff]  ;;  %v1786_v30 = vld [vmem:[%s6417_s5 + $0x78] sm:$0xff] }
 0x807   :  { %v2589_v50 = vsel %vm2586_vm0, %v2588_v0, %v2584_v49  ;;  %v2608_v52 = vmul.f32 %v3115_v43, %v2574_v42  ;;  %v2085_v44 = vadd.f32 %v6819_v3, %v1785_v33 }
 0x808   :  { %v2594_v53 = vmul.f32 %v3113_v1, %v2593_v46  ;;  %v2607_v54 = vmul.f32 %v2589_v50, %v6230_v4  ;;  %v6820_v46 = vld [vmem:[#allocation22_spill] sm:$0xff] }
 0x809   :  { %v2105_v42 = vadd.f32 %v6820_v46, %v1786_v30 }
 0x80a   :  { %v6304_v55 = vadd.f32 %v2608_v52, %v2607_v54  ;;  %v2595_v56 = vadd.f32 %v3113_v1, %v2594_v53 }
 0x80c   :  { %3116 = vtanh.f32 %v6304_v55  ;;  %v2599_v4 = vsel %vm2598_vm3, %v3113_v1, %v2595_v56 }
 0x80d   :  { %v2604_v11 = vsel %vm2601_vm4, %v2603_v14, %v2599_v4 }
 0x812   :  { %v3117_v7 = vpop.eup %3116 }
 0x813   :  { %v2611_v15 = vmul.f32 %v3117_v7, %v2604_v11 }
 0x815   :  { %2628 = vmatmul.f32.vlgmr.msra.gmra.mxu0 %v2611_v15  ;;  %2648 = vmatmul.f32.vlgmr.msra.gmra.mxu1 %v2611_v15 }
 0x816   :  { %2668 = vmatmul.f32.vlgmr.msrb.gmra.mxu2 %v2611_v15  ;;  %2688 = vmatmul.f32.vlgmr.msrb.gmra.mxu3 %v2611_v15 }
 0x81d   :  { %2795 = vmatmul.f32.vlgmr.msrb.gmra.mxu0 %v6143_v59  ;;  %v2815_v59 = vld [vmem:[%s6419_s9 + $0x18] sm:$0xff] }
 0x81e   :  { %2844 = vmatpush.msrb.mxu1 %v2815_v59 }
 0x825   :  { %2798 = vmatmul.f32.gmra.mxu0 %v6233_v37  ;;  %v2814_v37 = vld [vmem:[%s6419_s9 + $0x10] sm:$0xff] }
 0x826   :  { %2845 = vmatpush.msrb.mxu1 %v2814_v37 }
 0x828   :  { %2846 = vmatpush.msrb.mxu1 %v2813_v39 }
 0x82a   :  { %2847 = vmatpush.msrb.mxu1 %v2812_v35 }
 0x82d   :  { %2801 = vmatmul.f32.gmra.mxu0 %v2611_v15 }
 0x892   :  { %v2629_v21 = vpop.f32.mrf.mxu0  ;;  %v2649_v12 = vpop.f32.mrf.mxu1 }
 0x893   :  { %v2692_v16 = vadd.f32 %v2629_v21, %v2045_v20  ;;  %v2693_v25 = vadd.f32 %v2649_v12, %v2065_v2 }
 0x895   :  { %v2934_v5 = vmul.f32 -1.442695, %v2692_v16  ;;  %v2935_v24 = vmul.f32 -1.442695, %v2693_v25 }
 0x897   :  { %3118 = vpow2.f32 %v2934_v5 }
 0x898   :  { %3120 = vpow2.f32 %v2935_v24 }
 0x899   :  { %v2669_v17 = vpop.f32.mrf.mxu2  ;;  %v2689_v0 = vpop.f32.mrf.mxu3 }
 0x89a   :  { %v2694_v29 = vadd.f32 %v2669_v17, %v2085_v44  ;;  %v2796_v26 = vpop.f32.mrf.mxu0  ;;  %v2695_v53 = vadd.f32 %v2689_v0, %v2105_v42  ;;  %v2828_v44 = vld [vmem:[%s6421_s10] sm:$0xff]  ;;  %v2829_v17 = vld [vmem:[%s6421_s10 + $0x8] sm:$0xff] }
 0x89b   :  { %v2797_v48 = vadd.f32 %v2796_v26, %v2775_v8 }
 0x89c   :  { %v2936_v18 = vmul.f32 -1.442695, %v2694_v29 }
 0x89d   :  { %v3119_v51 = vpop.eup %3118  ;;  %v2808_v32 = vmax.f32 %v2797_v48, 0.0  ;;  %v2830_v48 = vld [vmem:[%s6421_s10 + $0x10] sm:$0xff] }
 0x89e   :  { %v3121_v36 = vpop.eup %3120  ;;  %v2705_v1 = vadd.f32 1.0, %v3119_v51  ;;  %3122 = vpow2.f32 %v2936_v18 }
 0x89f   :  { %v2706_v47 = vadd.f32 1.0, %v3121_v36  ;;  %2848 = vmatmul.f32.vlgmr.msrb.gmra.mxu1 %v2808_v32  ;;  %v2778_v32 = vld [vmem:[%s6420_s8 + $0x18] sm:$0xff] }
 0x8a0   :  { %3124 = vrcp.f32 %v2705_v1  ;;  %v2717_v4 = vand.u32 2147483647, %v2705_v1  ;;  %v2719_v38 = vand.u32 2147483648, %v2705_v1  ;;  %vm2713_vm7 = vweird.f32 %v2705_v1 }
 0x8a1   :  { %3126 = vrcp.f32 %v2706_v47  ;;  %v2734_v40 = vand.u32 2147483648, %v2706_v47  ;;  %v2732_v61 = vand.u32 2147483647, %v2706_v47  ;;  %vm2728_vm8 = vweird.f32 %v2706_v47 }
 0x8a2   :  { %v2799_v45 = vpop.f32.mrf.mxu0  ;;  %v2720_v60 = vor.u32 1.1754944e-38, %v2719_v38  ;;  %vm2718_vm10 = vcmp.eq.f32.partialorder %v2717_v4, 8.507059e+37 }
 0x8a3   :  { %v2800_v34 = vadd.f32 %v2799_v45, %v2776_v9  ;;  %v2735_v28 = vor.u32 1.1754944e-38, %v2734_v40  ;;  %vm2733_vm12 = vcmp.eq.f32.partialorder %v2732_v61, 8.507059e+37  ;;  %v2831_v9 = vld [vmem:[%s6421_s10 + $0x18] sm:$0xff] }
 0x8a4   :  { %v3123_v43 = vpop.eup %3122 }
 0x8a5   :  { %v2707_v49 = vadd.f32 1.0, %v3123_v43  ;;  %v2809_v50 = vmax.f32 %v2800_v34, 0.0 }
 0x8a6   :  { %v3125_v52 = vpop.eup %3124 }
 0x8a7   :  { %v3127_v54 = vpop.eup %3126  ;;  %v2709_v56 = vmul.f32 %v3125_v52, %v2705_v1  ;;  %3128 = vrcp.f32 %v2707_v49  ;;  %2851 = vmatmul.f32.gmra.mxu1 %v2809_v50  ;;  %vm2714_vm5 = vweird.f32 %v3125_v52  ;;  %v2749_v12 = vand.u32 2147483648, %v2707_v49 }
 0x8a8   :  { %v2724_v57 = vmul.f32 %v3127_v54, %v2706_v47  ;;  %3130 = vtanh.f32 %v2695_v53  ;;  %vm2729_vm6 = vweird.f32 %v3127_v54  ;;  %vm2715_vm9 = vmor %vm2713_vm7, %vm2714_vm5  ;;  %vm2743_vm14 = vweird.f32 %v2707_v49 }
 0x8a9   :  { %v2710_v63 = vsub.f32 1.0, %v2709_v56  ;;  %vm2730_vm11 = vmor %vm2728_vm8, %vm2729_vm6  ;;  %v2747_v16 = vand.u32 2147483647, %v2707_v49  ;;  %v2750_v33 = vor.u32 1.1754944e-38, %v2749_v12 }
 0x8aa   :  { %v2725_v41 = vsub.f32 1.0, %v2724_v57  ;;  %v2802_v14 = vpop.f32.mrf.mxu0 }
 0x8ab   :  { %v2711_v7 = vmul.f32 %v3125_v52, %v2710_v63  ;;  %v2803_v11 = vadd.f32 %v2802_v14, %v2777_v58  ;;  %vm2748_vm0 = vcmp.eq.f32.partialorder %v2747_v16, 8.507059e+37 }
 0x8ac   :  { %v2726_v15 = vmul.f32 %v3127_v54, %v2725_v41 }
 0x8ad   :  { %v3129_v19 = vpop.eup %3128  ;;  %v2712_v23 = vadd.f32 %v3125_v52, %v2711_v7  ;;  %v2810_v10 = vmax.f32 %v2803_v11, 0.0 }
 0x8ae   :  { %v2727_v31 = vadd.f32 %v3127_v54, %v2726_v15  ;;  %v2739_v27 = vmul.f32 %v3129_v19, %v2707_v49  ;;  %v3131_v37 = vpop.eup %3130  ;;  %vm2744_vm13 = vweird.f32 %v3129_v19 }
 0x8af   :  { %v2716_v59 = vsel %vm2715_vm9, %v3125_v52, %v2712_v23  ;;  %2854 = vmatmul.f32.gmra.mxu1 %v2810_v10  ;;  %vm2745_vm15 = vmor %vm2743_vm14, %vm2744_vm13 }
 0x8b0   :  { %v2721_v39 = vsel %vm2718_vm10, %v2720_v60, %v2716_v59  ;;  %v2731_v35 = vsel %vm2730_vm11, %v3127_v54, %v2727_v31  ;;  %v2740_v62 = vsub.f32 1.0, %v2739_v27 }
 0x8b1   :  { %v2755_v6 = vmul.f32 %v3131_v37, %v2721_v39  ;;  %v2736_v13 = vsel %vm2733_vm12, %v2735_v28, %v2731_v35 }
 0x8b2   :  { %v2741_v20 = vmul.f32 %v3129_v19, %v2740_v62  ;;  %v2754_v22 = vmul.f32 %v2736_v13, %v6304_v55 }
 0x8b4   :  { %v2756_v2 = vadd.f32 %v2755_v6, %v2754_v22  ;;  %v2742_v21 = vadd.f32 %v3129_v19, %v2741_v20 }
 0x8b6   :  { %3132 = vtanh.f32 %v2756_v2  ;;  %v2746_v25 = vsel %vm2745_vm15, %v3129_v19, %v2742_v21 }
 0x8b7   :  { %v2751_v24 = vsel %vm2748_vm0, %v2750_v33, %v2746_v25 }
 0x8bc   :  { %v3133_v5 = vpop.eup %3132 }
 0x8bd   :  { %v2758_v3 = vmul.f32 %v3133_v5, %v2751_v24 }
 0x8bf   :  { %2804 = vmatmul.f32.gmra.mxu0 %v2758_v3 }
 0x91c   :  { %v2849_v55 = vpop.f32.mrf.mxu1 }
 0x91d   :  { %v2850_v8 = vadd.f32 %v2849_v55, %v2828_v44 }
 0x91f   :  { %2861 = vst [vmem:[%s6422_s11] sm:$0xff] %v2850_v8 }
 0x924   :  { %v2852_v29 = vpop.f32.mrf.mxu1 }
 0x925   :  { %v2853_v26 = vadd.f32 %v2852_v29, %v2829_v17 }
 0x927   :  { %2862 = vst [vmem:[%s6422_s11 + $0x8] sm:$0xff] %v2853_v26 }
 0x92c   :  { %v2855_v18 = vpop.f32.mrf.mxu1 }
 0x92d   :  { %v2856_v51 = vadd.f32 %v2855_v18, %v2830_v48 }
 0x92f   :  { %2863 = vst [vmem:[%s6422_s11 + $0x10] sm:$0xff] %v2856_v51 }
 0x93c   :  { %v2805_v36 = vpop.f32.mrf.mxu0 }
 0x93d   :  { %v2806_v1 = vadd.f32 %v2805_v36, %v2778_v32 }
 0x93f   :  { %v2811_v47 = vmax.f32 %v2806_v1, 0.0 }
 0x941   :  { %2857 = vmatmul.f32.gmra.mxu1 %v2811_v47 }
 0x9be   :  { %v2858_v30 = vpop.f32.mrf.mxu1 }
 0x9bf   :  { %v2859_v45 = vadd.f32 %v2858_v30, %v2831_v9 }
 0x9c1   :  { %2864 = vst [vmem:[%s6422_s11 + $0x18] sm:$0xff] %v2859_v45 }

</bundles_post_ra>
